<compile_context>
chip_gen: v5e
topology: v5e:2x2
jax: 0.10.0
libtpu: 0.0.40
codegen_flags: <defaults>
</compile_context>

<pallas_src>
import functools

import jax
import jax.numpy as jnp
from jax.experimental import pallas as pl
from jax.experimental.pallas import tpu as pltpu

_LANE = 128
_SUBLANE = 8


def _silu(h, act_dt, approx):
    """x * sigmoid(x) with sigmoid = 1/(1+exp(-x)).

    exp runs in act_dt (bf16 on v6e/v7x), reciprocal stays f32 (EUP slot).
    """
    e = jnp.exp(-(h.astype(act_dt))).astype(jnp.float32)
    return h * pl.reciprocal(1.0 + e, approx=approx)


def _shared_mlp(c_ref, w1_ref, b1_ref, w2_ref, b2_ref, w3_ref, b3_ref, act_dt, approx):
    """Three 1x1 convs (= W @ cond matmuls) + SiLU; f32 accumulation throughout."""
    mxu_dt = w1_ref.dtype
    cond = c_ref[...].astype(mxu_dt)                       # in-kernel cast: one HBM read of cond
    h = jnp.dot(w1_ref[...], cond, preferred_element_type=jnp.float32) + b1_ref[...]
    h = _silu(h, act_dt, approx)
    h = jnp.dot(w2_ref[...], h.astype(mxu_dt), preferred_element_type=jnp.float32) + b2_ref[...]
    h = _silu(h, act_dt, approx)
    h = jnp.dot(w3_ref[...], h.astype(mxu_dt), preferred_element_type=jnp.float32) + b3_ref[...]
    h = _silu(h, act_dt, approx)
    return h.astype(mxu_dt)


def saft_kernel_fused(x_ref, c_ref,
                      w1_ref, b1_ref, w2_ref, b2_ref, w3_ref, b3_ref,
                      wgb_ref, bgb_ref, out_ref, *, act_dtype, approx_recip):
    """gamma|beta fused into one matmul; requires norm_nc % 8 == 0 (sublane split)."""
    norm_nc = out_ref.shape[0]
    h = _shared_mlp(c_ref, w1_ref, b1_ref, w2_ref, b2_ref, w3_ref, b3_ref,
                    act_dtype, approx_recip)
    gb = jnp.dot(wgb_ref[...], h, preferred_element_type=jnp.float32) + bgb_ref[...]
    gamma = gb[:norm_nc, :]                                # sublane-aligned static slice
    beta = gb[norm_nc:, :]
    x = x_ref[...].astype(jnp.float32)
    out_ref[...] = (x * (1.0 + gamma) + beta).astype(out_ref.dtype)


def saft_kernel_split(x_ref, c_ref,
                      w1_ref, b1_ref, w2_ref, b2_ref, w3_ref, b3_ref,
                      wg_ref, bg_ref, wb_ref, bb_ref, out_ref, *, act_dtype, approx_recip):
    """Two head matmuls applied immediately (halves peak f32 intermediate)."""
    h = _shared_mlp(c_ref, w1_ref, b1_ref, w2_ref, b2_ref, w3_ref, b3_ref,
                    act_dtype, approx_recip)
    x = x_ref[...].astype(jnp.float32)
    gamma = jnp.dot(wg_ref[...], h, preferred_element_type=jnp.float32) + bg_ref[...]
    acc = x * (1.0 + gamma)
    beta = jnp.dot(wb_ref[...], h, preferred_element_type=jnp.float32) + bb_ref[...]
    out_ref[...] = (acc + beta).astype(out_ref.dtype)


def _chip_info():
    """(vmem_capacity_bytes, eup_supports_bf16) with conservative fallbacks."""
    try:
        kind = jax.devices()[0].device_kind.lower()
    except Exception:
        kind = ""
    try:
        cap = int(pltpu.get_tpu_info().vmem_capacity_bytes)
    except Exception:
        # v5e/v6e (and v4) have 128 MiB per TC; default to 64 MiB if unsure (v7x-safe).
        cap = 128 * 2**20 if any(g in kind for g in ("v4", "v5", "v6")) else 64 * 2**20
    bf16_eup = not any(g in kind for g in ("v2", "v3", "v4", "v5"))
    return cap, bf16_eup


def saft_forward(x_normalized, cond, params, *, tile_p=None, compute_dtype=jnp.bfloat16):
    """x_normalized: (N, norm_nc, H, W); cond: (N, label_nc, H, W) -- NCHW like PyTorch."""
    N, norm_nc, H, W = x_normalized.shape
    Nc, label_nc, Hc, Wc = cond.shape
    assert (N, H, W) == (Nc, Hc, Wc)
    nhidden = params["w1"].shape[0]
    HW = H * W
    f32 = jnp.float32

    mxu_dt = jnp.dtype(compute_dtype) if compute_dtype is not None else jnp.dtype(params["w1"].dtype)
    vmem_cap, bf16_eup = _chip_info()
    act_dt = jnp.bfloat16 if (mxu_dt == jnp.bfloat16 and bf16_eup) else f32
    approx_recip = bool(mxu_dt == jnp.bfloat16)   # strict f32 path keeps an exact reciprocal

    # ---- lane-tile selection: as large as VMEM allows, avoid pad/slice when possible.
    if tile_p is None:
        tile_p = 2048 if vmem_cap >= 96 * 2**20 else (512 if norm_nc >= 256 else 1024)
    HW_r = pl.cdiv(HW, _LANE) * _LANE
    tile_p = max(_LANE, (min(tile_p, HW_r) // _LANE) * _LANE)
    tp = tile_p
    if HW == HW_r:
        # HW is already a multiple of 128: pick the largest lane-multiple divisor
        # <= tile_p so no jnp.pad / output-slice HBM round trips are needed.
        for cand in range(tile_p, 0, -_LANE):
            if HW % cand == 0:
                tp = cand
                break
        HW_pad = HW
    else:
        HW_pad = pl.cdiv(HW, tp) * tp

    # Pixels-on-lanes layout: NCHW -> (N, C, H*W).  Pure reshape, no transpose.
    x_flat = x_normalized.reshape(N, norm_nc, HW)
    c_flat = cond.reshape(N, label_nc, HW)        # no wrapper-side dtype cast (done in-kernel)
    if HW_pad != HW:
        pad = ((0, 0), (0, 0), (0, HW_pad - HW))
        x_flat = jnp.pad(x_flat, pad)
        c_flat = jnp.pad(c_flat, pad)

    grid = (N, HW_pad // tp)

    # ---- gamma/beta head: fuse only if sublane-aligned and VMEM allows the f32 gb tile.
    gb_bytes_f32 = 2 * norm_nc * tp * 4
    fuse_gb = (norm_nc % _SUBLANE == 0) and (vmem_cap >= 96 * 2**20 or gb_bytes_f32 <= 8 * 2**20)

    def col(b):  # bias as (C, 1) f32 column, added post-accumulation
        return b.reshape(-1, 1).astype(f32)

    w1 = params["w1"].astype(mxu_dt); b1 = col(params["b1"])
    w2 = params["w2"].astype(mxu_dt); b2 = col(params["b2"])
    w3 = params["w3"].astype(mxu_dt); b3 = col(params["b3"])
    if fuse_gb:
        head_args = [jnp.concatenate([params["wg"], params["wb"]], 0).astype(mxu_dt),
                     col(jnp.concatenate([params["bg"], params["bb"]], 0))]
        head_shapes = [(2 * norm_nc, nhidden), (2 * norm_nc, 1)]
        kernel = functools.partial(saft_kernel_fused, act_dtype=act_dt, approx_recip=approx_recip)
    else:
        head_args = [params["wg"].astype(mxu_dt), col(params["bg"]),
                     params["wb"].astype(mxu_dt), col(params["bb"])]
        head_shapes = [(norm_nc, nhidden), (norm_nc, 1), (norm_nc, nhidden), (norm_nc, 1)]
        kernel = functools.partial(saft_kernel_split, act_dtype=act_dt, approx_recip=approx_recip)

    # ---- advisory cost + VMEM budget (clamped to physical capacity minus headroom).
    elt = jnp.dtype(mxu_dt).itemsize
    x_elt = x_flat.dtype.itemsize
    c_elt = c_flat.dtype.itemsize
    P_total = N * HW_pad
    w_elems = label_nc * nhidden + 2 * nhidden * nhidden + 2 * nhidden * norm_nc
    flops = 2 * P_total * (label_nc * nhidden + 2 * nhidden * nhidden + 2 * nhidden * norm_nc)
    transcendentals = 2 * 3 * P_total * nhidden           # exp + reciprocal per SiLU element
    bytes_accessed = P_total * (2 * norm_nc * x_elt + label_nc * c_elt) + w_elems * elt

    io_bytes = 2 * tp * (2 * norm_nc * x_elt + label_nc * c_elt)        # double-buffered tiles
    w_bytes = (w_elems + 3 * nhidden + 2 * norm_nc) * max(elt, 4)       # single-buffered weights
    interm_bytes = 4 * tp * (3 * nhidden + 2 * norm_nc) * 4             # f32 intermediates
    vmem_limit = int(min(vmem_cap - 12 * 2**20,
                         max(2 * (io_bytes + w_bytes + interm_bytes), 32 * 2**20)))

    # TODO(synk): sweep pipeline_mode=pl.Buffered(3) on the x/cond pixel specs for v5e
    # (lower HBM BW) — per-step compute is short, a 3rd buffer may hide DMA latency.
    pix_spec = lambda c: pl.BlockSpec((None, c, tp), lambda n, i: (n, 0, i))
    out_spec = pl.BlockSpec((None, norm_nc, tp), lambda n, i: (n, 0, i))

    def run(single_buffer_weights):
        wkw = {"pipeline_mode": pl.Buffered(1)} if single_buffer_weights else {}
        # Weights/biases: whole array, constant index map -> grid-resident.
        full = lambda shape: pl.BlockSpec(shape, lambda n, i: (0,) * len(shape), **wkw)
        in_specs = [pix_spec(norm_nc),                                   # x
                    pix_spec(label_nc),                                  # cond
                    full((nhidden, label_nc)), full((nhidden, 1)),       # w1, b1
                    full((nhidden, nhidden)), full((nhidden, 1)),        # w2, b2
                    full((nhidden, nhidden)), full((nhidden, 1))]        # w3, b3
        in_specs += [full(s) for s in head_shapes]                       # gamma/beta head
        return pl.pallas_call(
            kernel,
            out_shape=jax.ShapeDtypeStruct((N, norm_nc, HW_pad), x_normalized.dtype),
            grid_spec=pltpu.PrefetchScalarGridSpec(
                num_scalar_prefetch=0,
                grid=grid,
                in_specs=in_specs,
                out_specs=out_spec,
            ),
            compiler_params=pltpu.CompilerParams(
                dimension_semantics=("parallel", "parallel"),
                vmem_limit_bytes=vmem_limit),
            cost_estimate=pl.CostEstimate(flops=int(flops),
                                          transcendentals=int(transcendentals),
                                          bytes_accessed=int(bytes_accessed)),
        )(x_flat, c_flat, w1, b1, w2, b2, w3, b3, *head_args)

    try:
        out_flat = run(True)      # grid-invariant weights single-buffered (VMEM savings)
    except Exception:             # fallback if this jax build rejects Buffered(1)
        out_flat = run(False)

    if HW_pad != HW:
        out_flat = out_flat[:, :, :HW]
    return out_flat.reshape(N, norm_nc, H, W)


def init_params(key, label_nc, norm_nc, nhidden=128, dtype=jnp.float32):
    """PyTorch Conv2d(k=1)-style params: weight (Cout, Cin), bias (Cout,)."""
    ks = jax.random.split(key, 10)

    def conv1x1_init(kw, kb, cin, cout):
        scale = 1.0 / (cin ** 0.5)
        w = jax.random.uniform(kw, (cout, cin), dtype, -scale, scale)
        b = jax.random.uniform(kb, (cout,), dtype, -scale, scale)
        return w, b

    w1, b1 = conv1x1_init(ks[0], ks[1], label_nc, nhidden)
    w2, b2 = conv1x1_init(ks[2], ks[3], nhidden, nhidden)
    w3, b3 = conv1x1_init(ks[4], ks[5], nhidden, nhidden)
    wg, bg = conv1x1_init(ks[6], ks[7], nhidden, norm_nc)
    wbb, bb = conv1x1_init(ks[8], ks[9], nhidden, norm_nc)
    return {"w1": w1, "b1": b1, "w2": w2, "b2": b2, "w3": w3, "b3": b3,
            "wg": wg, "bg": bg, "wb": wbb, "bb": bb}


def saft_reference(x, cond, p):
    """Pure-JAX reference of the PyTorch forward (NCHW, 1x1 convs as matmuls)."""
    def conv1x1(z, w, b):
        return (jnp.einsum("oc,nchw->nohw", w.astype(jnp.float32), z.astype(jnp.float32))
                + b.astype(jnp.float32)[None, :, None, None])
    h = jax.nn.silu(conv1x1(cond, p["w1"], p["b1"]))
    h = jax.nn.silu(conv1x1(h, p["w2"], p["b2"]))
    h = jax.nn.silu(conv1x1(h, p["w3"], p["b3"]))
    gamma = conv1x1(h, p["wg"], p["bg"])
    beta = conv1x1(h, p["wb"], p["bb"])
    return x * (1.0 + gamma) + beta


if __name__ == "__main__":
    key = jax.random.PRNGKey(0)
    k_x, k_c, k_p, k_x2, k_c2, k_p3, k_x3, k_c3 = jax.random.split(key, 8)

    N, norm_nc, label_nc, H, W = 2, 8, 4, 16, 16
    x_normalized = jax.random.normal(k_x, (N, norm_nc, H, W), jnp.float32)
    cond = jax.random.normal(k_c, (N, label_nc, H, W), jnp.float32)
    params = init_params(k_p, label_nc, norm_nc)
    ref = saft_reference(x_normalized, cond, params)

    # Default fast path: bf16 MXU inputs, f32 accumulation, approx reciprocal.
    out = jax.block_until_ready(saft_forward(x_normalized, cond, params))
    assert out.shape == (N, norm_nc, H, W)
    assert jnp.allclose(out, ref, atol=5e-2, rtol=5e-2)

    # Strict f32 path (exact reciprocal, f32 SiLU) -> tight tolerance.
    out_f32 = jax.block_until_ready(
        saft_forward(x_normalized, cond, params, compute_dtype=jnp.float32))
    assert jnp.allclose(out_f32, ref, atol=1e-4, rtol=1e-4)

    # Ragged spatial size (H*W not a multiple of 128) exercises the padded path.
    H2 = W2 = 10
    x2 = jax.random.normal(k_x2, (N, norm_nc, H2, W2), jnp.float32)
    c2 = jax.random.normal(k_c2, (N, label_nc, H2, W2), jnp.float32)
    out2 = jax.block_until_ready(saft_forward(x2, c2, params, compute_dtype=jnp.float32))
    ref2 = saft_reference(x2, c2, params)
    assert out2.shape == (N, norm_nc, H2, W2)
    assert jnp.allclose(out2, ref2, atol=1e-4, rtol=1e-4)

    # norm_nc not a multiple of 8 -> un-fused (split) gamma/beta head kernel.
    norm3 = 6
    params3 = init_params(k_p3, label_nc, norm3)
    x3 = jax.random.normal(k_x3, (N, norm3, H, W), jnp.float32)
    c3 = jax.random.normal(k_c3, (N, label_nc, H, W), jnp.float32)
    out3 = jax.block_until_ready(saft_forward(x3, c3, params3, compute_dtype=jnp.float32))
    ref3 = saft_reference(x3, c3, params3)
    assert out3.shape == (N, norm3, H, W)
    assert jnp.allclose(out3, ref3, atol=1e-4, rtol=1e-4)

    print("KERNEL_OK")
</pallas_src>

<mosaic_0001>
module attributes {stable_mosaic.version = 11 : i64} {
  func.func @saft_kernel_fused(%arg0: i32, %arg1: i32, %arg2: memref<1x8x256xf32, #tpu.memory_space<vmem>>, %arg3: memref<1x4x256xf32, #tpu.memory_space<vmem>>, %arg4: memref<128x4xbf16, #tpu.memory_space<vmem>>, %arg5: memref<128x1xf32, #tpu.memory_space<vmem>>, %arg6: memref<128x128xbf16, #tpu.memory_space<vmem>>, %arg7: memref<128x1xf32, #tpu.memory_space<vmem>>, %arg8: memref<128x128xbf16, #tpu.memory_space<vmem>>, %arg9: memref<128x1xf32, #tpu.memory_space<vmem>>, %arg10: memref<16x128xbf16, #tpu.memory_space<vmem>>, %arg11: memref<16x1xf32, #tpu.memory_space<vmem>>, %arg12: memref<1x8x256xf32, #tpu.memory_space<vmem>>) attributes {dimension_semantics = [#tpu.dimension_semantics<parallel>, #tpu.dimension_semantics<parallel>], iteration_bounds = array<i64: 2, 1>, scalar_prefetch = 0 : i64, scratch_operands = 0 : i64, tpu.core_type = #tpu.core_type<tc>, window_params = [{transform_indices = @transform_0, window_bounds = array<i64: 1, 8, 256>}, {transform_indices = @transform_1, window_bounds = array<i64: 1, 4, 256>}, {pipeline_mode = #tpu.pipeline_mode<synchronous>, transform_indices = @transform_2, window_bounds = array<i64: 128, 4>}, {pipeline_mode = #tpu.pipeline_mode<synchronous>, transform_indices = @transform_3, window_bounds = array<i64: 128, 1>}, {pipeline_mode = #tpu.pipeline_mode<synchronous>, transform_indices = @transform_4, window_bounds = array<i64: 128, 128>}, {pipeline_mode = #tpu.pipeline_mode<synchronous>, transform_indices = @transform_5, window_bounds = array<i64: 128, 1>}, {pipeline_mode = #tpu.pipeline_mode<synchronous>, transform_indices = @transform_6, window_bounds = array<i64: 128, 128>}, {pipeline_mode = #tpu.pipeline_mode<synchronous>, transform_indices = @transform_7, window_bounds = array<i64: 128, 1>}, {pipeline_mode = #tpu.pipeline_mode<synchronous>, transform_indices = @transform_8, window_bounds = array<i64: 16, 128>}, {pipeline_mode = #tpu.pipeline_mode<synchronous>, transform_indices = @transform_9, window_bounds = array<i64: 16, 1>}, {transform_indices = @transform_10, window_bounds = array<i64: 1, 8, 256>}]} {
    %c0 = arith.constant 0 : index
    %c0_0 = arith.constant 0 : index
    %c0_1 = arith.constant 0 : index
    %0 = vector.load %arg3[%c0, %c0_0, %c0_1] : memref<1x4x256xf32, #tpu.memory_space<vmem>>, vector<1x4x256xf32>
    %1 = vector.shape_cast %0 : vector<1x4x256xf32> to vector<4x256xf32>
    %2 = arith.truncf %1 : vector<4x256xf32> to vector<4x256xbf16>
    %c0_2 = arith.constant 0 : index
    %c0_3 = arith.constant 0 : index
    %3 = vector.load %arg4[%c0_2, %c0_3] : memref<128x4xbf16, #tpu.memory_space<vmem>>, vector<128x4xbf16>
    %cst = arith.constant dense<0.000000e+00> : vector<128x256xf32>
    %4 = tpu.matmul %3, %2, %cst {dimension_numbers = #tpu.dot_dimension_numbers<[1], [0], [0], [1], [0, 0, 1, 1], [], []>} : vector<128x4xbf16>, vector<4x256xbf16>, vector<128x256xf32> -> vector<128x256xf32>
    %c0_4 = arith.constant 0 : index
    %c0_5 = arith.constant 0 : index
    %5 = vector.load %arg5[%c0_4, %c0_5] : memref<128x1xf32, #tpu.memory_space<vmem>>, vector<128x1xf32>
    %6 = vector.broadcast %5 : vector<128x1xf32> to vector<128x256xf32>
    %7 = arith.addf %4, %6 : vector<128x256xf32>
    %8 = arith.truncf %7 : vector<128x256xf32> to vector<128x256xbf16>
    %cst_6 = arith.constant 0.000000e+00 : bf16
    %9 = vector.broadcast %cst_6 : bf16 to vector<128x256xbf16>
    %10 = arith.subf %9, %8 : vector<128x256xbf16>
    %11 = math.exp %10 : vector<128x256xbf16>
    %12 = arith.extf %11 : vector<128x256xbf16> to vector<128x256xf32>
    %cst_7 = arith.constant 1.000000e+00 : f32
    %13 = vector.broadcast %cst_7 : f32 to vector<128x256xf32>
    %14 = arith.addf %13, %12 : vector<128x256xf32>
    %15 = tpu.reciprocal %14 {approx = true} : vector<128x256xf32> -> vector<128x256xf32>
    %16 = arith.mulf %7, %15 : vector<128x256xf32>
    %c0_8 = arith.constant 0 : index
    %c0_9 = arith.constant 0 : index
    %17 = vector.load %arg6[%c0_8, %c0_9] : memref<128x128xbf16, #tpu.memory_space<vmem>>, vector<128x128xbf16>
    %18 = arith.truncf %16 : vector<128x256xf32> to vector<128x256xbf16>
    %cst_10 = arith.constant dense<0.000000e+00> : vector<128x256xf32>
    %19 = tpu.matmul %17, %18, %cst_10 {dimension_numbers = #tpu.dot_dimension_numbers<[1], [0], [0], [1], [0, 0, 1, 1], [], []>} : vector<128x128xbf16>, vector<128x256xbf16>, vector<128x256xf32> -> vector<128x256xf32>
    %c0_11 = arith.constant 0 : index
    %c0_12 = arith.constant 0 : index
    %20 = vector.load %arg7[%c0_11, %c0_12] : memref<128x1xf32, #tpu.memory_space<vmem>>, vector<128x1xf32>
    %21 = vector.broadcast %20 : vector<128x1xf32> to vector<128x256xf32>
    %22 = arith.addf %19, %21 : vector<128x256xf32>
    %23 = arith.truncf %22 : vector<128x256xf32> to vector<128x256xbf16>
    %cst_13 = arith.constant 0.000000e+00 : bf16
    %24 = vector.broadcast %cst_13 : bf16 to vector<128x256xbf16>
    %25 = arith.subf %24, %23 : vector<128x256xbf16>
    %26 = math.exp %25 : vector<128x256xbf16>
    %27 = arith.extf %26 : vector<128x256xbf16> to vector<128x256xf32>
    %cst_14 = arith.constant 1.000000e+00 : f32
    %28 = vector.broadcast %cst_14 : f32 to vector<128x256xf32>
    %29 = arith.addf %28, %27 : vector<128x256xf32>
    %30 = tpu.reciprocal %29 {approx = true} : vector<128x256xf32> -> vector<128x256xf32>
    %31 = arith.mulf %22, %30 : vector<128x256xf32>
    %c0_15 = arith.constant 0 : index
    %c0_16 = arith.constant 0 : index
    %32 = vector.load %arg8[%c0_15, %c0_16] : memref<128x128xbf16, #tpu.memory_space<vmem>>, vector<128x128xbf16>
    %33 = arith.truncf %31 : vector<128x256xf32> to vector<128x256xbf16>
    %cst_17 = arith.constant dense<0.000000e+00> : vector<128x256xf32>
    %34 = tpu.matmul %32, %33, %cst_17 {dimension_numbers = #tpu.dot_dimension_numbers<[1], [0], [0], [1], [0, 0, 1, 1], [], []>} : vector<128x128xbf16>, vector<128x256xbf16>, vector<128x256xf32> -> vector<128x256xf32>
    %c0_18 = arith.constant 0 : index
    %c0_19 = arith.constant 0 : index
    %35 = vector.load %arg9[%c0_18, %c0_19] : memref<128x1xf32, #tpu.memory_space<vmem>>, vector<128x1xf32>
    %36 = vector.broadcast %35 : vector<128x1xf32> to vector<128x256xf32>
    %37 = arith.addf %34, %36 : vector<128x256xf32>
    %38 = arith.truncf %37 : vector<128x256xf32> to vector<128x256xbf16>
    %cst_20 = arith.constant 0.000000e+00 : bf16
    %39 = vector.broadcast %cst_20 : bf16 to vector<128x256xbf16>
    %40 = arith.subf %39, %38 : vector<128x256xbf16>
    %41 = math.exp %40 : vector<128x256xbf16>
    %42 = arith.extf %41 : vector<128x256xbf16> to vector<128x256xf32>
    %cst_21 = arith.constant 1.000000e+00 : f32
    %43 = vector.broadcast %cst_21 : f32 to vector<128x256xf32>
    %44 = arith.addf %43, %42 : vector<128x256xf32>
    %45 = tpu.reciprocal %44 {approx = true} : vector<128x256xf32> -> vector<128x256xf32>
    %46 = arith.mulf %37, %45 : vector<128x256xf32>
    %47 = arith.truncf %46 : vector<128x256xf32> to vector<128x256xbf16>
    %c0_22 = arith.constant 0 : index
    %c0_23 = arith.constant 0 : index
    %48 = vector.load %arg10[%c0_22, %c0_23] : memref<16x128xbf16, #tpu.memory_space<vmem>>, vector<16x128xbf16>
    %cst_24 = arith.constant dense<0.000000e+00> : vector<16x256xf32>
    %49 = tpu.matmul %48, %47, %cst_24 {dimension_numbers = #tpu.dot_dimension_numbers<[1], [0], [0], [1], [0, 0, 1, 1], [], []>} : vector<16x128xbf16>, vector<128x256xbf16>, vector<16x256xf32> -> vector<16x256xf32>
    %c0_25 = arith.constant 0 : index
    %c0_26 = arith.constant 0 : index
    %50 = vector.load %arg11[%c0_25, %c0_26] : memref<16x1xf32, #tpu.memory_space<vmem>>, vector<16x1xf32>
    %51 = vector.broadcast %50 : vector<16x1xf32> to vector<16x256xf32>
    %52 = arith.addf %49, %51 : vector<16x256xf32>
    %53 = vector.extract_strided_slice %52 {offsets = [0, 0], sizes = [8, 256], strides = [1, 1]} : vector<16x256xf32> to vector<8x256xf32>
    %54 = vector.extract_strided_slice %52 {offsets = [8, 0], sizes = [8, 256], strides = [1, 1]} : vector<16x256xf32> to vector<8x256xf32>
    %c0_27 = arith.constant 0 : index
    %c0_28 = arith.constant 0 : index
    %c0_29 = arith.constant 0 : index
    %55 = vector.load %arg2[%c0_27, %c0_28, %c0_29] : memref<1x8x256xf32, #tpu.memory_space<vmem>>, vector<1x8x256xf32>
    %56 = vector.shape_cast %55 : vector<1x8x256xf32> to vector<8x256xf32>
    %cst_30 = arith.constant 1.000000e+00 : f32
    %57 = vector.broadcast %cst_30 : f32 to vector<8x256xf32>
    %58 = arith.addf %57, %53 : vector<8x256xf32>
    %59 = arith.mulf %56, %58 : vector<8x256xf32>
    %60 = arith.addf %59, %54 : vector<8x256xf32>
    %c0_31 = arith.constant 0 : index
    %c0_32 = arith.constant 0 : index
    %c0_33 = arith.constant 0 : index
    %61 = vector.load %arg12[%c0_31, %c0_32, %c0_33] : memref<1x8x256xf32, #tpu.memory_space<vmem>>, vector<1x8x256xf32>
    %62 = vector.shape_cast %61 : vector<1x8x256xf32> to vector<8x256xf32>
    %63 = vector.shape_cast %60 : vector<8x256xf32> to vector<1x8x256xf32>
    tpu.vector_store %arg12[%c0_31, %c0_32, %c0_33], %63 {strides = array<i32>} : memref<1x8x256xf32, #tpu.memory_space<vmem>>, vector<1x8x256xf32>,
    return
  }
  func.func @transform_0(%arg0: i32, %arg1: i32) -> (i32, i32, i32) {
    %c0_i32 = arith.constant 0 : i32
    %c0_i32_0 = arith.constant 0 : i32
    return %arg0, %c0_i32, %arg1 : i32, i32, i32
  }
  func.func @transform_1(%arg0: i32, %arg1: i32) -> (i32, i32, i32) {
    %c0_i32 = arith.constant 0 : i32
    %c0_i32_0 = arith.constant 0 : i32
    return %arg0, %c0_i32, %arg1 : i32, i32, i32
  }
  func.func @transform_2(%arg0: i32, %arg1: i32) -> (i32, i32) {
    %c0_i32 = arith.constant 0 : i32
    %c0_i32_0 = arith.constant 0 : i32
    %c0_i32_1 = arith.constant 0 : i32
    return %c0_i32, %c0_i32_0 : i32, i32
  }
  func.func @transform_3(%arg0: i32, %arg1: i32) -> (i32, i32) {
    %c0_i32 = arith.constant 0 : i32
    %c0_i32_0 = arith.constant 0 : i32
    %c0_i32_1 = arith.constant 0 : i32
    return %c0_i32, %c0_i32_0 : i32, i32
  }
  func.func @transform_4(%arg0: i32, %arg1: i32) -> (i32, i32) {
    %c0_i32 = arith.constant 0 : i32
    %c0_i32_0 = arith.constant 0 : i32
    %c0_i32_1 = arith.constant 0 : i32
    return %c0_i32, %c0_i32_0 : i32, i32
  }
  func.func @transform_5(%arg0: i32, %arg1: i32) -> (i32, i32) {
    %c0_i32 = arith.constant 0 : i32
    %c0_i32_0 = arith.constant 0 : i32
    %c0_i32_1 = arith.constant 0 : i32
    return %c0_i32, %c0_i32_0 : i32, i32
  }
  func.func @transform_6(%arg0: i32, %arg1: i32) -> (i32, i32) {
    %c0_i32 = arith.constant 0 : i32
    %c0_i32_0 = arith.constant 0 : i32
    %c0_i32_1 = arith.constant 0 : i32
    return %c0_i32, %c0_i32_0 : i32, i32
  }
  func.func @transform_7(%arg0: i32, %arg1: i32) -> (i32, i32) {
    %c0_i32 = arith.constant 0 : i32
    %c0_i32_0 = arith.constant 0 : i32
    %c0_i32_1 = arith.constant 0 : i32
    return %c0_i32, %c0_i32_0 : i32, i32
  }
  func.func @transform_8(%arg0: i32, %arg1: i32) -> (i32, i32) {
    %c0_i32 = arith.constant 0 : i32
    %c0_i32_0 = arith.constant 0 : i32
    %c0_i32_1 = arith.constant 0 : i32
    return %c0_i32, %c0_i32_0 : i32, i32
  }
  func.func @transform_9(%arg0: i32, %arg1: i32) -> (i32, i32) {
    %c0_i32 = arith.constant 0 : i32
    %c0_i32_0 = arith.constant 0 : i32
    %c0_i32_1 = arith.constant 0 : i32
    return %c0_i32, %c0_i32_0 : i32, i32
  }
  func.func @transform_10(%arg0: i32, %arg1: i32) -> (i32, i32, i32) {
    %c0_i32 = arith.constant 0 : i32
    %c0_i32_0 = arith.constant 0 : i32
    return %arg0, %c0_i32, %arg1 : i32, i32, i32
  }
}

module attributes {stable_mosaic.version = 11 : i64} {
  func.func @saft_kernel_fused(%arg0: i32, %arg1: i32, %arg2: memref<1x8x256xf32, #tpu.memory_space<vmem>>, %arg3: memref<1x4x256xf32, #tpu.memory_space<vmem>>, %arg4: memref<128x4xbf16, #tpu.memory_space<vmem>>, %arg5: memref<128x1xf32, #tpu.memory_space<vmem>>, %arg6: memref<128x128xbf16, #tpu.memory_space<vmem>>, %arg7: memref<128x1xf32, #tpu.memory_space<vmem>>, %arg8: memref<128x128xbf16, #tpu.memory_space<vmem>>, %arg9: memref<128x1xf32, #tpu.memory_space<vmem>>, %arg10: memref<16x128xbf16, #tpu.memory_space<vmem>>, %arg11: memref<16x1xf32, #tpu.memory_space<vmem>>, %arg12: memref<1x8x256xf32, #tpu.memory_space<vmem>>) attributes {dimension_semantics = [#tpu.dimension_semantics<parallel>, #tpu.dimension_semantics<parallel>], iteration_bounds = array<i64: 2, 1>, scalar_prefetch = 0 : i64, scratch_operands = 0 : i64, tpu.core_type = #tpu.core_type<tc>, window_params = [{transform_indices = @transform_0, window_bounds = array<i64: 1, 8, 256>}, {transform_indices = @transform_1, window_bounds = array<i64: 1, 4, 256>}, {pipeline_mode = #tpu.pipeline_mode<synchronous>, transform_indices = @transform_2, window_bounds = array<i64: 128, 4>}, {pipeline_mode = #tpu.pipeline_mode<synchronous>, transform_indices = @transform_3, window_bounds = array<i64: 128, 1>}, {pipeline_mode = #tpu.pipeline_mode<synchronous>, transform_indices = @transform_4, window_bounds = array<i64: 128, 128>}, {pipeline_mode = #tpu.pipeline_mode<synchronous>, transform_indices = @transform_5, window_bounds = array<i64: 128, 1>}, {pipeline_mode = #tpu.pipeline_mode<synchronous>, transform_indices = @transform_6, window_bounds = array<i64: 128, 128>}, {pipeline_mode = #tpu.pipeline_mode<synchronous>, transform_indices = @transform_7, window_bounds = array<i64: 128, 1>}, {pipeline_mode = #tpu.pipeline_mode<synchronous>, transform_indices = @transform_8, window_bounds = array<i64: 16, 128>}, {pipeline_mode = #tpu.pipeline_mode<synchronous>, transform_indices = @transform_9, window_bounds = array<i64: 16, 1>}, {transform_indices = @transform_10, window_bounds = array<i64: 1, 8, 256>}]} {
    %c0 = arith.constant 0 : index
    %c0_0 = arith.constant 0 : index
    %c0_1 = arith.constant 0 : index
    %0 = vector.load %arg3[%c0, %c0_0, %c0_1] : memref<1x4x256xf32, #tpu.memory_space<vmem>>, vector<1x4x256xf32>
    %1 = vector.shape_cast %0 : vector<1x4x256xf32> to vector<4x256xf32>
    %2 = arith.truncf %1 : vector<4x256xf32> to vector<4x256xbf16>
    %c0_2 = arith.constant 0 : index
    %c0_3 = arith.constant 0 : index
    %3 = vector.load %arg4[%c0_2, %c0_3] : memref<128x4xbf16, #tpu.memory_space<vmem>>, vector<128x4xbf16>
    %cst = arith.constant dense<0.000000e+00> : vector<128x256xf32>
    %4 = tpu.matmul %3, %2, %cst {dimension_numbers = #tpu.dot_dimension_numbers<[1], [0], [0], [1], [0, 0, 1, 1], [], []>} : vector<128x4xbf16>, vector<4x256xbf16>, vector<128x256xf32> -> vector<128x256xf32>
    %c0_4 = arith.constant 0 : index
    %c0_5 = arith.constant 0 : index
    %5 = vector.load %arg5[%c0_4, %c0_5] : memref<128x1xf32, #tpu.memory_space<vmem>>, vector<128x1xf32>
    %6 = vector.broadcast %5 : vector<128x1xf32> to vector<128x256xf32>
    %7 = arith.addf %4, %6 : vector<128x256xf32>
    %8 = arith.truncf %7 : vector<128x256xf32> to vector<128x256xbf16>
    %cst_6 = arith.constant 0.000000e+00 : bf16
    %9 = vector.broadcast %cst_6 : bf16 to vector<128x256xbf16>
    %10 = arith.subf %9, %8 : vector<128x256xbf16>
    %11 = math.exp %10 : vector<128x256xbf16>
    %12 = arith.extf %11 : vector<128x256xbf16> to vector<128x256xf32>
    %cst_7 = arith.constant 1.000000e+00 : f32
    %13 = vector.broadcast %cst_7 : f32 to vector<128x256xf32>
    %14 = arith.addf %13, %12 : vector<128x256xf32>
    %15 = tpu.reciprocal %14 {approx = true} : vector<128x256xf32> -> vector<128x256xf32>
    %16 = arith.mulf %7, %15 : vector<128x256xf32>
    %c0_8 = arith.constant 0 : index
    %c0_9 = arith.constant 0 : index
    %17 = vector.load %arg6[%c0_8, %c0_9] : memref<128x128xbf16, #tpu.memory_space<vmem>>, vector<128x128xbf16>
    %18 = arith.truncf %16 : vector<128x256xf32> to vector<128x256xbf16>
    %cst_10 = arith.constant dense<0.000000e+00> : vector<128x256xf32>
    %19 = tpu.matmul %17, %18, %cst_10 {dimension_numbers = #tpu.dot_dimension_numbers<[1], [0], [0], [1], [0, 0, 1, 1], [], []>} : vector<128x128xbf16>, vector<128x256xbf16>, vector<128x256xf32> -> vector<128x256xf32>
    %c0_11 = arith.constant 0 : index
    %c0_12 = arith.constant 0 : index
    %20 = vector.load %arg7[%c0_11, %c0_12] : memref<128x1xf32, #tpu.memory_space<vmem>>, vector<128x1xf32>
    %21 = vector.broadcast %20 : vector<128x1xf32> to vector<128x256xf32>
    %22 = arith.addf %19, %21 : vector<128x256xf32>
    %23 = arith.truncf %22 : vector<128x256xf32> to vector<128x256xbf16>
    %cst_13 = arith.constant 0.000000e+00 : bf16
    %24 = vector.broadcast %cst_13 : bf16 to vector<128x256xbf16>
    %25 = arith.subf %24, %23 : vector<128x256xbf16>
    %26 = math.exp %25 : vector<128x256xbf16>
    %27 = arith.extf %26 : vector<128x256xbf16> to vector<128x256xf32>
    %cst_14 = arith.constant 1.000000e+00 : f32
    %28 = vector.broadcast %cst_14 : f32 to vector<128x256xf32>
    %29 = arith.addf %28, %27 : vector<128x256xf32>
    %30 = tpu.reciprocal %29 {approx = true} : vector<128x256xf32> -> vector<128x256xf32>
    %31 = arith.mulf %22, %30 : vector<128x256xf32>
    %c0_15 = arith.constant 0 : index
    %c0_16 = arith.constant 0 : index
    %32 = vector.load %arg8[%c0_15, %c0_16] : memref<128x128xbf16, #tpu.memory_space<vmem>>, vector<128x128xbf16>
    %33 = arith.truncf %31 : vector<128x256xf32> to vector<128x256xbf16>
    %cst_17 = arith.constant dense<0.000000e+00> : vector<128x256xf32>
    %34 = tpu.matmul %32, %33, %cst_17 {dimension_numbers = #tpu.dot_dimension_numbers<[1], [0], [0], [1], [0, 0, 1, 1], [], []>} : vector<128x128xbf16>, vector<128x256xbf16>, vector<128x256xf32> -> vector<128x256xf32>
    %c0_18 = arith.constant 0 : index
    %c0_19 = arith.constant 0 : index
    %35 = vector.load %arg9[%c0_18, %c0_19] : memref<128x1xf32, #tpu.memory_space<vmem>>, vector<128x1xf32>
    %36 = vector.broadcast %35 : vector<128x1xf32> to vector<128x256xf32>
    %37 = arith.addf %34, %36 : vector<128x256xf32>
    %38 = arith.truncf %37 : vector<128x256xf32> to vector<128x256xbf16>
    %cst_20 = arith.constant 0.000000e+00 : bf16
    %39 = vector.broadcast %cst_20 : bf16 to vector<128x256xbf16>
    %40 = arith.subf %39, %38 : vector<128x256xbf16>
    %41 = math.exp %40 : vector<128x256xbf16>
    %42 = arith.extf %41 : vector<128x256xbf16> to vector<128x256xf32>
    %cst_21 = arith.constant 1.000000e+00 : f32
    %43 = vector.broadcast %cst_21 : f32 to vector<128x256xf32>
    %44 = arith.addf %43, %42 : vector<128x256xf32>
    %45 = tpu.reciprocal %44 {approx = true} : vector<128x256xf32> -> vector<128x256xf32>
    %46 = arith.mulf %37, %45 : vector<128x256xf32>
    %47 = arith.truncf %46 : vector<128x256xf32> to vector<128x256xbf16>
    %c0_22 = arith.constant 0 : index
    %c0_23 = arith.constant 0 : index
    %48 = vector.load %arg10[%c0_22, %c0_23] : memref<16x128xbf16, #tpu.memory_space<vmem>>, vector<16x128xbf16>
    %cst_24 = arith.constant dense<0.000000e+00> : vector<16x256xf32>
    %49 = tpu.matmul %48, %47, %cst_24 {dimension_numbers = #tpu.dot_dimension_numbers<[1], [0], [0], [1], [0, 0, 1, 1], [], []>} : vector<16x128xbf16>, vector<128x256xbf16>, vector<16x256xf32> -> vector<16x256xf32>
    %c0_25 = arith.constant 0 : index
    %c0_26 = arith.constant 0 : index
    %50 = vector.load %arg11[%c0_25, %c0_26] : memref<16x1xf32, #tpu.memory_space<vmem>>, vector<16x1xf32>
    %51 = vector.broadcast %50 : vector<16x1xf32> to vector<16x256xf32>
    %52 = arith.addf %49, %51 : vector<16x256xf32>
    %53 = vector.extract_strided_slice %52 {offsets = [0, 0], sizes = [8, 256], strides = [1, 1]} : vector<16x256xf32> to vector<8x256xf32>
    %54 = vector.extract_strided_slice %52 {offsets = [8, 0], sizes = [8, 256], strides = [1, 1]} : vector<16x256xf32> to vector<8x256xf32>
    %c0_27 = arith.constant 0 : index
    %c0_28 = arith.constant 0 : index
    %c0_29 = arith.constant 0 : index
    %55 = vector.load %arg2[%c0_27, %c0_28, %c0_29] : memref<1x8x256xf32, #tpu.memory_space<vmem>>, vector<1x8x256xf32>
    %56 = vector.shape_cast %55 : vector<1x8x256xf32> to vector<8x256xf32>
    %cst_30 = arith.constant 1.000000e+00 : f32
    %57 = vector.broadcast %cst_30 : f32 to vector<8x256xf32>
    %58 = arith.addf %57, %53 : vector<8x256xf32>
    %59 = arith.mulf %56, %58 : vector<8x256xf32>
    %60 = arith.addf %59, %54 : vector<8x256xf32>
    %c0_31 = arith.constant 0 : index
    %c0_32 = arith.constant 0 : index
    %c0_33 = arith.constant 0 : index
    %61 = vector.load %arg12[%c0_31, %c0_32, %c0_33] : memref<1x8x256xf32, #tpu.memory_space<vmem>>, vector<1x8x256xf32>
    %62 = vector.shape_cast %61 : vector<1x8x256xf32> to vector<8x256xf32>
    %63 = vector.shape_cast %60 : vector<8x256xf32> to vector<1x8x256xf32>
    tpu.vector_store %arg12[%c0_31, %c0_32, %c0_33], %63 {strides = array<i32>} : memref<1x8x256xf32, #tpu.memory_space<vmem>>, vector<1x8x256xf32>,
    return
  }
  func.func @transform_0(%arg0: i32, %arg1: i32) -> (i32, i32, i32) {
    %c0_i32 = arith.constant 0 : i32
    %c0_i32_0 = arith.constant 0 : i32
    return %arg0, %c0_i32, %arg1 : i32, i32, i32
  }
  func.func @transform_1(%arg0: i32, %arg1: i32) -> (i32, i32, i32) {
    %c0_i32 = arith.constant 0 : i32
    %c0_i32_0 = arith.constant 0 : i32
    return %arg0, %c0_i32, %arg1 : i32, i32, i32
  }
  func.func @transform_2(%arg0: i32, %arg1: i32) -> (i32, i32) {
    %c0_i32 = arith.constant 0 : i32
    %c0_i32_0 = arith.constant 0 : i32
    %c0_i32_1 = arith.constant 0 : i32
    return %c0_i32, %c0_i32_0 : i32, i32
  }
  func.func @transform_3(%arg0: i32, %arg1: i32) -> (i32, i32) {
    %c0_i32 = arith.constant 0 : i32
    %c0_i32_0 = arith.constant 0 : i32
    %c0_i32_1 = arith.constant 0 : i32
    return %c0_i32, %c0_i32_0 : i32, i32
  }
  func.func @transform_4(%arg0: i32, %arg1: i32) -> (i32, i32) {
    %c0_i32 = arith.constant 0 : i32
    %c0_i32_0 = arith.constant 0 : i32
    %c0_i32_1 = arith.constant 0 : i32
    return %c0_i32, %c0_i32_0 : i32, i32
  }
  func.func @transform_5(%arg0: i32, %arg1: i32) -> (i32, i32) {
    %c0_i32 = arith.constant 0 : i32
    %c0_i32_0 = arith.constant 0 : i32
    %c0_i32_1 = arith.constant 0 : i32
    return %c0_i32, %c0_i32_0 : i32, i32
  }
  func.func @transform_6(%arg0: i32, %arg1: i32) -> (i32, i32) {
    %c0_i32 = arith.constant 0 : i32
    %c0_i32_0 = arith.constant 0 : i32
    %c0_i32_1 = arith.constant 0 : i32
    return %c0_i32, %c0_i32_0 : i32, i32
  }
  func.func @transform_7(%arg0: i32, %arg1: i32) -> (i32, i32) {
    %c0_i32 = arith.constant 0 : i32
    %c0_i32_0 = arith.constant 0 : i32
    %c0_i32_1 = arith.constant 0 : i32
    return %c0_i32, %c0_i32_0 : i32, i32
  }
  func.func @transform_8(%arg0: i32, %arg1: i32) -> (i32, i32) {
    %c0_i32 = arith.constant 0 : i32
    %c0_i32_0 = arith.constant 0 : i32
    %c0_i32_1 = arith.constant 0 : i32
    return %c0_i32, %c0_i32_0 : i32, i32
  }
  func.func @transform_9(%arg0: i32, %arg1: i32) -> (i32, i32) {
    %c0_i32 = arith.constant 0 : i32
    %c0_i32_0 = arith.constant 0 : i32
    %c0_i32_1 = arith.constant 0 : i32
    return %c0_i32, %c0_i32_0 : i32, i32
  }
  func.func @transform_10(%arg0: i32, %arg1: i32) -> (i32, i32, i32) {
    %c0_i32 = arith.constant 0 : i32
    %c0_i32_0 = arith.constant 0 : i32
    return %arg0, %c0_i32, %arg1 : i32, i32, i32
  }
}

</mosaic_0001>

<bundles_post_ra>
// kernel: tpu_custom_call.1
= control target key start
LH: loop header
LB: loop body
LE: loop exit
PB: predicated region body
PF: predicated region fallthrough
CT: control target
= control target key end

     0   :  { %15 = vsyncpa [#allocation3], 0  ;;  %s4381_s0 = inlined_call_operand.vmem [shape: f32[2,8,256], index: 0, kind: input, shape index: {}]   ;;  %s4382_s1 = inlined_call_operand.vmem [shape: f32[2,4,256], index: 1, kind: input, shape index: {}]   ;;  %s4383_s2 = inlined_call_operand.vmem [shape: bf16[128,4], index: 2, kind: input, shape index: {}]   ;;  %s4384_s3 = inlined_call_operand.vmem [shape: f32[128,1], index: 3, kind: input, shape index: {}]   ;;  %s4385_s4 = inlined_call_operand.vmem [shape: bf16[128,128], index: 4, kind: input, shape index: {}]   ;;  %s4386_s5 = inlined_call_operand.vmem [shape: f32[128,1], index: 5, kind: input, shape index: {}]   ;;  %s4387_s6 = inlined_call_operand.vmem [shape: bf16[128,128], index: 6, kind: input, shape index: {}]   ;;  %s4388_s7 = inlined_call_operand.vmem [shape: f32[128,1], index: 7, kind: input, shape index: {}]   ;;  %s4389_s8 = inlined_call_operand.vmem [shape: bf16[16,128], index: 8, kind: input, shape index: {}]   ;;  %s4390_s9 = inlined_call_operand.vmem [shape: f32[16,1], index: 9, kind: input, shape index: {}]   ;;  %s4391_s10 = inlined_call_operand.hbm [shape: f32[2,8,256], index: 10, kind: output, shape index: {}]  }
   0x1   :  { %17 = vsyncpa [#allocation3 + $0x1], 0  ;;  %s3200_s13 = smov 0   ;;  %s3202_s14 = smov 0  }
   0x2   :  { %s3204_s15 = smov 0   ;;  %s3206_s16 = smov 0  }
   0x3   :  { %s3208_s17 = smov 0   ;;  %s3210_s18 = smov 0  }
   0x4 LB: > { %s2460_s19 = sadd.s32 4294967295, %s3142_s18   ;;  %s2461_s20 = sadd.s32 4294967294, %s3142_s18   ;;  %s3142_s18 = sphi %s3210_s18, %s23_s18   ;;  %s3138_s17 = sphi %s3208_s17, %s4436_s17   ;;  %s3134_s16 = sphi %s3206_s16, %s4435_s16   ;;  %s3130_s15 = sphi %s3204_s15, %s4434_s15   ;;  %s3126_s14 = sphi %s3202_s14, %s4433_s14   ;;  %s3122_s13 = sphi %s3200_s13, %s4432_s13  }
   0x5   : > { %s35_s21 = sadd.s32 1, %s3138_s17  ;;  %s268_s22 = sadd.s32 1, %s3130_s15 }
   0x6   : > { %p37_p0 = scmp.ge.s32.totalorder %s35_s21, 2  ;;  %p278_p1 = scmp.ne.s32.totalorder %s3130_s15, %s3126_s14 }
   0x7   : > { %p279_p2 = scmp.eq.s32.totalorder %s2460_s19, 1  ;;  %p284_p3 = scmp.ne.s32.totalorder %s3126_s14, %s3122_s13 }
   0x8   : > { %s4438_s21 = smov (%p37_p0, %s35_s21), 0  ;;  %p285_p5 = scmp.eq.s32.totalorder %s2461_s20, 1 }
   0x9   : > { %4400 = sst [smem:[#allocation5_spill]] %s4438_s21  ;;  %p3240_p4 = por %p279_p2, %p278_p1 }
   0xa   : > { %s263_s24 = ssub.s32 %s3138_s17, %s4438_s21  ;;  %p2464_p6 = scmp.ge.s32.totalorder %s3142_s18, 1 }
   0xb   : > { %p266_p7 = scmp.eq.s32.totalorder %s263_s24, 0  ;;  %p3247_p8 = por %p285_p5, %p284_p3 }
   0xc   : > { %p353_p9 = scmp.lt.s32.totalorder %s3142_s18, 3 }
   0xd   : > { %s3253_s26 = scalar_select %p266_p7, %s3130_s15, %s268_s22  }
   0xe   : > { %p354_p10 = pnand %p2464_p6, %p353_p9 }
  0x10   : > { %357 = sbr.rel (%p354_p10) target bundleno = 1090 (0x442), region = 60 }
  0x15   : > { %v465_v0 = vld [vmem:[%s4384_s3 + $0x70] sm:$0xff]  ;;  %v463_v1 = vld [vmem:[%s4384_s3 + $0x60] sm:$0xff]  ;;  %p405_p11 = scmp.lt.s32.totalorder %s3134_s16, 1  ;;  %v3144_v3 = vmov 0   ;;  %v464_v5 = vld [vmem:[%s4384_s3 + $0x68] sm:$0xff]  ;;  %vm612_vm0 = vcmask 1041408  }
  0x16   : > { %v461_v2 = vld [vmem:[%s4384_s3 + $0x50] sm:$0xff]  ;;  %2679 = vset.pattern.permute.xlu2 %v3144_v3  ;;  %2678 = vset.pattern.permute.xlu1 %v3144_v3  ;;  %v466_v6 = vld [vmem:[%s4384_s3 + $0x78] sm:$0xff]  ;;  %v460_v10 = vld [vmem:[%s4384_s3 + $0x48] sm:$0xff]  ;;  %vm587_vm1 = vcmask 31744   ;;  %s401_s12 = sand.u32 1, %s3126_s14   ;;  %s2618_s28 = sshll.u32 %s3134_s16, 4 }
  0x17   : > { %2677 = vset.pattern.permute.xlu0 %v3144_v3  ;;  %529 = vperm.xlu1 %2678, %v463_v1   ;;  %s3266_s19 = scalar_select %p405_p11, %s3134_s16, 1  ;;  %v462_v7 = vld [vmem:[%s4384_s3 + $0x58] sm:$0xff]  ;;  %v459_v13 = vld [vmem:[%s4384_s3 + $0x40] sm:$0xff]  ;;  %v457_v14 = vld [vmem:[%s4384_s3 + $0x30] sm:$0xff] }
  0x18   : > { %539 = vperm.xlu0 %2677, %v465_v0   ;;  %519 = vperm.xlu2 %2679, %v461_v2   ;;  %v2593_v17 = vld [vmem:[%s4383_s2] sm:$0xff]  ;;  %v2598_v18 = vld [vmem:[%s4383_s2 + $0x28] sm:$0xff]  ;;  %v458_v20 = vld [vmem:[%s4384_s3 + $0x38] sm:$0xff]  ;;  %s2361_s30 = scalar_lea.hbm %s4391_s10, %s2618_s28  ;;  %s2348_s16 = scalar_lea.sflag [#allocation3], %s401_s12 }
  0x19   : > { %s2592_s20 = sshll.u32 %s3266_s19, 3  ;;  %v455_v19 = vld [vmem:[%s4384_s3 + $0x20] sm:$0xff]  ;;  %v456_v21 = vld [vmem:[%s4384_s3 + $0x28] sm:$0xff]  ;;  %v454_v22 = vld [vmem:[%s4384_s3 + $0x18] sm:$0xff]  ;;  %s2591_s11 = sshll.u32 %s3266_s19, 4 }
  0x1a   : > { %s422_s27 = scalar_lea.vmem %s4382_s1, %s2592_s20  ;;  %v453_v23 = vld [vmem:[%s4384_s3 + $0x10] sm:$0xff]  ;;  %v451_v24 = vld [vmem:[%s4384_s3] sm:$0xff]  ;;  %v2594_v25 = vld [vmem:[%s4383_s2 + $0x8] sm:$0xff]  ;;  %s412_s24 = scalar_lea.vmem %s4381_s0, %s2591_s11 }
  0x1b   : > { %v426_v4 = vld [vmem:[%s422_s27] sm:$0xff]  ;;  %v2599_v26 = vld [vmem:[%s4383_s2 + $0x30] sm:$0xff]  ;;  %v452_v28 = vld [vmem:[%s4384_s3 + $0x8] sm:$0xff]  ;;  %s2465_s27 = sshll.u32 %s401_s12, 4  ;;  %s2365_s11 = sshll.u32 %s2361_s30, 4  ;;  %s2366_s11 = int_to_ptr.hbm [resolvable:$true] %s2365_s11 }
  0x1c   : > { %428 = vst [vmem:[#allocation1] ss:$2 sm:$0xff] %v426_v4  ;;  %v1099_v27 = vld [vmem:[%s4386_s5 + $0x70] sm:$0xff]  ;;  %v1100_v29 = vld [vmem:[%s4386_s5 + $0x78] sm:$0xff]  ;;  %v1098_v30 = vld [vmem:[%s4386_s5 + $0x68] sm:$0xff]  ;;  %s403_s19 = scalar_lea.vmem [#allocation2], %s2465_s27 }
  0x1d   : > { %v1097_v31 = vld [vmem:[%s4386_s5 + $0x60] sm:$0xff]  ;;  %v1095_v32 = vld [vmem:[%s4386_s5 + $0x50] sm:$0xff]  ;;  %v2600_v34 = vld [vmem:[%s4383_s2 + $0x38] sm:$0xff]  ;;  %s2363_s20 = sshll.u32 %s403_s19, 4  ;;  %s3078_s22 = sshra.s32 %s2366_s11, 4  ;;  %s2364_s20 = int_to_ptr.vmem [resolvable:$true] %s2363_s20  ;;  %s3079_s22 = int_to_ptr.hbm [resolvable:$true] %s3078_s22 }
  0x1e   : > { %v2595_v33 = vld [vmem:[%s4383_s2 + $0x10] sm:$0xff]  ;;  %v1093_v35 = vld [vmem:[%s4386_s5 + $0x40] sm:$0xff]  ;;  %v1096_v36 = vld [vmem:[%s4386_s5 + $0x58] sm:$0xff]  ;;  %s3084_s29 = scalar_lea.hbm %s4391_s10, 32  ;;  %p3085_p1 = scmp.lt.s32.totalorder %s3079_s22, %s4391_s10 }
  0x1f   : > { %534 = vperm.xlu1 %2678, %v464_v5   ;;  %v1094_v37 = vld [vmem:[%s4386_s5 + $0x48] sm:$0xff]  ;;  %v1092_v38 = vld [vmem:[%s4386_s5 + $0x38] sm:$0xff]  ;;  %v1091_v39 = vld [vmem:[%s4386_s5 + $0x30] sm:$0xff] }
  0x20   : > { %544 = vperm.xlu0 %2677, %v466_v6   ;;  %524 = vperm.xlu2 %2679, %v462_v7   ;;  %v1089_v40 = vld [vmem:[%s4386_s5 + $0x20] sm:$0xff]  ;;  %v2596_v41 = vld [vmem:[%s4383_s2 + $0x18] sm:$0xff]  ;;  %v1087_v42 = vld [vmem:[%s4386_s5 + $0x10] sm:$0xff] }
  0x21   : > { %v1090_v43 = vld [vmem:[%s4386_s5 + $0x28] sm:$0xff]  ;;  %v1088_v44 = vld [vmem:[%s4386_s5 + $0x18] sm:$0xff]  ;;  %v1085_v46 = vld [vmem:[%s4386_s5] sm:$0xff] }
  0x22   : > { %v1086_v45 = vld [vmem:[%s4386_s5 + $0x8] sm:$0xff]  ;;  %v1709_v47 = vld [vmem:[%s4388_s7 + $0x70] sm:$0xff]  ;;  %v2597_v48 = vld [vmem:[%s4383_s2 + $0x20] sm:$0xff] }
  0x23   : > { %v429_v8 = vld.sshfl [vmem:[#allocation1] sm:$0xff pattern:$0x75316420]  ;;  %v430_v9 = vld.sshfl [vmem:[#allocation1 + $0x8] sm:$0xff pattern:$0x75316420] }
  0x24   : > { %v433_v11 = vpack.c.bf16 %v429_v8, %v429_v8  ;;  %v434_v12 = vpack.c.bf16 %v430_v9, %v430_v9  ;;  %v1707_v49 = vld [vmem:[%s4388_s7 + $0x60] sm:$0xff]  ;;  %v1710_v50 = vld [vmem:[%s4388_s7 + $0x78] sm:$0xff]  ;;  %v1708_v51 = vld [vmem:[%s4388_s7 + $0x68] sm:$0xff] }
  0x25   : > { %v1706_v52 = vld [vmem:[%s4388_s7 + $0x58] sm:$0xff]  ;;  %v1705_v53 = vld [vmem:[%s4388_s7 + $0x50] sm:$0xff]  ;;  %v1703_v54 = vld [vmem:[%s4388_s7 + $0x40] sm:$0xff] }
  0x26   : > { %v614_v15 = vsel %vm612_vm0, %v433_v11, 0  ;;  %v617_v16 = vsel %vm612_vm0, %v434_v12, 0  ;;  %v1701_v55 = vld [vmem:[%s4388_s7 + $0x30] sm:$0xff]  ;;  %v1704_v56 = vld [vmem:[%s4388_s7 + $0x48] sm:$0xff]  ;;  %v1702_v57 = vld [vmem:[%s4388_s7 + $0x38] sm:$0xff] }
  0x27   : > { %514 = vperm.xlu1 %2678, %v460_v10   ;;  %626 = vmatpush.bf16.msra.mxu0 %v614_v15  ;;  %v1700_v59 = vld [vmem:[%s4388_s7 + $0x28] sm:$0xff]  ;;  %v1699_v60 = vld [vmem:[%s4388_s7 + $0x20] sm:$0xff]  ;;  %v1697_v61 = vld [vmem:[%s4388_s7 + $0x10] sm:$0xff] }
  0x28   : > { %509 = vperm.xlu0 %2677, %v459_v13   ;;  %499 = vperm.xlu2 %2679, %v457_v14   ;;  %v1695_v0 = vld [vmem:[%s4388_s7] sm:$0xff]  ;;  %v1698_v1 = vld [vmem:[%s4388_s7 + $0x18] sm:$0xff]  ;;  %v1696_v2 = vld [vmem:[%s4388_s7 + $0x8] sm:$0xff] }
  0x29   : > { %2619 = vmatpush.bf16.msra.mxu2 %v614_v15  ;;  %675 = vmatpush.bf16.msra.mxu1 %v617_v16  ;;  %v2292_v5 = vld [vmem:[%s4390_s9 + $0x8] sm:$0xff]  ;;  %v2291_v6 = vld [vmem:[%s4390_s9] sm:$0xff] }
  0x2a   : > { %2620 = vmatpush.bf16.msra.mxu3 %v617_v16  ;;  %2502 = vmatmul.msk.bf16.vlgmr.msra.gmra.mxu0 %vm587_vm1, %v2593_v17 }
  0x2c   : > { %2507 = vmatmul.msk.bf16.vlgmr.msra.gmra.mxu2 %vm587_vm1, %v2598_v18  ;;  %2510 = vmatmul.msk.bf16.vlgmr.msra.gmra.mxu1 %vm587_vm1, %v2593_v17 }
  0x2d   : > { %2515 = vmatmul.msk.bf16.vlgmr.msra.gmra.mxu3 %vm587_vm1, %v2598_v18 }
  0x2f   : > { %489 = vperm.xlu1 %2678, %v455_v19  }
  0x30   : > { %504 = vperm.xlu0 %2677, %v458_v20   ;;  %494 = vperm.xlu2 %2679, %v456_v21  }
  0x37   : > { %484 = vperm.xlu1 %2678, %v454_v22  }
  0x38   : > { %479 = vperm.xlu0 %2677, %v453_v23   ;;  %469 = vperm.xlu2 %2679, %v451_v24  }
  0x3a   : > { %2503 = vmatmul.msk.bf16.gmra.mxu0 %vm587_vm1, %v2594_v25 }
  0x3c   : > { %2508 = vmatmul.msk.bf16.gmra.mxu2 %vm587_vm1, %v2599_v26  ;;  %2511 = vmatmul.msk.bf16.gmra.mxu1 %vm587_vm1, %v2594_v25 }
  0x3d   : > { %2516 = vmatmul.msk.bf16.gmra.mxu3 %vm587_vm1, %v2599_v26 }
  0x3f   : > { %1173 = vperm.xlu1 %2678, %v1099_v27  }
  0x40   : > { %474 = vperm.xlu0 %2677, %v452_v28   ;;  %1178 = vperm.xlu2 %2679, %v1100_v29  }
  0x47   : > { %1168 = vperm.xlu1 %2678, %v1098_v30  }
  0x48   : > { %1163 = vperm.xlu0 %2677, %v1097_v31   ;;  %1153 = vperm.xlu2 %2679, %v1095_v32  }
  0x4a   : > { %2504 = vmatmul.msk.bf16.gmra.mxu0 %vm587_vm1, %v2595_v33 }
  0x4c   : > { %2509 = vmatmul.msk.bf16.gmra.mxu2 %vm587_vm1, %v2600_v34  ;;  %2512 = vmatmul.msk.bf16.gmra.mxu1 %vm587_vm1, %v2595_v33 }
  0x4d   : > { %2517 = vmatmul.msk.bf16.gmra.mxu3 %vm587_vm1, %v2600_v34 }
  0x4f   : > { %1143 = vperm.xlu1 %2678, %v1093_v35  }
  0x50   : > { %1158 = vperm.xlu0 %2677, %v1096_v36   ;;  %1148 = vperm.xlu2 %2679, %v1094_v37  }
  0x57   : > { %1138 = vperm.xlu1 %2678, %v1092_v38  }
  0x58   : > { %1133 = vperm.xlu0 %2677, %v1091_v39   ;;  %1123 = vperm.xlu2 %2679, %v1089_v40  }
  0x5a   : > { %2505 = vmatmul.msk.bf16.gmra.mxu0 %vm587_vm1, %v2596_v41 }
  0x5c   : > { %2513 = vmatmul.msk.bf16.gmra.mxu1 %vm587_vm1, %v2596_v41 }
  0x5f   : > { %1113 = vperm.xlu1 %2678, %v1087_v42  }
  0x60   : > { %1128 = vperm.xlu0 %2677, %v1090_v43   ;;  %1118 = vperm.xlu2 %2679, %v1088_v44  }
  0x67   : > { %1108 = vperm.xlu1 %2678, %v1086_v45  }
  0x68   : > { %1103 = vperm.xlu0 %2677, %v1085_v46   ;;  %1783 = vperm.xlu2 %2679, %v1709_v47  }
  0x6a   : > { %2506 = vmatmul.msk.bf16.gmra.mxu0 %vm587_vm1, %v2597_v48 }
  0x6c   : > { %2514 = vmatmul.msk.bf16.gmra.mxu1 %vm587_vm1, %v2597_v48 }
  0x6f   : > { %1773 = vperm.xlu1 %2678, %v1707_v49  }
  0x70   : > { %1788 = vperm.xlu0 %2677, %v1710_v50   ;;  %1778 = vperm.xlu2 %2679, %v1708_v51  }
  0x72   : > { %v520_v58 = vpop.permute.xlu2 %519 }
  0x77   : > { %1768 = vperm.xlu1 %2678, %v1706_v52  }
  0x78   : > { %1763 = vperm.xlu0 %2677, %v1705_v53   ;;  %1753 = vperm.xlu2 %2679, %v1703_v54  }
  0x7a   : > { %v525_v62 = vpop.permute.xlu2 %524 }
  0x7f   : > { %1743 = vperm.xlu1 %2678, %v1701_v55  }
  0x80   : > { %1758 = vperm.xlu0 %2677, %v1704_v56   ;;  %1748 = vperm.xlu2 %2679, %v1702_v57  }
  0x82   : > { %v3451_v4 = vpop.permute.xlu2 %499 }
  0x87   : > { %1738 = vperm.xlu1 %2678, %v1700_v59  }
  0x88   : > { %1733 = vperm.xlu0 %2677, %v1699_v60   ;;  %1723 = vperm.xlu2 %2679, %v1697_v61  }
  0x89   : > { %v3459_v7 = vpop.permute.xlu1 %529 }
  0x8a   : > { %v3438_v63 = vpop.permute.xlu0 %539  ;;  %v3463_v9 = vpop.permute.xlu2 %494 }
  0x8f   : > { %1713 = vperm.xlu1 %2678, %v1695_v0  }
  0x90   : > { %1728 = vperm.xlu0 %2677, %v1698_v1   ;;  %1718 = vperm.xlu2 %2679, %v1696_v2  }
  0x91   : > { %v3467_v11 = vpop.permute.xlu1 %534 }
  0x92   : > { %v3449_v3 = vpop.permute.xlu0 %544  ;;  %v470_v12 = vpop.permute.xlu2 %469 }
  0x97   : > { %2300 = vperm.xlu1 %2678, %v2292_v5  }
  0x98   : > { %2295 = vperm.xlu0 %2677, %v2291_v6  }
  0x99   : > { %v3475_v19 = vpop.permute.xlu1 %514 }
  0x9a   : > { %v3461_v8 = vpop.permute.xlu0 %509 }
  0xa1   : > { %v3489_v46 = vpop.permute.xlu1 %489 }
  0xa2   : > { %v3465_v10 = vpop.permute.xlu0 %504 }
  0xa7   : > { %v628_v13 = vpop.f32.mrf.mxu0 }
  0xa8   : > { %v3469_v14 = vadd.f32 %v628_v13, %v470_v12 }
  0xa9   : > { %v677_v15 = vpop.f32.mrf.mxu1 }
  0xaa   : > { %v3471_v16 = vadd.f32 %v677_v15, %v470_v12  ;;  %v480_v17 = vpop.permute.xlu0 %479 }
  0xac   : > { %v717_v18 = vpack.c.bf16 %v3471_v16, %v3469_v14 }
  0xae   : > { %v733_v20 = vunpack.c.l.bf16 %v717_v18  ;;  %v734_v21 = vunpack.c.h.bf16 %v717_v18 }
  0xaf   : > { %v653_v22 = vpop.f32.mrf.mxu2  ;;  %v630_v23 = vpop.f32.mrf.mxu0 }
  0xb0   : > { %v765_v24 = vsub.f32 0.0, %v733_v20  ;;  %v766_v25 = vsub.f32 0.0, %v734_v21  ;;  %v3477_v26 = vadd.f32 %v653_v22, %v520_v58  ;;  %v702_v27 = vpop.f32.mrf.mxu3 }
  0xb1   : > { %v3479_v28 = vadd.f32 %v702_v27, %v520_v58  ;;  %v679_v29 = vpop.f32.mrf.mxu1 }
  0xb2   : > { %v797_v30 = vpack.c.bf16 %v766_v25, %v765_v24  ;;  %v475_v31 = vpop.permute.xlu0 %474 }
  0xb3   : > { %v727_v32 = vpack.c.bf16 %v3479_v28, %v3477_v26  ;;  %v3483_v33 = vadd.f32 %v630_v23, %v475_v31  ;;  %v3485_v34 = vadd.f32 %v679_v29, %v475_v31 }
  0xb4   : > { %v813_v35 = vunpack.c.l.bf16 %v797_v30  ;;  %v814_v36 = vunpack.c.h.bf16 %v797_v30  ;;  %v485_v30 = vpop.permute.xlu1 %484 }
  0xb5   : > { %4403 = vst [vmem:[#allocation6_spill] sm:$0xff] %v3483_v33  ;;  %v753_v37 = vunpack.c.l.bf16 %v727_v32  ;;  %v754_v38 = vunpack.c.h.bf16 %v727_v32  ;;  %v718_v43 = vpack.c.bf16 %v3485_v34, %v3483_v33 }
  0xb6   : > { %4404 = vst [vmem:[#allocation7_spill] sm:$0xff] %v3485_v34  ;;  %v845_v39 = vmul.f32 1.442695, %v813_v35  ;;  %v847_v40 = vmul.f32 1.442695, %v814_v36 }
  0xb7   : > { %v785_v41 = vsub.f32 0.0, %v753_v37  ;;  %v786_v42 = vsub.f32 0.0, %v754_v38  ;;  %v655_v44 = vpop.f32.mrf.mxu2  ;;  %v633_v45 = vpop.f32.mrf.mxu0  ;;  %v735_v56 = vunpack.c.l.bf16 %v718_v43  ;;  %v736_v57 = vunpack.c.h.bf16 %v718_v43 }
  0xb8   : > { %2680 = vpow2.f32 %v845_v39  ;;  %v3491_v47 = vadd.f32 %v655_v44, %v525_v62  ;;  %v704_v48 = vpop.f32.mrf.mxu3  ;;  %v3493_v49 = vadd.f32 %v633_v45, %v480_v17 }
  0xb9   : > { %2682 = vpow2.f32 %v847_v40  ;;  %v807_v50 = vpack.c.bf16 %v786_v42, %v785_v41  ;;  %v682_v51 = vpop.f32.mrf.mxu1  ;;  %v3495_v52 = vadd.f32 %v704_v48, %v525_v62  ;;  %v767_v12 = vsub.f32 0.0, %v735_v56 }
  0xba   : > { %v3497_v53 = vadd.f32 %v682_v51, %v480_v17  ;;  %v768_v18 = vsub.f32 0.0, %v736_v57 }
  0xbb   : > { %v833_v54 = vunpack.c.l.bf16 %v807_v50  ;;  %v834_v55 = vunpack.c.h.bf16 %v807_v50  ;;  %v728_v58 = vpack.c.bf16 %v3495_v52, %v3491_v47 }
  0xbc   : > { %v719_v59 = vpack.c.bf16 %v3497_v53, %v3493_v49  ;;  %v798_v40 = vpack.c.bf16 %v768_v18, %v767_v12 }
  0xbd   : > { %v885_v60 = vmul.f32 1.442695, %v833_v54  ;;  %v887_v61 = vmul.f32 1.442695, %v834_v55  ;;  %v755_v1 = vunpack.c.l.bf16 %v728_v58  ;;  %v756_v2 = vunpack.c.h.bf16 %v728_v58 }
  0xbe   : > { %v2681_v0 = vpop.eup %2680  ;;  %v737_v5 = vunpack.c.l.bf16 %v719_v59  ;;  %v738_v62 = vunpack.c.h.bf16 %v719_v59 }
  0xbf   : > { %v2683_v6 = vpop.eup %2682  ;;  %v658_v13 = vpop.f32.mrf.mxu2  ;;  %v787_v20 = vsub.f32 0.0, %v755_v1  ;;  %v788_v21 = vsub.f32 0.0, %v756_v2  ;;  %2684 = vpow2.f32 %v885_v60  ;;  %v816_v1 = vunpack.c.h.bf16 %v798_v40 }
  0xc0   : > { %v635_v15 = vpop.f32.mrf.mxu0  ;;  %v3503_v17 = vpack.c.bf16 %v2683_v6, %v2681_v0  ;;  %v707_v22 = vpop.f32.mrf.mxu3  ;;  %v769_v23 = vsub.f32 0.0, %v737_v5  ;;  %v770_v24 = vsub.f32 0.0, %v738_v62  ;;  %v3506_v25 = vadd.f32 %v658_v13, %v3459_v7 }
  0xc1   : > { %v684_v27 = vpop.f32.mrf.mxu1  ;;  %2686 = vpow2.f32 %v887_v61  ;;  %v808_v31 = vpack.c.bf16 %v788_v21, %v787_v20  ;;  %v3510_v32 = vadd.f32 %v707_v22, %v3459_v7  ;;  %v3512_v36 = vadd.f32 %v635_v15, %v485_v30 }
  0xc2   : > { %v926_v29 = vunpack.c.h.bf16 %v3503_v17  ;;  %v799_v35 = vpack.c.bf16 %v770_v24, %v769_v23  ;;  %v3514_v37 = vadd.f32 %v684_v27, %v485_v30  ;;  %v815_v0 = vunpack.c.l.bf16 %v798_v40 }
  0xc3   : > { %4405 = vst [vmem:[#allocation8_spill] sm:$0xff] %v3512_v36  ;;  %v729_v39 = vpack.c.bf16 %v3510_v32, %v3506_v25  ;;  %v835_v44 = vunpack.c.l.bf16 %v808_v31  ;;  %v836_v45 = vunpack.c.h.bf16 %v808_v31 }
  0xc4   : > { %4406 = vst [vmem:[#allocation9_spill] sm:$0xff] %v3514_v37  ;;  %v958_v38 = vadd.f32 1.0, %v926_v29  ;;  %v817_v41 = vunpack.c.l.bf16 %v799_v35  ;;  %v818_v42 = vunpack.c.h.bf16 %v799_v35  ;;  %v720_v43 = vpack.c.bf16 %v3514_v37, %v3512_v36 }
  0xc5   : > { %v757_v7 = vunpack.c.l.bf16 %v729_v39  ;;  %v2685_v48 = vpop.eup %2684  ;;  %v758_v54 = vunpack.c.h.bf16 %v729_v39  ;;  %v889_v6 = vmul.f32 1.442695, %v835_v44  ;;  %v891_v12 = vmul.f32 1.442695, %v836_v45 }
  0xc6   : > { %2688 = vrcp.f32 %v958_v38  ;;  %v853_v50 = vmul.f32 1.442695, %v817_v41  ;;  %v855_v51 = vmul.f32 1.442695, %v818_v42  ;;  %v739_v59 = vunpack.c.l.bf16 %v720_v43 }
  0xc7   : > { %v660_v55 = vpop.f32.mrf.mxu2  ;;  %v2687_v57 = vpop.eup %2686  ;;  %v789_v58 = vsub.f32 0.0, %v757_v7  ;;  %v740_v60 = vunpack.c.h.bf16 %v720_v43  ;;  %v790_v2 = vsub.f32 0.0, %v758_v54  ;;  %v849_v30 = vmul.f32 1.442695, %v815_v0 }
  0xc8   : > { %v638_v56 = vpop.f32.mrf.mxu0  ;;  %v709_v61 = vpop.f32.mrf.mxu3  ;;  %v3521_v5 = vadd.f32 %v660_v55, %v3467_v11  ;;  %2690 = vpow2.f32 %v853_v50  ;;  %v3526_v15 = vpack.c.bf16 %v2687_v57, %v2685_v48  ;;  %v771_v22 = vsub.f32 0.0, %v739_v59 }
  0xc9   : > { %v687_v62 = vpop.f32.mrf.mxu1  ;;  %v3524_v13 = vadd.f32 %v709_v61, %v3467_v11  ;;  %2692 = vpow2.f32 %v855_v51  ;;  %v809_v18 = vpack.c.bf16 %v790_v2, %v789_v58  ;;  %v3529_v20 = vadd.f32 %v638_v56, %v3489_v46 }
  0xca   : > { %v772_v23 = vsub.f32 0.0, %v740_v60  ;;  %v3534_v27 = vadd.f32 %v687_v62, %v3489_v46  ;;  %v851_v39 = vmul.f32 1.442695, %v816_v1  ;;  %2694 = vpow2.f32 %v889_v6 }
  0xcb   : > { %4407 = vst [vmem:[#allocation10_spill] sm:$0xff] %v3529_v20  ;;  %v730_v24 = vpack.c.bf16 %v3524_v13, %v3521_v5  ;;  %v837_v11 = vunpack.c.l.bf16 %v809_v18  ;;  %v838_v31 = vunpack.c.h.bf16 %v809_v18  ;;  %v946_v44 = vunpack.c.h.bf16 %v3526_v15 }
  0xcc   : > { %v2689_v21 = vpop.eup %2688  ;;  %4408 = vst [vmem:[#allocation11_spill] sm:$0xff] %v3534_v27  ;;  %v721_v40 = vpack.c.bf16 %v3534_v27, %v3529_v20  ;;  %2696 = vpow2.f32 %v891_v12  ;;  %v800_v46 = vpack.c.bf16 %v772_v23, %v771_v22 }
  0xcd   : > { %v3537_v29 = vmul.f32 %v2689_v21, %v3471_v16  ;;  %v759_v35 = vunpack.c.l.bf16 %v730_v24  ;;  %v760_v38 = vunpack.c.h.bf16 %v730_v24  ;;  %v893_v7 = vmul.f32 1.442695, %v837_v11 }
  0xce   : > { %v2691_v43 = vpop.eup %2690  ;;  %2698 = vpow2.f32 %v849_v30  ;;  %v895_v55 = vmul.f32 1.442695, %v838_v31  ;;  %v741_v57 = vunpack.c.l.bf16 %v721_v40  ;;  %v742_v58 = vunpack.c.h.bf16 %v721_v40 }
  0xcf   : > { %4409 = vst [vmem:[#allocation12_spill] sm:$0xff] %v3537_v29  ;;  %v663_v41 = vpop.f32.mrf.mxu2  ;;  %v791_v45 = vsub.f32 0.0, %v759_v35  ;;  %v2693_v16 = vpop.eup %2692  ;;  %v792_v48 = vsub.f32 0.0, %v760_v38  ;;  %2700 = vpow2.f32 %v851_v39  ;;  %v978_v59 = vadd.f32 1.0, %v946_v44 }
  0xd0   : > { %v640_v42 = vpop.f32.mrf.mxu0  ;;  %v712_v50 = vpop.f32.mrf.mxu3  ;;  %v3542_v54 = vpack.c.bf16 %v2693_v16, %v2691_v43  ;;  %v819_v61 = vunpack.c.l.bf16 %v800_v46  ;;  %v3546_v0 = vadd.f32 %v663_v41, %v3438_v63  ;;  %2702 = vpow2.f32 %v893_v7 }
  0xd1   : > { %v689_v51 = vpop.f32.mrf.mxu1  ;;  %v810_v56 = vpack.c.bf16 %v792_v48, %v791_v45  ;;  %v2695_v1 = vpop.eup %2694  ;;  %v3549_v6 = vadd.f32 %v712_v50, %v3438_v63  ;;  %2704 = vpow2.f32 %v895_v55  ;;  %v3552_v21 = vadd.f32 %v640_v42, %v3463_v9 }
  0xd2   : > { %v930_v60 = vunpack.c.h.bf16 %v3542_v54  ;;  %v2697_v12 = vpop.eup %2696  ;;  %v3555_v22 = vadd.f32 %v689_v51, %v3463_v9  ;;  %v773_v11 = vsub.f32 0.0, %v741_v57  ;;  %v774_v30 = vsub.f32 0.0, %v742_v58 }
  0xd3   : > { %v839_v2 = vunpack.c.l.bf16 %v810_v56  ;;  %v840_v62 = vunpack.c.h.bf16 %v810_v56  ;;  %4410 = vst [vmem:[#allocation13_spill] sm:$0xff] %v3552_v21  ;;  %v820_v38 = vunpack.c.h.bf16 %v800_v46  ;;  %v731_v63 = vpack.c.bf16 %v3549_v6, %v3546_v0 }
  0xd4   : > { %v962_v18 = vadd.f32 1.0, %v930_v60  ;;  %v3557_v35 = vpop.eup %2698  ;;  %v722_v39 = vpack.c.bf16 %v3555_v22, %v3552_v21  ;;  %v3565_v41 = vpack.c.bf16 %v2697_v12, %v2695_v1  ;;  %v857_v9 = vmul.f32 1.442695, %v819_v61 }
  0xd5   : > { %v897_v23 = vmul.f32 1.442695, %v839_v2  ;;  %v899_v24 = vmul.f32 1.442695, %v840_v62  ;;  %v3563_v40 = vpop.eup %2700  ;;  %v761_v44 = vunpack.c.l.bf16 %v731_v63  ;;  %v762_v45 = vunpack.c.h.bf16 %v731_v63 }
  0xd6   : > { %2706 = vrcp.f32 %v962_v18  ;;  %v743_v16 = vunpack.c.l.bf16 %v722_v39  ;;  %v2703_v7 = vpop.eup %2702  ;;  %v801_v46 = vpack.c.bf16 %v774_v30, %v773_v11  ;;  %v744_v48 = vunpack.c.h.bf16 %v722_v39 }
  0xd7   : > { %2708 = vpow2.f32 %v897_v23  ;;  %v665_v42 = vpop.f32.mrf.mxu2  ;;  %v2705_v51 = vpop.eup %2704  ;;  %v859_v55 = vmul.f32 1.442695, %v820_v38  ;;  %v793_v56 = vsub.f32 0.0, %v761_v44  ;;  %v794_v57 = vsub.f32 0.0, %v762_v45 }
  0xd8   : > { %v643_v31 = vpop.f32.mrf.mxu0  ;;  %2710 = vpow2.f32 %v899_v24  ;;  %v714_v50 = vpop.f32.mrf.mxu3  ;;  %v3568_v58 = vadd.f32 %v665_v42, %v3449_v3  ;;  %v948_v60 = vunpack.c.h.bf16 %v3565_v41  ;;  %v775_v61 = vsub.f32 0.0, %v743_v16 }
  0xd9   : > { %v692_v43 = vpop.f32.mrf.mxu1  ;;  %2712 = vrcp.f32 %v978_v59  ;;  %v776_v1 = vsub.f32 0.0, %v744_v48  ;;  %v811_v62 = vpack.c.bf16 %v794_v57, %v793_v56  ;;  %v3572_v12 = vadd.f32 %v714_v50, %v3449_v3 }
  0xda   : > { %2714 = vpow2.f32 %v857_v9  ;;  %v3575_v59 = vadd.f32 %v643_v31, %v3451_v4  ;;  %v3578_v18 = vadd.f32 %v692_v43, %v3451_v4  ;;  %v3583_v11 = vpack.c.bf16 %v2705_v51, %v2703_v7 }
  0xdb   : > { %v821_v30 = vunpack.c.l.bf16 %v801_v46  ;;  %v822_v38 = vunpack.c.h.bf16 %v801_v46  ;;  %v841_v9 = vunpack.c.l.bf16 %v811_v62  ;;  %v842_v42 = vunpack.c.h.bf16 %v811_v62 }
  0xdc   : > { %v2707_v2 = vpop.eup %2706  ;;  %v732_v3 = vpack.c.bf16 %v3572_v12, %v3568_v58  ;;  %v723_v31 = vpack.c.bf16 %v3578_v18, %v3575_v59  ;;  %v980_v43 = vadd.f32 1.0, %v948_v60  ;;  %2716 = vpow2.f32 %v859_v55 }
  0xdd   : > { %v2709_v23 = vpop.eup %2708  ;;  %v3581_v24 = vmul.f32 %v2707_v2, %v3497_v53  ;;  %v802_v53 = vpack.c.bf16 %v776_v1, %v775_v61  ;;  %v901_v45 = vmul.f32 1.442695, %v841_v9  ;;  %v903_v16 = vmul.f32 1.442695, %v842_v42 }
  0xde   : > { %v2711_v39 = vpop.eup %2710  ;;  %v763_v7 = vunpack.c.l.bf16 %v732_v3  ;;  %v764_v46 = vunpack.c.h.bf16 %v732_v3  ;;  %v950_v50 = vunpack.c.h.bf16 %v3583_v11  ;;  %v861_v56 = vmul.f32 1.442695, %v821_v30 }
  0xdf   : > { %4411 = vst [vmem:[#allocation14_spill] sm:$0xff] %v3581_v24  ;;  %v3589_v4 = vpop.eup %2712  ;;  %v3594_v51 = vpack.c.bf16 %v2711_v39, %v2709_v23  ;;  %v863_v57 = vmul.f32 1.442695, %v822_v38  ;;  %2718 = vpow2.f32 %v901_v45  ;;  %v745_v29 = vunpack.c.l.bf16 %v723_v31 }
  0xe0   : > { %v645_v63 = vpop.f32.mrf.mxu0  ;;  %v3591_v48 = vpop.eup %2714  ;;  %v795_v2 = vsub.f32 0.0, %v763_v7  ;;  %v796_v62 = vsub.f32 0.0, %v764_v46  ;;  %2720 = vpow2.f32 %v903_v16  ;;  %v746_v55 = vunpack.c.h.bf16 %v723_v31 }
  0xe1   : > { %v694_v44 = vpop.f32.mrf.mxu1  ;;  %2722 = vrcp.f32 %v980_v43  ;;  %v823_v60 = vunpack.c.l.bf16 %v802_v53  ;;  %v777_v1 = vsub.f32 0.0, %v745_v29  ;;  %v982_v42 = vadd.f32 1.0, %v950_v50 }
  0xe2   : > { %v812_v61 = vpack.c.bf16 %v796_v62, %v795_v2  ;;  %v3596_v9 = vpop.eup %2716  ;;  %2724 = vpow2.f32 %v861_v56  ;;  %v778_v3 = vsub.f32 0.0, %v746_v55  ;;  %v3599_v23 = vadd.f32 %v645_v63, %v3465_v10 }
  0xe3   : > { %v952_v38 = vunpack.c.h.bf16 %v3594_v51  ;;  %2726 = vpow2.f32 %v863_v57  ;;  %v824_v16 = vunpack.c.h.bf16 %v802_v53  ;;  %v3603_v43 = vadd.f32 %v694_v44, %v3465_v10 }
  0xe4   : > { %v843_v39 = vunpack.c.l.bf16 %v812_v61  ;;  %v844_v45 = vunpack.c.h.bf16 %v812_v61  ;;  %v803_v31 = vpack.c.bf16 %v778_v3, %v777_v1  ;;  %v865_v50 = vmul.f32 1.442695, %v823_v60 }
  0xe5   : > { %v2719_v46 = vpop.eup %2718  ;;  %2728 = vrcp.f32 %v982_v42  ;;  %v724_v53 = vpack.c.bf16 %v3603_v43, %v3599_v23  ;;  %v984_v44 = vadd.f32 1.0, %v952_v38 }
  0xe6   : > { %v905_v56 = vmul.f32 1.442695, %v843_v39  ;;  %v907_v63 = vmul.f32 1.442695, %v844_v45  ;;  %v2721_v62 = vpop.eup %2720  ;;  %v825_v57 = vunpack.c.l.bf16 %v803_v31  ;;  %v826_v55 = vunpack.c.h.bf16 %v803_v31 }
  0xe7   : > { %v3613_v10 = vpop.eup %2722  ;;  %v3615_v61 = vpack.c.bf16 %v2721_v62, %v2719_v46  ;;  %v747_v3 = vunpack.c.l.bf16 %v724_v53  ;;  %v748_v39 = vunpack.c.h.bf16 %v724_v53 }
  0xe8   : > { %v648_v30 = vpop.f32.mrf.mxu0  ;;  %2730 = vpow2.f32 %v905_v56  ;;  %v3619_v1 = vpop.eup %2724  ;;  %v871_v38 = vmul.f32 1.442695, %v826_v55 }
  0xe9   : > { %v3606_v29 = vadd.f32 %v648_v30, %v3461_v8  ;;  %v697_v7 = vpop.f32.mrf.mxu1  ;;  %2732 = vpow2.f32 %v907_v63  ;;  %v3621_v42 = vpop.eup %2726  ;;  %v869_v30 = vmul.f32 1.442695, %v825_v57  ;;  %v954_v31 = vunpack.c.h.bf16 %v3615_v61 }
  0xea   : > { %v3609_v2 = vadd.f32 %v697_v7, %v3461_v8  ;;  %v867_v8 = vmul.f32 1.442695, %v824_v16  ;;  %2734 = vpow2.f32 %v865_v50  ;;  %v779_v7 = vsub.f32 0.0, %v747_v3 }
  0xeb   : > { %2736 = vrcp.f32 %v984_v44  ;;  %v780_v62 = vsub.f32 0.0, %v748_v39  ;;  %v3624_v33 = vpop.eup %2728  ;;  %v949_v3 = vunpack.c.l.bf16 %v3583_v11 }
  0xec   : > { %v725_v60 = vpack.c.bf16 %v3609_v2, %v3606_v29  ;;  %2738 = vpow2.f32 %v867_v8 }
  0xed   : > { %2740 = vpow2.f32 %v869_v30  ;;  %v804_v53 = vpack.c.bf16 %v780_v62, %v779_v7  ;;  %v953_v7 = vunpack.c.l.bf16 %v3615_v61  ;;  %v981_v21 = vadd.f32 1.0, %v949_v3 }
  0xee   : > { %v749_v45 = vunpack.c.l.bf16 %v725_v60  ;;  %v750_v46 = vunpack.c.h.bf16 %v725_v60  ;;  %v2731_v57 = vpop.eup %2730  ;;  %v986_v60 = vadd.f32 1.0, %v954_v31  ;;  %2742 = vpow2.f32 %v871_v38 }
  0xef   : > { %v2733_v55 = vpop.eup %2732 }
  0xf0   : > { %v650_v56 = vpop.f32.mrf.mxu0  ;;  %v781_v16 = vsub.f32 0.0, %v749_v45  ;;  %v782_v63 = vsub.f32 0.0, %v750_v46  ;;  %v3633_v39 = vpop.eup %2734  ;;  %v924_v8 = vpack.c.bf16 %v2733_v55, %v2731_v57  ;;  %v827_v45 = vunpack.c.l.bf16 %v804_v53 }
  0xf1   : > { %v3627_v34 = vadd.f32 %v650_v56, %v3475_v19  ;;  %v699_v50 = vpop.f32.mrf.mxu1  ;;  %v828_v46 = vunpack.c.h.bf16 %v804_v53  ;;  %v2737_v62 = vpop.eup %2736  ;;  %2744 = vrcp.f32 %v986_v60 }
  0xf2   : > { %v3630_v24 = vadd.f32 %v699_v50, %v3475_v19  ;;  %v805_v44 = vpack.c.bf16 %v782_v63, %v781_v16  ;;  %v951_v19 = vunpack.c.l.bf16 %v3594_v51  ;;  %v956_v31 = vunpack.c.h.bf16 %v924_v8  ;;  %v2739_v11 = vpop.eup %2738 }
  0xf3   : > { %v873_v38 = vmul.f32 1.442695, %v827_v45  ;;  %v875_v16 = vmul.f32 1.442695, %v828_v46  ;;  %v2741_v53 = vpop.eup %2740  ;;  %v955_v27 = vunpack.c.l.bf16 %v924_v8  ;;  %v3641_v51 = vpack.c.bf16 %v3596_v9, %v3591_v48 }
  0xf4   : > { %v726_v56 = vpack.c.bf16 %v3630_v24, %v3627_v34  ;;  %v829_v36 = vunpack.c.l.bf16 %v805_v44  ;;  %v830_v30 = vunpack.c.h.bf16 %v805_v44  ;;  %v988_v37 = vadd.f32 1.0, %v956_v31  ;;  %v2743_v44 = vpop.eup %2742 }
  0xf5   : > { %2746 = vpow2.f32 %v873_v38  ;;  %v985_v45 = vadd.f32 1.0, %v953_v7  ;;  %v983_v46 = vadd.f32 1.0, %v951_v19  ;;  %v3645_v31 = vpack.c.bf16 %v2743_v44, %v2741_v53 }
  0xf6   : > { %v751_v63 = vunpack.c.l.bf16 %v726_v56  ;;  %v877_v50 = vmul.f32 1.442695, %v829_v36  ;;  %v879_v57 = vmul.f32 1.442695, %v830_v30  ;;  %v752_v55 = vunpack.c.h.bf16 %v726_v56 }
  0xf7   : > { %2748 = vpow2.f32 %v875_v16  ;;  %v987_v36 = vadd.f32 1.0, %v955_v27  ;;  %v945_v56 = vunpack.c.l.bf16 %v3526_v15  ;;  %v947_v30 = vunpack.c.l.bf16 %v3565_v41  ;;  %v2745_v8 = vpop.eup %2744 }
  0xf8   : > { %v783_v20 = vsub.f32 0.0, %v751_v63  ;;  %v784_v61 = vsub.f32 0.0, %v752_v55  ;;  %2750 = vrcp.f32 %v988_v37  ;;  %v932_v48 = vunpack.c.h.bf16 %v3641_v51 }
  0xf9   : > { %2752 = vpow2.f32 %v877_v50  ;;  %v1050_v41 = vmul.f32 %v2745_v8, %v3549_v6  ;;  %v979_v19 = vadd.f32 1.0, %v947_v30  ;;  %v938_v50 = vunpack.c.h.bf16 %v3645_v31 }
  0xfa   : > { %v806_v60 = vpack.c.bf16 %v784_v61, %v783_v20  ;;  %2754 = vpow2.f32 %v879_v57  ;;  %v3650_v20 = vmul.f32 %v3589_v4, %v3479_v28  ;;  %v977_v57 = vadd.f32 1.0, %v945_v56 }
  0xfb   : > { %2756 = vrcp.f32 %v981_v21  ;;  %v2747_v16 = vpop.eup %2746  ;;  %v964_v53 = vadd.f32 1.0, %v932_v48  ;;  %v3657_v28 = vpack.c.bf16 %v3621_v42, %v3619_v1  ;;  %v1048_v6 = vmul.f32 %v2737_v62, %v3524_v13 }
  0xfc   : > { %v831_v38 = vunpack.c.l.bf16 %v806_v60  ;;  %v832_v3 = vunpack.c.h.bf16 %v806_v60  ;;  %2758 = vrcp.f32 %v985_v45  ;;  %v929_v56 = vunpack.c.l.bf16 %v3542_v54 }
  0xfd   : > { %v2749_v37 = vpop.eup %2748  ;;  %2760 = vrcp.f32 %v987_v36  ;;  %v1046_v1 = vmul.f32 %v3624_v33, %v3510_v32  ;;  %v970_v42 = vadd.f32 1.0, %v938_v50 }
  0xfe   : > { %v881_v27 = vmul.f32 1.442695, %v831_v38  ;;  %v883_v9 = vmul.f32 1.442695, %v832_v3  ;;  %v2751_v15 = vpop.eup %2750  ;;  %v916_v7 = vpack.c.bf16 %v2749_v37, %v2747_v16  ;;  %2762 = vrcp.f32 %v983_v46 }
  0xff   : > { %v2753_v63 = vpop.eup %2752  ;;  %v1052_v21 = vmul.f32 %v2751_v15, %v3572_v12  ;;  %v1044_v12 = vmul.f32 %v3613_v10, %v3495_v52  ;;  %v914_v46 = vpack.c.bf16 %v2739_v11, %v3633_v39  ;;  %v934_v39 = vunpack.c.h.bf16 %v3657_v28 }
 0x100   : > { %2764 = vpow2.f32 %v881_v27  ;;  %v2755_v55 = vpop.eup %2754  ;;  %v940_v4 = vunpack.c.h.bf16 %v916_v7  ;;  %v939_v60 = vunpack.c.l.bf16 %v916_v7  ;;  %v1082_v54 = vpack.c.bf16 %v1048_v6, %v1046_v1 }
 0x101   : > { %2766 = vpow2.f32 %v883_v9  ;;  %v2757_v44 = vpop.eup %2756  ;;  %v917_v61 = vpack.c.bf16 %v2755_v55, %v2753_v63  ;;  %v1084_v45 = vpack.c.bf16 %v1052_v21, %v1050_v41  ;;  %v936_v48 = vunpack.c.h.bf16 %v914_v46 }
 0x102   : > { %v2759_v36 = vpop.eup %2758  ;;  %2768 = vrcp.f32 %v979_v19  ;;  %v972_v62 = vadd.f32 1.0, %v940_v4  ;;  %v971_v11 = vadd.f32 1.0, %v939_v60  ;;  %v961_v37 = vadd.f32 1.0, %v929_v56 }
 0x103   : > { %v2761_v30 = vpop.eup %2760  ;;  %v942_v8 = vunpack.c.h.bf16 %v917_v61  ;;  %1278 = vmatpush.bf16.msrb.mxu3 %v1084_v45  ;;  %2770 = vrcp.f32 %v977_v57  ;;  %v1049_v38 = vmul.f32 %v2759_v36, %v3546_v0  ;;  %v941_v52 = vunpack.c.l.bf16 %v917_v61 }
 0x104   : > { %v2763_v13 = vpop.eup %2762  ;;  %v1051_v3 = vmul.f32 %v2761_v30, %v3568_v58  ;;  %2772 = vrcp.f32 %v964_v53  ;;  %v925_v0 = vunpack.c.l.bf16 %v3503_v17  ;;  %v1045_v15 = vmul.f32 %v2757_v44, %v3506_v25 }
 0x105   : > { %v1047_v32 = vmul.f32 %v2763_v13, %v3521_v5  ;;  %2774 = vrcp.f32 %v970_v42  ;;  %v974_v27 = vadd.f32 1.0, %v942_v8  ;;  %v973_v41 = vadd.f32 1.0, %v941_v52 }
 0x106   : > { %v2765_v10 = vpop.eup %2764  ;;  %v1083_v33 = vpack.c.bf16 %v1051_v3, %v1049_v38  ;;  %2776 = vrcp.f32 %v972_v62  ;;  %v937_v7 = vunpack.c.l.bf16 %v3645_v31  ;;  %v1080_v21 = vpack.c.bf16 %v1044_v12, %v3650_v20 }
 0x107   : > { %v2767_v16 = vpop.eup %2766  ;;  %1279 = vmatpush.bf16.msrb.mxu3 %v1082_v54  ;;  %2778 = vrcp.f32 %v971_v11  ;;  %v1081_v50 = vpack.c.bf16 %v1047_v32, %v1045_v15  ;;  %v935_v55 = vunpack.c.l.bf16 %v914_v46  ;;  %v957_v4 = vadd.f32 1.0, %v925_v0 }
 0x108   : > { %v918_v9 = vpack.c.bf16 %v2767_v16, %v2765_v10  ;;  %v2769_v58 = vpop.eup %2768  ;;  %1229 = vmatpush.bf16.msrb.mxu2 %v1083_v33  ;;  %2780 = vrcp.f32 %v961_v37  ;;  %v969_v44 = vadd.f32 1.0, %v937_v7  ;;  %v933_v20 = vunpack.c.l.bf16 %v3657_v28 }
 0x109   : > { %v2771_v19 = vpop.eup %2770  ;;  %v1043_v57 = vmul.f32 %v2769_v58, %v3491_v47  ;;  %2782 = vrcp.f32 %v974_v27  ;;  %v968_v61 = vadd.f32 1.0, %v936_v48  ;;  %v910_v47 = vpack.c.bf16 %v3563_v40, %v3557_v35 }
 0x10a   : > { %v944_v63 = vunpack.c.h.bf16 %v918_v9  ;;  %v943_v5 = vunpack.c.l.bf16 %v918_v9  ;;  %v3675_v17 = vpop.eup %2772  ;;  %v1041_v31 = vmul.f32 %v2771_v19, %v3477_v26  ;;  %2784 = vrcp.f32 %v973_v41  ;;  %v4413_v41 = vld [vmem:[#allocation11_spill] sm:$0xff]  ;;  %v4415_v19 = vld [vmem:[#allocation9_spill] sm:$0xff] }
 0x10b   : > { %1280 = vmatpush.bf16.msrb.mxu3 %v1080_v21  ;;  %v2775_v6 = vpop.eup %2774  ;;  %v967_v36 = vadd.f32 1.0, %v935_v55  ;;  %v931_v12 = vunpack.c.l.bf16 %v3641_v51  ;;  %v966_v56 = vadd.f32 1.0, %v934_v39  ;;  %v965_v30 = vadd.f32 1.0, %v933_v20  ;;  %v4417_v55 = vld [vmem:[#allocation14_spill] sm:$0xff] }
 0x10c   : > { %v976_v53 = vadd.f32 1.0, %v944_v63  ;;  %v975_v25 = vadd.f32 1.0, %v943_v5  ;;  %1230 = vmatpush.bf16.msrb.mxu2 %v1081_v50  ;;  %v2777_v45 = vpop.eup %2776  ;;  %v1079_v60 = vpack.c.bf16 %v1043_v57, %v1041_v31  ;;  %v927_v42 = vunpack.c.l.bf16 %v910_v47  ;;  %v4416_v50 = vld [vmem:[#allocation8_spill] sm:$0xff] }
 0x10d   : > { %v2779_v46 = vpop.eup %2778  ;;  %v928_v8 = vunpack.c.h.bf16 %v910_v47  ;;  %v963_v40 = vadd.f32 1.0, %v931_v12  ;;  %v1036_v11 = vmul.f32 %v2777_v45, %v3603_v43  ;;  %v1034_v37 = vmul.f32 %v2775_v6, %v3578_v18  ;;  %v4414_v18 = vld [vmem:[#allocation10_spill] sm:$0xff]  ;;  %v4420_v6 = vld [vmem:[#allocation12_spill] sm:$0xff]  ;;  %v2601_v47 = vld [vmem:[%s4385_s4] sm:$0xff] }
 0x10e   : > { %2786 = vrcp.f32 %v976_v53  ;;  %v2781_v26 = vpop.eup %2780  ;;  %v959_v39 = vadd.f32 1.0, %v927_v42  ;;  %v1028_v63 = vmul.f32 %v3675_v17, %v4415_v19  ;;  %v2602_v45 = vld [vmem:[%s4385_s4 + $0x8] sm:$0xff]  ;;  %v2605_v12 = vld [vmem:[%s4385_s4 + $0x20] sm:$0xff]  ;;  %v2608_v42 = vld [vmem:[%s4385_s4 + $0x38] sm:$0xff] }
 0x10f   : > { %2788 = vrcp.f32 %v975_v25  ;;  %v2783_v28 = vpop.eup %2782  ;;  %v1025_v1 = vmul.f32 %v2781_v26, %v3493_v49  ;;  %v960_v49 = vadd.f32 1.0, %v928_v8  ;;  %v1076_v9 = vpack.c.bf16 %v1036_v11, %v1034_v37  ;;  %v4418_v25 = vld [vmem:[#allocation7_spill] sm:$0xff]  ;;  %v3723_v26 = vpop.permute.xlu0 %1163 }
 0x110   : > { %2790 = vrcp.f32 %v957_v4  ;;  %1231 = vmatpush.bf16.msrb.mxu2 %v1079_v60  ;;  %v2785_v35 = vpop.eup %2784  ;;  %v1038_v51 = vmul.f32 %v2783_v28, %v3609_v2  ;;  %v1035_v2 = vmul.f32 %v2779_v46, %v3599_v23  ;;  %v1072_v53 = vpack.c.bf16 %v1028_v63, %v4417_v55  ;;  %v2603_v60 = vld [vmem:[%s4385_s4 + $0x10] sm:$0xff]  ;;  %v2606_v46 = vld [vmem:[%s4385_s4 + $0x28] sm:$0xff] }
 0x111   : > { %2792 = vrcp.f32 %v969_v44  ;;  %v1037_v52 = vmul.f32 %v2785_v35, %v3606_v29  ;;  %v4419_v44 = vld [vmem:[#allocation6_spill] sm:$0xff] }
 0x112   : > { %2794 = vrcp.f32 %v968_v61 }
 0x113   : > { %2796 = vrcp.f32 %v967_v36  ;;  %v2604_v36 = vld [vmem:[%s4385_s4 + $0x18] sm:$0xff] }
 0x114   : > { %v2787_v13 = vpop.eup %2786  ;;  %2798 = vrcp.f32 %v966_v56  ;;  %v3721_v56 = vpop.permute.xlu1 %1173 }
 0x115   : > { %v2789_v62 = vpop.eup %2788  ;;  %v1040_v38 = vmul.f32 %v2787_v13, %v3630_v24  ;;  %2800 = vrcp.f32 %v965_v30  ;;  %v2607_v30 = vld [vmem:[%s4385_s4 + $0x30] sm:$0xff] }
 0x116   : > { %v2791_v3 = vpop.eup %2790  ;;  %v1039_v10 = vmul.f32 %v2789_v62, %v3627_v34  ;;  %2802 = vrcp.f32 %v963_v40  ;;  %v3739_v40 = vpop.permute.xlu2 %1178 }
 0x117   : > { %v2793_v54 = vpop.eup %2792  ;;  %v1078_v16 = vpack.c.bf16 %v1040_v38, %v1038_v51  ;;  %v1021_v48 = vmul.f32 %v2791_v3, %v3469_v14  ;;  %2804 = vrcp.f32 %v960_v49  ;;  %v4412_v14 = vld [vmem:[#allocation13_spill] sm:$0xff] }
 0x118   : > { %v2795_v33 = vpop.eup %2794  ;;  %v1077_v32 = vpack.c.bf16 %v1039_v10, %v1037_v52  ;;  %v1033_v34 = vmul.f32 %v2793_v54, %v3575_v59  ;;  %2806 = vrcp.f32 %v959_v39 }
 0x119   : > { %v2797_v24 = vpop.eup %2796  ;;  %1281 = vmatpush.bf16.msrb.mxu3 %v1078_v16  ;;  %v1032_v43 = vmul.f32 %v2795_v33, %v3555_v22 }
 0x11a   : > { %v2799_v29 = vpop.eup %2798  ;;  %1232 = vmatpush.bf16.msrb.mxu2 %v1077_v32  ;;  %v1075_v0 = vpack.c.bf16 %v1035_v2, %v1033_v34  ;;  %v1031_v58 = vmul.f32 %v2797_v24, %v4412_v14 }
 0x11b   : > { %v2801_v27 = vpop.eup %2800  ;;  %v1030_v23 = vmul.f32 %v2799_v29, %v4413_v41 }
 0x11c   : > { %v2803_v15 = vpop.eup %2802  ;;  %v1029_v7 = vmul.f32 %v2801_v27, %v4414_v18  ;;  %v3728_v28 = vpop.permute.xlu1 %1168 }
 0x11d   : > { %1282 = vmatpush.bf16.msrb.mxu3 %v1076_v9  ;;  %v1074_v59 = vpack.c.bf16 %v1032_v43, %v1030_v23  ;;  %v2805_v21 = vpop.eup %2804  ;;  %v1027_v22 = vmul.f32 %v2803_v15, %v4416_v50 }
 0x11e   : > { %1233 = vmatpush.bf16.msrb.mxu2 %v1075_v0  ;;  %v1073_v5 = vpack.c.bf16 %v1031_v58, %v1029_v7  ;;  %v2807_v57 = vpop.eup %2806  ;;  %v1024_v4 = vmul.f32 %v2805_v21, %v4418_v25  ;;  %v3745_v51 = vpop.permute.xlu2 %1153 }
 0x11f   : > { %v1071_v31 = vpack.c.bf16 %v1027_v22, %v1025_v1  ;;  %v1023_v20 = vmul.f32 %v2807_v57, %v4419_v44  ;;  %v3730_v1 = vpop.permute.xlu0 %1158 }
 0x120   : > { %v1070_v61 = vpack.c.bf16 %v1024_v4, %v4420_v6 }
 0x121   : > { %1283 = vmatpush.bf16.msrb.mxu3 %v1074_v59  ;;  %v1069_v17 = vpack.c.bf16 %v1023_v20, %v1021_v48 }
 0x122   : > { %1234 = vmatpush.bf16.msrb.mxu2 %v1073_v5 }
 0x124   : > { %v3735_v8 = vpop.permute.xlu1 %1143 }
 0x125   : > { %1284 = vmatpush.bf16.msrb.mxu3 %v1072_v53 }
 0x126   : > { %1235 = vmatpush.bf16.msrb.mxu2 %v1071_v31  ;;  %v3751_v54 = vpop.permute.xlu2 %1148 }
 0x127   : > { %v3737_v35 = vpop.permute.xlu0 %1133 }
 0x129   : > { %1285 = vmatpush.bf16.msrb.mxu3 %v1070_v61 }
 0x12a   : > { %1236 = vmatpush.bf16.msrb.mxu2 %v1069_v17 }
 0x12c   : > { %1286 = vmatmul.bf16.vlgmr.msrb.gmra.mxu3 %v2601_v47  ;;  %v3741_v13 = vpop.permute.xlu1 %1138 }
 0x12d   : > { %1237 = vmatmul.bf16.vlgmr.msrb.gmra.mxu2 %v2601_v47 }
 0x12e   : > { %v1124_v14 = vpop.permute.xlu2 %1123 }
 0x12f   : > { %v3743_v62 = vpop.permute.xlu0 %1128 }
 0x134   : > { %v1114_v38 = vpop.permute.xlu1 %1113 }
 0x136   : > { %v1119_v20 = vpop.permute.xlu2 %1118 }
 0x137   : > { %v1104_v3 = vpop.permute.xlu0 %1103 }
 0x13c   : > { %1291 = vmatmul.bf16.gmra.mxu3 %v2602_v45  ;;  %v1109_v33 = vpop.permute.xlu1 %1108 }
 0x13d   : > { %1242 = vmatmul.bf16.gmra.mxu2 %v2602_v45 }
 0x14c   : > { %1296 = vmatmul.bf16.gmra.mxu3 %v2603_v60 }
 0x14d   : > { %1247 = vmatmul.bf16.gmra.mxu2 %v2603_v60 }
 0x15c   : > { %1301 = vmatmul.bf16.gmra.mxu3 %v2604_v36 }
 0x15d   : > { %1252 = vmatmul.bf16.gmra.mxu2 %v2604_v36 }
 0x16c   : > { %1306 = vmatmul.bf16.gmra.mxu3 %v2605_v12 }
 0x16d   : > { %1257 = vmatmul.bf16.gmra.mxu2 %v2605_v12 }
 0x17c   : > { %1311 = vmatmul.bf16.gmra.mxu3 %v2606_v46 }
 0x17d   : > { %1262 = vmatmul.bf16.gmra.mxu2 %v2606_v46 }
 0x18c   : > { %1316 = vmatmul.bf16.gmra.mxu3 %v2607_v30 }
 0x18d   : > { %1267 = vmatmul.bf16.gmra.mxu2 %v2607_v30 }
 0x19c   : > { %1321 = vmatmul.bf16.gmra.mxu3 %v2608_v42 }
 0x19d   : > { %1272 = vmatmul.bf16.gmra.mxu2 %v2608_v42 }
 0x1af   : > { %v1287_v52 = vpop.f32.mrf.mxu3 }
 0x1b0   : > { %v1238_v10 = vpop.f32.mrf.mxu2  ;;  %v3747_v39 = vadd.f32 %v1287_v52, %v1104_v3 }
 0x1b1   : > { %v3749_v49 = vadd.f32 %v1238_v10, %v1104_v3 }
 0x1b3   : > { %v1327_v11 = vpack.c.bf16 %v3747_v39, %v3749_v49 }
 0x1b5   : > { %v1343_v16 = vunpack.c.l.bf16 %v1327_v11  ;;  %v1344_v48 = vunpack.c.h.bf16 %v1327_v11 }
 0x1b7   : > { %v1375_v32 = vsub.f32 0.0, %v1343_v16  ;;  %v1376_v2 = vsub.f32 0.0, %v1344_v48  ;;  %v1289_v24 = vpop.f32.mrf.mxu3 }
 0x1b8   : > { %v1240_v37 = vpop.f32.mrf.mxu2  ;;  %v3755_v29 = vadd.f32 %v1289_v24, %v1109_v33 }
 0x1b9   : > { %v1407_v34 = vpack.c.bf16 %v1376_v2, %v1375_v32  ;;  %v3757_v27 = vadd.f32 %v1240_v37, %v1109_v33 }
 0x1bb   : > { %v1423_v43 = vunpack.c.l.bf16 %v1407_v34  ;;  %v1424_v9 = vunpack.c.h.bf16 %v1407_v34  ;;  %v1328_v0 = vpack.c.bf16 %v3755_v29, %v3757_v27 }
 0x1bd   : > { %v1455_v58 = vmul.f32 1.442695, %v1423_v43  ;;  %v1457_v15 = vmul.f32 1.442695, %v1424_v9  ;;  %v1345_v41 = vunpack.c.l.bf16 %v1328_v0  ;;  %v1346_v23 = vunpack.c.h.bf16 %v1328_v0 }
 0x1bf   : > { %2808 = vpow2.f32 %v1455_v58  ;;  %v1377_v18 = vsub.f32 0.0, %v1345_v41  ;;  %v1378_v7 = vsub.f32 0.0, %v1346_v23  ;;  %v1292_v19 = vpop.f32.mrf.mxu3 }
 0x1c0   : > { %2810 = vpow2.f32 %v1457_v15  ;;  %v1243_v63 = vpop.f32.mrf.mxu2  ;;  %v3761_v59 = vadd.f32 %v1292_v19, %v1114_v38 }
 0x1c1   : > { %v1408_v21 = vpack.c.bf16 %v1378_v7, %v1377_v18  ;;  %v3763_v5 = vadd.f32 %v1243_v63, %v1114_v38 }
 0x1c3   : > { %v1425_v50 = vunpack.c.l.bf16 %v1408_v21  ;;  %v1426_v22 = vunpack.c.h.bf16 %v1408_v21  ;;  %v1329_v57 = vpack.c.bf16 %v3761_v59, %v3763_v5 }
 0x1c5   : > { %v2809_v55 = vpop.eup %2808  ;;  %v1459_v53 = vmul.f32 1.442695, %v1425_v50  ;;  %v1461_v25 = vmul.f32 1.442695, %v1426_v22  ;;  %v1347_v4 = vunpack.c.l.bf16 %v1329_v57  ;;  %v1348_v31 = vunpack.c.h.bf16 %v1329_v57 }
 0x1c6   : > { %v2811_v44 = vpop.eup %2810 }
 0x1c7   : > { %v3767_v6 = vpack.c.bf16 %v2811_v44, %v2809_v55  ;;  %2812 = vpow2.f32 %v1459_v53  ;;  %v1379_v61 = vsub.f32 0.0, %v1347_v4  ;;  %v1380_v17 = vsub.f32 0.0, %v1348_v31  ;;  %v1294_v47 = vpop.f32.mrf.mxu3 }
 0x1c8   : > { %2814 = vpow2.f32 %v1461_v25  ;;  %v1245_v45 = vpop.f32.mrf.mxu2  ;;  %v3769_v60 = vadd.f32 %v1294_v47, %v1119_v20 }
 0x1c9   : > { %v1536_v36 = vunpack.c.h.bf16 %v3767_v6  ;;  %v1409_v12 = vpack.c.bf16 %v1380_v17, %v1379_v61  ;;  %v3772_v46 = vadd.f32 %v1245_v45, %v1119_v20 }
 0x1cb   : > { %v1568_v30 = vadd.f32 1.0, %v1536_v36  ;;  %v1427_v42 = vunpack.c.l.bf16 %v1409_v12  ;;  %v1428_v38 = vunpack.c.h.bf16 %v1409_v12  ;;  %v1330_v3 = vpack.c.bf16 %v3769_v60, %v3772_v46 }
 0x1cd   : > { %v2813_v52 = vpop.eup %2812  ;;  %2816 = vrcp.f32 %v1568_v30  ;;  %v1463_v10 = vmul.f32 1.442695, %v1427_v42  ;;  %v1465_v11 = vmul.f32 1.442695, %v1428_v38  ;;  %v1349_v16 = vunpack.c.l.bf16 %v1330_v3 }
 0x1ce   : > { %v2815_v48 = vpop.eup %2814  ;;  %v1350_v33 = vunpack.c.h.bf16 %v1330_v3 }
 0x1cf   : > { %v3776_v32 = vpack.c.bf16 %v2815_v48, %v2813_v52  ;;  %2818 = vpow2.f32 %v1463_v10  ;;  %v1381_v2 = vsub.f32 0.0, %v1349_v16  ;;  %v1297_v24 = vpop.f32.mrf.mxu3 }
 0x1d0   : > { %2820 = vpow2.f32 %v1465_v11  ;;  %v1382_v37 = vsub.f32 0.0, %v1350_v33  ;;  %v1248_v34 = vpop.f32.mrf.mxu2  ;;  %v3778_v43 = vadd.f32 %v1297_v24, %v1124_v14 }
 0x1d1   : > { %v1538_v9 = vunpack.c.h.bf16 %v3776_v32  ;;  %v3781_v0 = vadd.f32 %v1248_v34, %v1124_v14 }
 0x1d2   : > { %v1410_v58 = vpack.c.bf16 %v1382_v37, %v1381_v2 }
 0x1d3   : > { %v2817_v15 = vpop.eup %2816  ;;  %v1570_v41 = vadd.f32 1.0, %v1538_v9  ;;  %v1331_v23 = vpack.c.bf16 %v3778_v43, %v3781_v0 }
 0x1d4   : > { %v3786_v18 = vmul.f32 %v2817_v15, %v3747_v39  ;;  %v1429_v7 = vunpack.c.l.bf16 %v1410_v58  ;;  %v1430_v19 = vunpack.c.h.bf16 %v1410_v58 }
 0x1d5   : > { %v2819_v63 = vpop.eup %2818  ;;  %2822 = vrcp.f32 %v1570_v41  ;;  %v1351_v21 = vunpack.c.l.bf16 %v1331_v23  ;;  %v1352_v50 = vunpack.c.h.bf16 %v1331_v23 }
 0x1d6   : > { %v2821_v22 = vpop.eup %2820  ;;  %v1467_v57 = vmul.f32 1.442695, %v1429_v7  ;;  %v1469_v55 = vmul.f32 1.442695, %v1430_v19 }
 0x1d7   : > { %v3788_v14 = vpack.c.bf16 %v2821_v22, %v2819_v63  ;;  %v1383_v53 = vsub.f32 0.0, %v1351_v21  ;;  %v1384_v25 = vsub.f32 0.0, %v1352_v50  ;;  %v1299_v4 = vpop.f32.mrf.mxu3 }
 0x1d8   : > { %2824 = vpow2.f32 %v1467_v57  ;;  %v1250_v31 = vpop.f32.mrf.mxu2  ;;  %v3791_v44 = vadd.f32 %v1299_v4, %v3743_v62 }
 0x1d9   : > { %v1540_v39 = vunpack.c.h.bf16 %v3788_v14  ;;  %2826 = vpow2.f32 %v1469_v55  ;;  %v1411_v20 = vpack.c.bf16 %v1384_v25, %v1383_v53  ;;  %v3795_v61 = vadd.f32 %v1250_v31, %v3743_v62 }
 0x1db   : > { %v2823_v17 = vpop.eup %2822  ;;  %v1572_v47 = vadd.f32 1.0, %v1540_v39  ;;  %v1431_v45 = vunpack.c.l.bf16 %v1411_v20  ;;  %v1432_v36 = vunpack.c.h.bf16 %v1411_v20  ;;  %v1332_v12 = vpack.c.bf16 %v3791_v44, %v3795_v61 }
 0x1dc   : > { %v3800_v30 = vmul.f32 %v2823_v17, %v3755_v29 }
 0x1dd   : > { %2828 = vrcp.f32 %v1572_v47  ;;  %v1471_v42 = vmul.f32 1.442695, %v1431_v45  ;;  %v1473_v38 = vmul.f32 1.442695, %v1432_v36  ;;  %v1353_v3 = vunpack.c.l.bf16 %v1332_v12 }
 0x1de   : > { %v2825_v52 = vpop.eup %2824  ;;  %v1354_v10 = vunpack.c.h.bf16 %v1332_v12 }
 0x1df   : > { %v2827_v11 = vpop.eup %2826  ;;  %2830 = vpow2.f32 %v1471_v42  ;;  %v1385_v62 = vsub.f32 0.0, %v1353_v3  ;;  %v1302_v16 = vpop.f32.mrf.mxu3 }
 0x1e0   : > { %v3802_v48 = vpack.c.bf16 %v2827_v11, %v2825_v52  ;;  %2832 = vpow2.f32 %v1473_v38  ;;  %v1386_v33 = vsub.f32 0.0, %v1354_v10  ;;  %v1253_v2 = vpop.f32.mrf.mxu2  ;;  %v3805_v24 = vadd.f32 %v1302_v16, %v3737_v35 }
 0x1e1   : > { %v3808_v29 = vadd.f32 %v1253_v2, %v3737_v35 }
 0x1e2   : > { %v1542_v37 = vunpack.c.h.bf16 %v3802_v48  ;;  %v1412_v34 = vpack.c.bf16 %v1386_v33, %v1385_v62 }
 0x1e3   : > { %v2829_v9 = vpop.eup %2828  ;;  %v1333_v58 = vpack.c.bf16 %v3805_v24, %v3808_v29 }
 0x1e4   : > { %v3814_v15 = vmul.f32 %v2829_v9, %v3761_v59  ;;  %v1574_v41 = vadd.f32 1.0, %v1542_v37  ;;  %v1433_v23 = vunpack.c.l.bf16 %v1412_v34  ;;  %v1434_v7 = vunpack.c.h.bf16 %v1412_v34 }
 0x1e5   : > { %v2831_v19 = vpop.eup %2830  ;;  %v1355_v63 = vunpack.c.l.bf16 %v1333_v58  ;;  %v1356_v21 = vunpack.c.h.bf16 %v1333_v58  ;;  %v1535_v9 = vunpack.c.l.bf16 %v3767_v6 }
 0x1e6   : > { %v2833_v50 = vpop.eup %2832  ;;  %2834 = vrcp.f32 %v1574_v41  ;;  %v1475_v35 = vmul.f32 1.442695, %v1433_v23  ;;  %v1477_v22 = vmul.f32 1.442695, %v1434_v7 }
 0x1e7   : > { %v3816_v57 = vpack.c.bf16 %v2833_v50, %v2831_v19  ;;  %v1387_v55 = vsub.f32 0.0, %v1355_v63  ;;  %v1388_v53 = vsub.f32 0.0, %v1356_v21  ;;  %v1304_v25 = vpop.f32.mrf.mxu3  ;;  %v1567_v19 = vadd.f32 1.0, %v1535_v9 }
 0x1e8   : > { %2836 = vpow2.f32 %v1475_v35  ;;  %v1255_v4 = vpop.f32.mrf.mxu2  ;;  %v3819_v59 = vadd.f32 %v1304_v25, %v3741_v13 }
 0x1e9   : > { %v1544_v31 = vunpack.c.h.bf16 %v3816_v57  ;;  %2838 = vpow2.f32 %v1477_v22  ;;  %v1413_v39 = vpack.c.bf16 %v1388_v53, %v1387_v55  ;;  %v3823_v20 = vadd.f32 %v1255_v4, %v3741_v13 }
 0x1eb   : > { %v1576_v17 = vadd.f32 1.0, %v1544_v31  ;;  %v1435_v47 = vunpack.c.l.bf16 %v1413_v39  ;;  %v1436_v45 = vunpack.c.h.bf16 %v1413_v39  ;;  %v1334_v36 = vpack.c.bf16 %v3819_v59, %v3823_v20 }
 0x1ec   : > { %v2835_v12 = vpop.eup %2834 }
 0x1ed   : > { %v3828_v42 = vmul.f32 %v2835_v12, %v3769_v60  ;;  %2840 = vrcp.f32 %v1576_v17  ;;  %v1479_v38 = vmul.f32 1.442695, %v1435_v47  ;;  %v1481_v3 = vmul.f32 1.442695, %v1436_v45 }
 0x1ee   : > { %v2837_v52 = vpop.eup %2836  ;;  %v1357_v10 = vunpack.c.l.bf16 %v1334_v36  ;;  %v1358_v11 = vunpack.c.h.bf16 %v1334_v36  ;;  %v1537_v36 = vunpack.c.l.bf16 %v3776_v32 }
 0x1ef   : > { %v2839_v62 = vpop.eup %2838  ;;  %2842 = vpow2.f32 %v1479_v38  ;;  %v1307_v13 = vpop.f32.mrf.mxu3 }
 0x1f0   : > { %v3830_v16 = vpack.c.bf16 %v2839_v62, %v2837_v52  ;;  %2844 = vpow2.f32 %v1481_v3  ;;  %v1389_v33 = vsub.f32 0.0, %v1357_v10  ;;  %v1390_v2 = vsub.f32 0.0, %v1358_v11  ;;  %v1258_v37 = vpop.f32.mrf.mxu2 }
 0x1f1   : > { %v3833_v34 = vadd.f32 %v1258_v37, %v3735_v8  ;;  %v3836_v60 = vadd.f32 %v1307_v13, %v3735_v8  ;;  %2846 = vrcp.f32 %v1567_v19  ;;  %v1569_v11 = vadd.f32 1.0, %v1537_v36 }
 0x1f2   : > { %v1546_v58 = vunpack.c.h.bf16 %v3830_v16  ;;  %v1414_v41 = vpack.c.bf16 %v1390_v2, %v1389_v33 }
 0x1f3   : > { %v2841_v23 = vpop.eup %2840  ;;  %v1335_v7 = vpack.c.bf16 %v3836_v60, %v3833_v34 }
 0x1f4   : > { %v3843_v63 = vmul.f32 %v2841_v23, %v3778_v43  ;;  %v1578_v21 = vadd.f32 1.0, %v1546_v58  ;;  %v1437_v50 = vunpack.c.l.bf16 %v1414_v41  ;;  %v1438_v35 = vunpack.c.h.bf16 %v1414_v41 }
 0x1f5   : > { %v2843_v22 = vpop.eup %2842  ;;  %v1359_v55 = vunpack.c.l.bf16 %v1335_v7  ;;  %v1360_v8 = vunpack.c.h.bf16 %v1335_v7  ;;  %v1539_v23 = vunpack.c.l.bf16 %v3788_v14 }
 0x1f6   : > { %v2845_v53 = vpop.eup %2844  ;;  %2848 = vrcp.f32 %v1578_v21  ;;  %v1483_v6 = vmul.f32 1.442695, %v1437_v50  ;;  %v1485_v25 = vmul.f32 1.442695, %v1438_v35 }
 0x1f7   : > { %v3845_v4 = vpack.c.bf16 %v2845_v53, %v2843_v22  ;;  %v1391_v31 = vsub.f32 0.0, %v1359_v55  ;;  %v1392_v39 = vsub.f32 0.0, %v1360_v8  ;;  %v1309_v17 = vpop.f32.mrf.mxu3  ;;  %v2847_v12 = vpop.eup %2846  ;;  %v1571_v19 = vadd.f32 1.0, %v1539_v23 }
 0x1f8   : > { %2850 = vpow2.f32 %v1483_v6  ;;  %v1260_v47 = vpop.f32.mrf.mxu2  ;;  %v3850_v62 = vmul.f32 %v2847_v12, %v3749_v49 }
 0x1f9   : > { %v1548_v43 = vunpack.c.h.bf16 %v3845_v4  ;;  %2852 = vpow2.f32 %v1485_v25  ;;  %v1415_v45 = vpack.c.bf16 %v1392_v39, %v1391_v31  ;;  %v3873_v31 = vadd.f32 %v1309_v17, %v3751_v54 }
 0x1fb   : > { %v1580_v38 = vadd.f32 1.0, %v1548_v43  ;;  %v1439_v3 = vunpack.c.l.bf16 %v1415_v45  ;;  %v1440_v52 = vunpack.c.h.bf16 %v1415_v45  ;;  %v3877_v45 = vadd.f32 %v1260_v47, %v3751_v54 }
 0x1fc   : > { %v2849_v10 = vpop.eup %2848 }
 0x1fd   : > { %v3853_v13 = vmul.f32 %v2849_v10, %v3791_v44  ;;  %2854 = vrcp.f32 %v1580_v38  ;;  %v1487_v33 = vmul.f32 1.442695, %v1439_v3  ;;  %v1489_v2 = vmul.f32 1.442695, %v1440_v52 }
 0x1fe   : > { %v2851_v37 = vpop.eup %2850  ;;  %2856 = vrcp.f32 %v1569_v11  ;;  %v1336_v54 = vpack.c.bf16 %v3873_v31, %v3877_v45 }
 0x1ff   : > { %v2853_v9 = vpop.eup %2852  ;;  %2858 = vpow2.f32 %v1487_v33  ;;  %v1312_v32 = vpop.f32.mrf.mxu3 }
 0x200   : > { %v3855_v58 = vpack.c.bf16 %v2853_v9, %v2851_v37  ;;  %2860 = vpow2.f32 %v1489_v2  ;;  %v1263_v41 = vpop.f32.mrf.mxu2  ;;  %v3883_v12 = vadd.f32 %v1312_v32, %v3745_v51  ;;  %v1361_v33 = vunpack.c.l.bf16 %v1336_v54 }
 0x201   : > { %2862 = vrcp.f32 %v1571_v19  ;;  %v3880_v36 = vadd.f32 %v1263_v41, %v3745_v51  ;;  %v1543_v51 = vunpack.c.l.bf16 %v3816_v57  ;;  %v1362_v2 = vunpack.c.h.bf16 %v1336_v54 }
 0x202   : > { %v1550_v49 = vunpack.c.h.bf16 %v3855_v58  ;;  %v1393_v19 = vsub.f32 0.0, %v1361_v33 }
 0x203   : > { %v2855_v7 = vpop.eup %2854  ;;  %v1575_v37 = vadd.f32 1.0, %v1543_v51 }
 0x204   : > { %v2857_v44 = vpop.eup %2856  ;;  %v3860_v21 = vmul.f32 %v2855_v7, %v3805_v24  ;;  %v1582_v50 = vadd.f32 1.0, %v1550_v49 }
 0x205   : > { %v2859_v35 = vpop.eup %2858  ;;  %v3863_v22 = vmul.f32 %v2857_v44, %v3757_v27  ;;  %v1541_v27 = vunpack.c.l.bf16 %v3802_v48  ;;  %v1337_v48 = vpack.c.bf16 %v3883_v12, %v3880_v36  ;;  %v1394_v44 = vsub.f32 0.0, %v1362_v2 }
 0x206   : > { %v2861_v55 = vpop.eup %2860  ;;  %2864 = vrcp.f32 %v1582_v50 }
 0x207   : > { %v3867_v14 = vpack.c.bf16 %v2861_v55, %v2859_v35  ;;  %v1314_v53 = vpop.f32.mrf.mxu3  ;;  %v2863_v39 = vpop.eup %2862  ;;  %v1573_v3 = vadd.f32 1.0, %v1541_v27  ;;  %v1364_v32 = vunpack.c.h.bf16 %v1337_v48  ;;  %v1545_v27 = vunpack.c.l.bf16 %v3830_v16 }
 0x208   : > { %v1265_v25 = vpop.f32.mrf.mxu2  ;;  %v3886_v52 = vmul.f32 %v2863_v39, %v3763_v5  ;;  %v1363_v5 = vunpack.c.l.bf16 %v1337_v48  ;;  %v3903_v23 = vadd.f32 %v1314_v53, %v3730_v1 }
 0x209   : > { %v1552_v24 = vunpack.c.h.bf16 %v3867_v14  ;;  %v3900_v41 = vadd.f32 %v1265_v25, %v3730_v1  ;;  %v1396_v25 = vsub.f32 0.0, %v1364_v32  ;;  %v1577_v48 = vadd.f32 1.0, %v1545_v27 }
 0x20a   : > { %v1395_v53 = vsub.f32 0.0, %v1363_v5 }
 0x20b   : > { %v1584_v43 = vadd.f32 1.0, %v1552_v24  ;;  %v1338_v35 = vpack.c.bf16 %v3903_v23, %v3900_v41 }
 0x20c   : > { %v2865_v38 = vpop.eup %2864 }
 0x20d   : > { %v3889_v17 = vmul.f32 %v2865_v38, %v3819_v59  ;;  %2866 = vrcp.f32 %v1584_v43  ;;  %v3929_v43 = vpack.c.bf16 %v1394_v44, %v1393_v19  ;;  %v1366_v54 = vunpack.c.h.bf16 %v1338_v35 }
 0x20e   : > { %2868 = vrcp.f32 %v1573_v3  ;;  %v1365_v3 = vunpack.c.l.bf16 %v1338_v35 }
 0x20f   : > { %v1317_v47 = vpop.f32.mrf.mxu3  ;;  %2870 = vrcp.f32 %v1575_v37  ;;  %v1441_v16 = vunpack.c.l.bf16 %v3929_v43  ;;  %v1398_v37 = vsub.f32 0.0, %v1366_v54 }
 0x210   : > { %v1268_v10 = vpop.f32.mrf.mxu2  ;;  %v3909_v57 = vadd.f32 %v1317_v47, %v3723_v26  ;;  %2872 = vrcp.f32 %v1577_v48  ;;  %v1397_v5 = vsub.f32 0.0, %v1365_v3 }
 0x211   : > { %v3906_v49 = vadd.f32 %v1268_v10, %v3723_v26  ;;  %v3936_v10 = vpack.c.bf16 %v1396_v25, %v1395_v53 }
 0x212   : > { %v1418_v3 = vpack.c.bf16 %v1398_v37, %v1397_v5 }
 0x213   : > { %v2867_v11 = vpop.eup %2866  ;;  %v1443_v35 = vunpack.c.l.bf16 %v3936_v10 }
 0x214   : > { %v2869_v9 = vpop.eup %2868  ;;  %v3897_v59 = vmul.f32 %v2867_v11, %v3836_v60 }
 0x215   : > { %v3912_v7 = vmul.f32 %v2869_v9, %v3772_v46  ;;  %v1339_v46 = vpack.c.bf16 %v3909_v57, %v3906_v49  ;;  %v2871_v39 = vpop.eup %2870 }
 0x216   : > { %v3934_v47 = vmul.f32 %v2871_v39, %v3781_v0  ;;  %v2873_v39 = vpop.eup %2872 }
 0x217   : > { %v1319_v50 = vpop.f32.mrf.mxu3  ;;  %v1367_v51 = vunpack.c.l.bf16 %v1339_v46  ;;  %v1368_v11 = vunpack.c.h.bf16 %v1339_v46 }
 0x218   : > { %v1270_v55 = vpop.f32.mrf.mxu2  ;;  %v3921_v26 = vadd.f32 %v1319_v50, %v3728_v28  ;;  %v1547_v50 = vunpack.c.l.bf16 %v3845_v4  ;;  %v1495_v4 = vmul.f32 1.442695, %v1443_v35 }
 0x219   : > { %v3926_v24 = vadd.f32 %v1270_v55, %v3728_v28  ;;  %v1399_v55 = vsub.f32 0.0, %v1367_v51  ;;  %v1400_v53 = vsub.f32 0.0, %v1368_v11  ;;  %v1684_v51 = vpack.c.bf16 %v3853_v13, %v3843_v63 }
 0x21a   : > { %v1579_v27 = vadd.f32 1.0, %v1547_v50  ;;  %v1445_v50 = vunpack.c.l.bf16 %v1418_v3  ;;  %v4424_v63 = vpack.c.bf16 %v3800_v30, %v3786_v18  ;;  %v4425_v13 = vpack.c.bf16 %v3863_v22, %v3850_v62  ;;  %v2612_v18 = vld [vmem:[%s4387_s6 + $0x18] sm:$0xff]  ;;  %v2613_v30 = vld [vmem:[%s4387_s6 + $0x20] sm:$0xff]  ;;  %v2614_v62 = vld [vmem:[%s4387_s6 + $0x28] sm:$0xff]  ;;  %v4042_v22 = vpop.permute.xlu2 %1783 }
 0x21b   : > { %v1340_v38 = vpack.c.bf16 %v3921_v26, %v3926_v24 }
 0x21c   : > { %2874 = vrcp.f32 %v1579_v27 }
 0x21d   : > { %v1369_v28 = vunpack.c.l.bf16 %v1340_v38  ;;  %v1370_v33 = vunpack.c.h.bf16 %v1340_v38  ;;  %v1491_v38 = vmul.f32 1.442695, %v1441_v16 }
 0x21f   : > { %v1322_v2 = vpop.f32.mrf.mxu3  ;;  %v1401_v9 = vsub.f32 0.0, %v1369_v28  ;;  %v1402_v32 = vsub.f32 0.0, %v1370_v33  ;;  %2876 = vpow2.f32 %v1491_v38 }
 0x220   : > { %v1273_v19 = vpop.f32.mrf.mxu2  ;;  %v3943_v0 = vadd.f32 %v1322_v2, %v3721_v56  ;;  %v1419_v2 = vpack.c.bf16 %v1400_v53, %v1399_v55  ;;  %v1444_v55 = vunpack.c.h.bf16 %v3936_v10  ;;  %2878 = vpow2.f32 %v1495_v4 }
 0x221   : > { %v3940_v44 = vadd.f32 %v1273_v19, %v3721_v56  ;;  %v1420_v25 = vpack.c.bf16 %v1402_v32, %v1401_v9  ;;  %v3950_v56 = vmul.f32 %v2873_v39, %v3795_v61 }
 0x222   : > { %v1447_v53 = vunpack.c.l.bf16 %v1419_v2  ;;  %v2875_v27 = vpop.eup %2874  ;;  %v1448_v39 = vunpack.c.h.bf16 %v1419_v2 }
 0x223   : > { %v1341_v46 = vpack.c.bf16 %v3943_v0, %v3940_v44  ;;  %v1449_v54 = vunpack.c.l.bf16 %v1420_v25  ;;  %v1450_v48 = vunpack.c.h.bf16 %v1420_v25 }
 0x225   : > { %v1371_v28 = vunpack.c.l.bf16 %v1341_v46  ;;  %v1372_v33 = vunpack.c.h.bf16 %v1341_v46  ;;  %v1507_v5 = vmul.f32 1.442695, %v1449_v54  ;;  %v1509_v61 = vmul.f32 1.442695, %v1450_v48 }
 0x226   : > { %v1549_v46 = vunpack.c.l.bf16 %v3855_v58  ;;  %v1503_v58 = vmul.f32 1.442695, %v1447_v53 }
 0x227   : > { %v1403_v11 = vsub.f32 0.0, %v1371_v28  ;;  %v1404_v9 = vsub.f32 0.0, %v1372_v33  ;;  %v1324_v32 = vpop.f32.mrf.mxu3  ;;  %v1446_v33 = vunpack.c.h.bf16 %v1418_v3  ;;  %2880 = vpow2.f32 %v1507_v5 }
 0x228   : > { %v1275_v37 = vpop.f32.mrf.mxu2  ;;  %v3957_v19 = vadd.f32 %v1324_v32, %v3739_v40  ;;  %v1581_v48 = vadd.f32 1.0, %v1549_v46  ;;  %2882 = vpow2.f32 %v1509_v61 }
 0x229   : > { %v1421_v25 = vpack.c.bf16 %v1404_v9, %v1403_v11  ;;  %v3960_v35 = vadd.f32 %v1275_v37, %v3739_v40  ;;  %v3967_v11 = vmul.f32 %v2875_v27, %v3808_v29  ;;  %v1499_v40 = vmul.f32 1.442695, %v1445_v50  ;;  %v3969_v9 = vpop.eup %2876 }
 0x22a   : > { %2884 = vrcp.f32 %v1581_v48  ;;  %v1442_v37 = vunpack.c.h.bf16 %v3929_v43  ;;  %v2879_v3 = vpop.eup %2878  ;;  %v1501_v5 = vmul.f32 1.442695, %v1446_v33  ;;  %v1551_v50 = vunpack.c.l.bf16 %v3867_v14 }
 0x22b   : > { %v1451_v38 = vunpack.c.l.bf16 %v1421_v25  ;;  %v1452_v54 = vunpack.c.h.bf16 %v1421_v25  ;;  %v1342_v28 = vpack.c.bf16 %v3957_v19, %v3960_v35  ;;  %v1505_v25 = vmul.f32 1.442695, %v1448_v39 }
 0x22c   : > { %v1497_v27 = vmul.f32 1.442695, %v1444_v55 }
 0x22d   : > { %v1511_v10 = vmul.f32 1.442695, %v1451_v38  ;;  %v1513_v4 = vmul.f32 1.442695, %v1452_v54  ;;  %v1373_v32 = vunpack.c.l.bf16 %v1342_v28  ;;  %v1374_v2 = vunpack.c.h.bf16 %v1342_v28  ;;  %v2881_v61 = vpop.eup %2880 }
 0x22e   : > { %v2883_v53 = vpop.eup %2882  ;;  %v1493_v54 = vmul.f32 1.442695, %v1442_v37  ;;  %v1583_v28 = vadd.f32 1.0, %v1551_v50 }
 0x22f   : > { %2886 = vpow2.f32 %v1511_v10  ;;  %v1405_v46 = vsub.f32 0.0, %v1373_v32  ;;  %v1406_v29 = vsub.f32 0.0, %v1374_v2  ;;  %v1532_v14 = vpack.c.bf16 %v2883_v53, %v2881_v61 }
 0x230   : > { %2888 = vpow2.f32 %v1513_v4  ;;  %v2885_v48 = vpop.eup %2884 }
 0x231   : > { %2890 = vpow2.f32 %v1499_v40  ;;  %v1422_v38 = vpack.c.bf16 %v1406_v29, %v1405_v46  ;;  %v3974_v33 = vmul.f32 %v2885_v48, %v3823_v20  ;;  %v1562_v46 = vunpack.c.h.bf16 %v1532_v14 }
 0x232   : > { %2892 = vpow2.f32 %v1503_v58  ;;  %v1561_v50 = vunpack.c.l.bf16 %v1532_v14 }
 0x233   : > { %2894 = vpow2.f32 %v1505_v25  ;;  %v1453_v43 = vunpack.c.l.bf16 %v1422_v38  ;;  %v1454_v39 = vunpack.c.h.bf16 %v1422_v38  ;;  %v1685_v32 = vpack.c.bf16 %v3974_v33, %v3967_v11 }
 0x234   : > { %2896 = vpow2.f32 %v1501_v5  ;;  %v1686_v25 = vpack.c.bf16 %v3889_v17, %v3860_v21  ;;  %v4423_v21 = vpack.c.bf16 %v3912_v7, %v3886_v52  ;;  %v2615_v52 = vld [vmem:[%s4387_s6 + $0x30] sm:$0xff]  ;;  %v4049_v17 = vpop.permute.xlu2 %1778 }
 0x235   : > { %v2887_v10 = vpop.eup %2886  ;;  %2898 = vrcp.f32 %v1583_v28  ;;  %v1515_v4 = vmul.f32 1.442695, %v1453_v43  ;;  %v1517_v55 = vmul.f32 1.442695, %v1454_v39  ;;  %v1594_v39 = vadd.f32 1.0, %v1562_v46 }
 0x236   : > { %v2889_v40 = vpop.eup %2888  ;;  %2900 = vpow2.f32 %v1497_v27 }
 0x237   : > { %v2891_v58 = vpop.eup %2890  ;;  %2902 = vpow2.f32 %v1493_v54  ;;  %v1533_v37 = vpack.c.bf16 %v2889_v40, %v2887_v10 }
 0x238   : > { %v2893_v2 = vpop.eup %2892  ;;  %2904 = vpow2.f32 %v1515_v4  ;;  %v1593_v4 = vadd.f32 1.0, %v1561_v50 }
 0x239   : > { %v2895_v5 = vpop.eup %2894  ;;  %2906 = vpow2.f32 %v1517_v55  ;;  %v1564_v38 = vunpack.c.h.bf16 %v1533_v37  ;;  %v1563_v28 = vunpack.c.l.bf16 %v1533_v37 }
 0x23a   : > { %v2897_v20 = vpop.eup %2896  ;;  %v1531_v27 = vpack.c.bf16 %v2895_v5, %v2893_v2  ;;  %2908 = vrcp.f32 %v1594_v39 }
 0x23b   : > { %v2899_v29 = vpop.eup %2898  ;;  %v1530_v43 = vpack.c.bf16 %v2897_v20, %v2891_v58  ;;  %v1596_v55 = vadd.f32 1.0, %v1564_v38  ;;  %v1595_v14 = vadd.f32 1.0, %v1563_v28  ;;  %2910 = vrcp.f32 %v1593_v4 }
 0x23c   : > { %v2901_v61 = vpop.eup %2900  ;;  %v3981_v53 = vmul.f32 %v2899_v29, %v3833_v34  ;;  %v1560_v6 = vunpack.c.h.bf16 %v1531_v27  ;;  %v1559_v60 = vunpack.c.l.bf16 %v1531_v27 }
 0x23d   : > { %v2903_v54 = vpop.eup %2902  ;;  %v1529_v40 = vpack.c.bf16 %v2901_v61, %v2879_v3  ;;  %v1558_v2 = vunpack.c.h.bf16 %v1530_v43  ;;  %v1557_v37 = vunpack.c.l.bf16 %v1530_v43  ;;  %2912 = vrcp.f32 %v1596_v55 }
 0x23e   : > { %v2905_v48 = vpop.eup %2904  ;;  %v1528_v1 = vpack.c.bf16 %v2903_v54, %v3969_v9  ;;  %v1592_v16 = vadd.f32 1.0, %v1560_v6  ;;  %2914 = vrcp.f32 %v1595_v14  ;;  %v1591_v3 = vadd.f32 1.0, %v1559_v60 }
 0x23f   : > { %v2907_v10 = vpop.eup %2906  ;;  %v1556_v29 = vunpack.c.h.bf16 %v1529_v40  ;;  %v1555_v46 = vunpack.c.l.bf16 %v1529_v40  ;;  %v1590_v61 = vadd.f32 1.0, %v1558_v2  ;;  %v1589_v9 = vadd.f32 1.0, %v1557_v37 }
 0x240   : > { %v1534_v8 = vpack.c.bf16 %v2907_v10, %v2905_v48  ;;  %v1554_v50 = vunpack.c.h.bf16 %v1528_v1  ;;  %v1553_v27 = vunpack.c.l.bf16 %v1528_v1  ;;  %v2909_v38 = vpop.eup %2908 }
 0x241   : > { %v1588_v54 = vadd.f32 1.0, %v1556_v29  ;;  %v1587_v28 = vadd.f32 1.0, %v1555_v46  ;;  %v1658_v2 = vmul.f32 %v2909_v38, %v3921_v26 }
 0x242   : > { %v1566_v5 = vunpack.c.h.bf16 %v1534_v8  ;;  %v1565_v34 = vunpack.c.l.bf16 %v1534_v8  ;;  %v2911_v8 = vpop.eup %2910  ;;  %v1586_v6 = vadd.f32 1.0, %v1554_v50  ;;  %v1585_v39 = vadd.f32 1.0, %v1553_v27 }
 0x243   : > { %v2913_v48 = vpop.eup %2912  ;;  %v1657_v37 = vmul.f32 %v2911_v8, %v3926_v24 }
 0x244   : > { %v1598_v58 = vadd.f32 1.0, %v1566_v5  ;;  %v1597_v20 = vadd.f32 1.0, %v1565_v34  ;;  %v2915_v43 = vpop.eup %2914  ;;  %v1660_v40 = vmul.f32 %v2913_v48, %v3943_v0 }
 0x246   : > { %2916 = vrcp.f32 %v1598_v58 }
 0x247   : > { %2918 = vrcp.f32 %v1597_v20 }
 0x248   : > { %2920 = vrcp.f32 %v1592_v16  ;;  %v1659_v16 = vmul.f32 %v2915_v43, %v3940_v44 }
 0x249   : > { %2922 = vrcp.f32 %v1591_v3 }
 0x24a   : > { %2924 = vrcp.f32 %v1590_v61 }
 0x24b   : > { %2926 = vrcp.f32 %v1589_v9 }
 0x24c   : > { %v2917_v60 = vpop.eup %2916  ;;  %2928 = vrcp.f32 %v1588_v54 }
 0x24d   : > { %v2919_v10 = vpop.eup %2918  ;;  %v1662_v4 = vmul.f32 %v2917_v60, %v3957_v19  ;;  %2930 = vrcp.f32 %v1587_v28 }
 0x24e   : > { %v2921_v1 = vpop.eup %2920  ;;  %2932 = vrcp.f32 %v1586_v6  ;;  %v1661_v55 = vmul.f32 %v2919_v10, %v3960_v35 }
 0x24f   : > { %v2923_v14 = vpop.eup %2922  ;;  %v1694_v5 = vpack.c.bf16 %v1662_v4, %v1660_v40  ;;  %2934 = vrcp.f32 %v1585_v39  ;;  %v1656_v0 = vmul.f32 %v2921_v1, %v3909_v57 }
 0x250   : > { %v2925_v34 = vpop.eup %2924  ;;  %v1693_v29 = vpack.c.bf16 %v1661_v55, %v1659_v16  ;;  %v1655_v20 = vmul.f32 %v2923_v14, %v3906_v49 }
 0x251   : > { %v2927_v58 = vpop.eup %2926  ;;  %1888 = vmatpush.bf16.msrb.mxu1 %v1694_v5  ;;  %v1654_v35 = vmul.f32 %v2925_v34, %v3903_v23  ;;  %v1692_v3 = vpack.c.bf16 %v1658_v2, %v1656_v0 }
 0x252   : > { %v2929_v19 = vpop.eup %2928  ;;  %1839 = vmatpush.bf16.msrb.mxu0 %v1693_v29  ;;  %v1691_v26 = vpack.c.bf16 %v1657_v37, %v1655_v20  ;;  %v1653_v50 = vmul.f32 %v2927_v58, %v3900_v41  ;;  %v4053_v41 = vpop.permute.xlu2 %1753 }
 0x253   : > { %v2931_v44 = vpop.eup %2930  ;;  %v1652_v9 = vmul.f32 %v2929_v19, %v3883_v12  ;;  %v4044_v12 = vpop.permute.xlu1 %1773 }
 0x254   : > { %v2933_v46 = vpop.eup %2932  ;;  %v1651_v57 = vmul.f32 %v2931_v44, %v3880_v36  ;;  %v2609_v36 = vld [vmem:[%s4387_s6] sm:$0xff] }
 0x255   : > { %v2935_v61 = vpop.eup %2934  ;;  %1889 = vmatpush.bf16.msrb.mxu1 %v1692_v3  ;;  %v1650_v24 = vmul.f32 %v2933_v46, %v3873_v31  ;;  %v1690_v27 = vpack.c.bf16 %v1654_v35, %v1652_v9  ;;  %v4421_v31 = vpack.c.bf16 %v3950_v56, %v3934_v47  ;;  %v2616_v47 = vld [vmem:[%s4387_s6 + $0x38] sm:$0xff]  ;;  %v4060_v56 = vpop.permute.xlu0 %1788 }
 0x256   : > { %1840 = vmatpush.bf16.msrb.mxu0 %v1691_v26  ;;  %v1689_v38 = vpack.c.bf16 %v1653_v50, %v1651_v57  ;;  %v1649_v49 = vmul.f32 %v2935_v61, %v3877_v45  ;;  %v4422_v45 = vpack.c.bf16 %v3828_v42, %v3814_v15  ;;  %v2610_v15 = vld [vmem:[%s4387_s6 + $0x8] sm:$0xff]  ;;  %v2611_v42 = vld [vmem:[%s4387_s6 + $0x10] sm:$0xff] }
 0x257   : > { %v1688_v23 = vpack.c.bf16 %v1650_v24, %v3897_v59 }
 0x258   : > { %v1687_v54 = vpack.c.bf16 %v1649_v49, %v3981_v53 }
 0x259   : > { %1890 = vmatpush.bf16.msrb.mxu1 %v1690_v27 }
 0x25a   : > { %1841 = vmatpush.bf16.msrb.mxu0 %v1689_v38 }
 0x25b   : > { %v4051_v59 = vpop.permute.xlu1 %1768 }
 0x25d   : > { %1891 = vmatpush.bf16.msrb.mxu1 %v1688_v23  ;;  %v4066_v33 = vpop.permute.xlu0 %1763 }
 0x25e   : > { %1842 = vmatpush.bf16.msrb.mxu0 %v1687_v54 }
 0x261   : > { %1892 = vmatpush.bf16.msrb.mxu1 %v1686_v25 }
 0x262   : > { %1843 = vmatpush.bf16.msrb.mxu0 %v1685_v32 }
 0x263   : > { %v4055_v7 = vpop.permute.xlu1 %1743 }
 0x265   : > { %1893 = vmatpush.bf16.msrb.mxu1 %v1684_v51  ;;  %v4062_v51 = vpop.permute.xlu2 %1748  ;;  %v4072_v6 = vpop.permute.xlu0 %1758 }
 0x266   : > { %1844 = vmatpush.bf16.msrb.mxu0 %v4421_v31 }
 0x269   : > { %1894 = vmatpush.bf16.msrb.mxu1 %v4422_v45 }
 0x26a   : > { %1845 = vmatpush.bf16.msrb.mxu0 %v4423_v21 }
 0x26b   : > { %v4064_v11 = vpop.permute.xlu1 %1738 }
 0x26d   : > { %1895 = vmatpush.bf16.msrb.mxu1 %v4424_v63  ;;  %v1724_v32 = vpop.permute.xlu2 %1723  ;;  %v1734_v37 = vpop.permute.xlu0 %1733 }
 0x26e   : > { %1846 = vmatpush.bf16.msrb.mxu0 %v4425_v13 }
 0x270   : > { %1896 = vmatmul.bf16.vlgmr.msrb.gmra.mxu1 %v2609_v36 }
 0x271   : > { %1847 = vmatmul.bf16.vlgmr.msrb.gmra.mxu0 %v2609_v36 }
 0x273   : > { %v1714_v25 = vpop.permute.xlu1 %1713 }
 0x275   : > { %v1719_v10 = vpop.permute.xlu2 %1718  ;;  %v1729_v45 = vpop.permute.xlu0 %1728 }
 0x280   : > { %1901 = vmatmul.bf16.gmra.mxu1 %v2610_v15 }
 0x281   : > { %1852 = vmatmul.bf16.gmra.mxu0 %v2610_v15 }
 0x290   : > { %1906 = vmatmul.bf16.gmra.mxu1 %v2611_v42 }
 0x291   : > { %1857 = vmatmul.bf16.gmra.mxu0 %v2611_v42 }
 0x2a0   : > { %1911 = vmatmul.bf16.gmra.mxu1 %v2612_v18 }
 0x2a1   : > { %1862 = vmatmul.bf16.gmra.mxu0 %v2612_v18 }
 0x2b0   : > { %1916 = vmatmul.bf16.gmra.mxu1 %v2613_v30 }
 0x2b1   : > { %1867 = vmatmul.bf16.gmra.mxu0 %v2613_v30 }
 0x2c0   : > { %1921 = vmatmul.bf16.gmra.mxu1 %v2614_v62 }
 0x2c1   : > { %1872 = vmatmul.bf16.gmra.mxu0 %v2614_v62 }
 0x2d0   : > { %1926 = vmatmul.bf16.gmra.mxu1 %v2615_v52 }
 0x2d1   : > { %1877 = vmatmul.bf16.gmra.mxu0 %v2615_v52 }
 0x2e0   : > { %1931 = vmatmul.bf16.gmra.mxu1 %v2616_v47 }
 0x2e1   : > { %1882 = vmatmul.bf16.gmra.mxu0 %v2616_v47 }
 0x2ed   : > { %v1897_v53 = vpop.f32.mrf.mxu1 }
 0x2ee   : > { %v1848_v8 = vpop.f32.mrf.mxu0  ;;  %v4068_v28 = vadd.f32 %v1897_v53, %v1714_v25 }
 0x2ef   : > { %v4070_v48 = vadd.f32 %v1848_v8, %v1714_v25 }
 0x2f1   : > { %v1937_v43 = vpack.c.bf16 %v4068_v28, %v4070_v48 }
 0x2f3   : > { %v1953_v39 = vunpack.c.l.bf16 %v1937_v43  ;;  %v1954_v60 = vunpack.c.h.bf16 %v1937_v43 }
 0x2f5   : > { %v1985_v40 = vsub.f32 0.0, %v1953_v39  ;;  %v1986_v4 = vsub.f32 0.0, %v1954_v60  ;;  %v1899_v1 = vpop.f32.mrf.mxu1 }
 0x2f6   : > { %v1850_v16 = vpop.f32.mrf.mxu0  ;;  %v4076_v55 = vadd.f32 %v1899_v1, %v1719_v10 }
 0x2f7   : > { %v2017_v14 = vpack.c.bf16 %v1986_v4, %v1985_v40  ;;  %v4078_v2 = vadd.f32 %v1850_v16, %v1719_v10 }
 0x2f9   : > { %v2033_v5 = vunpack.c.l.bf16 %v2017_v14  ;;  %v2034_v34 = vunpack.c.h.bf16 %v2017_v14  ;;  %v1938_v29 = vpack.c.bf16 %v4076_v55, %v4078_v2 }
 0x2fb   : > { %v2065_v58 = vmul.f32 1.442695, %v2033_v5  ;;  %v2067_v0 = vmul.f32 1.442695, %v2034_v34  ;;  %v1955_v19 = vunpack.c.l.bf16 %v1938_v29  ;;  %v1956_v20 = vunpack.c.h.bf16 %v1938_v29 }
 0x2fd   : > { %2936 = vpow2.f32 %v2065_v58  ;;  %v1987_v44 = vsub.f32 0.0, %v1955_v19  ;;  %v1988_v35 = vsub.f32 0.0, %v1956_v20  ;;  %v1902_v3 = vpop.f32.mrf.mxu1 }
 0x2fe   : > { %2938 = vpow2.f32 %v2067_v0  ;;  %v1853_v46 = vpop.f32.mrf.mxu0  ;;  %v4082_v26 = vadd.f32 %v1902_v3, %v1724_v32 }
 0x2ff   : > { %v2018_v50 = vpack.c.bf16 %v1988_v35, %v1987_v44  ;;  %v4084_v61 = vadd.f32 %v1853_v46, %v1724_v32 }
 0x301   : > { %v2035_v9 = vunpack.c.l.bf16 %v2018_v50  ;;  %v2036_v57 = vunpack.c.h.bf16 %v2018_v50  ;;  %v1939_v24 = vpack.c.bf16 %v4082_v26, %v4084_v61 }
 0x303   : > { %v2937_v27 = vpop.eup %2936  ;;  %v2069_v38 = vmul.f32 1.442695, %v2035_v9  ;;  %v2071_v49 = vmul.f32 1.442695, %v2036_v57  ;;  %v1957_v23 = vunpack.c.l.bf16 %v1939_v24  ;;  %v1958_v54 = vunpack.c.h.bf16 %v1939_v24 }
 0x304   : > { %v2939_v31 = vpop.eup %2938 }
 0x305   : > { %v4088_v21 = vpack.c.bf16 %v2939_v31, %v2937_v27  ;;  %2940 = vpow2.f32 %v2069_v38  ;;  %v1989_v36 = vsub.f32 0.0, %v1957_v23  ;;  %v1990_v63 = vsub.f32 0.0, %v1958_v54  ;;  %v1904_v13 = vpop.f32.mrf.mxu1 }
 0x306   : > { %2942 = vpow2.f32 %v2071_v49  ;;  %v1855_v15 = vpop.f32.mrf.mxu0  ;;  %v4090_v42 = vadd.f32 %v1904_v13, %v1729_v45 }
 0x307   : > { %v2146_v18 = vunpack.c.h.bf16 %v4088_v21  ;;  %v2019_v30 = vpack.c.bf16 %v1990_v63, %v1989_v36  ;;  %v4093_v62 = vadd.f32 %v1855_v15, %v1729_v45 }
 0x309   : > { %v2178_v52 = vadd.f32 1.0, %v2146_v18  ;;  %v2037_v47 = vunpack.c.l.bf16 %v2019_v30  ;;  %v2038_v32 = vunpack.c.h.bf16 %v2019_v30  ;;  %v1940_v25 = vpack.c.bf16 %v4090_v42, %v4093_v62 }
 0x30b   : > { %v2941_v53 = vpop.eup %2940  ;;  %2944 = vrcp.f32 %v2178_v52  ;;  %v2073_v8 = vmul.f32 1.442695, %v2037_v47  ;;  %v2075_v43 = vmul.f32 1.442695, %v2038_v32  ;;  %v1959_v39 = vunpack.c.l.bf16 %v1940_v25 }
 0x30c   : > { %v2943_v60 = vpop.eup %2942  ;;  %v1960_v10 = vunpack.c.h.bf16 %v1940_v25 }
 0x30d   : > { %v4097_v40 = vpack.c.bf16 %v2943_v60, %v2941_v53  ;;  %2946 = vpow2.f32 %v2073_v8  ;;  %v1991_v4 = vsub.f32 0.0, %v1959_v39  ;;  %v1907_v1 = vpop.f32.mrf.mxu1 }
 0x30e   : > { %2948 = vpow2.f32 %v2075_v43  ;;  %v1992_v16 = vsub.f32 0.0, %v1960_v10  ;;  %v1858_v14 = vpop.f32.mrf.mxu0  ;;  %v4099_v5 = vadd.f32 %v1907_v1, %v1734_v37 }
 0x30f   : > { %v2148_v34 = vunpack.c.h.bf16 %v4097_v40  ;;  %v4102_v29 = vadd.f32 %v1858_v14, %v1734_v37 }
 0x310   : > { %v2020_v58 = vpack.c.bf16 %v1992_v16, %v1991_v4 }
 0x311   : > { %v2945_v0 = vpop.eup %2944  ;;  %v2180_v19 = vadd.f32 1.0, %v2148_v34  ;;  %v1941_v20 = vpack.c.bf16 %v4099_v5, %v4102_v29 }
 0x312   : > { %v4107_v44 = vmul.f32 %v2945_v0, %v4068_v28  ;;  %v2039_v35 = vunpack.c.l.bf16 %v2020_v58  ;;  %v2040_v3 = vunpack.c.h.bf16 %v2020_v58 }
 0x313   : > { %v2947_v46 = vpop.eup %2946  ;;  %2950 = vrcp.f32 %v2180_v19  ;;  %v1961_v50 = vunpack.c.l.bf16 %v1941_v20  ;;  %v1962_v9 = vunpack.c.h.bf16 %v1941_v20 }
 0x314   : > { %v2949_v57 = vpop.eup %2948  ;;  %v2077_v24 = vmul.f32 1.442695, %v2039_v35  ;;  %v2079_v27 = vmul.f32 1.442695, %v2040_v3 }
 0x315   : > { %v4109_v37 = vpack.c.bf16 %v2949_v57, %v2947_v46  ;;  %v1993_v38 = vsub.f32 0.0, %v1961_v50  ;;  %v1994_v49 = vsub.f32 0.0, %v1962_v9  ;;  %v1909_v23 = vpop.f32.mrf.mxu1 }
 0x316   : > { %2952 = vpow2.f32 %v2077_v24  ;;  %v1860_v54 = vpop.f32.mrf.mxu0  ;;  %v4112_v31 = vadd.f32 %v1909_v23, %v4064_v11 }
 0x317   : > { %v2150_v28 = vunpack.c.h.bf16 %v4109_v37  ;;  %2954 = vpow2.f32 %v2079_v27  ;;  %v2021_v45 = vpack.c.bf16 %v1994_v49, %v1993_v38  ;;  %v4116_v36 = vadd.f32 %v1860_v54, %v4064_v11 }
 0x319   : > { %v2951_v63 = vpop.eup %2950  ;;  %v2182_v13 = vadd.f32 1.0, %v2150_v28  ;;  %v2041_v15 = vunpack.c.l.bf16 %v2021_v45  ;;  %v2042_v18 = vunpack.c.h.bf16 %v2021_v45  ;;  %v1942_v30 = vpack.c.bf16 %v4112_v31, %v4116_v36 }
 0x31a   : > { %v4121_v52 = vmul.f32 %v2951_v63, %v4076_v55 }
 0x31b   : > { %2956 = vrcp.f32 %v2182_v13  ;;  %v2081_v47 = vmul.f32 1.442695, %v2041_v15  ;;  %v2083_v32 = vmul.f32 1.442695, %v2042_v18  ;;  %v1963_v25 = vunpack.c.l.bf16 %v1942_v30 }
 0x31c   : > { %v2953_v53 = vpop.eup %2952  ;;  %v1964_v8 = vunpack.c.h.bf16 %v1942_v30 }
 0x31d   : > { %v2955_v43 = vpop.eup %2954  ;;  %2958 = vpow2.f32 %v2081_v47  ;;  %v1995_v11 = vsub.f32 0.0, %v1963_v25  ;;  %v1912_v39 = vpop.f32.mrf.mxu1 }
 0x31e   : > { %v4123_v60 = vpack.c.bf16 %v2955_v43, %v2953_v53  ;;  %2960 = vpow2.f32 %v2083_v32  ;;  %v1996_v10 = vsub.f32 0.0, %v1964_v8  ;;  %v1863_v4 = vpop.f32.mrf.mxu0  ;;  %v4126_v1 = vadd.f32 %v1912_v39, %v4055_v7 }
 0x31f   : > { %v4129_v55 = vadd.f32 %v1863_v4, %v4055_v7 }
 0x320   : > { %v2152_v16 = vunpack.c.h.bf16 %v4123_v60  ;;  %v2022_v14 = vpack.c.bf16 %v1996_v10, %v1995_v11  ;;  %v2145_v11 = vunpack.c.l.bf16 %v4088_v21 }
 0x321   : > { %v2957_v34 = vpop.eup %2956  ;;  %v1943_v58 = vpack.c.bf16 %v4126_v1, %v4129_v55 }
 0x322   : > { %v4135_v0 = vmul.f32 %v2957_v34, %v4082_v26  ;;  %v2184_v19 = vadd.f32 1.0, %v2152_v16  ;;  %v2043_v20 = vunpack.c.l.bf16 %v2022_v14  ;;  %v2044_v35 = vunpack.c.h.bf16 %v2022_v14 }
 0x323   : > { %v2959_v3 = vpop.eup %2958  ;;  %v1965_v46 = vunpack.c.l.bf16 %v1943_v58  ;;  %v1966_v50 = vunpack.c.h.bf16 %v1943_v58  ;;  %v2177_v58 = vadd.f32 1.0, %v2145_v11 }
 0x324   : > { %v2961_v9 = vpop.eup %2960  ;;  %2962 = vrcp.f32 %v2184_v19  ;;  %v2085_v7 = vmul.f32 1.442695, %v2043_v20  ;;  %v2087_v57 = vmul.f32 1.442695, %v2044_v35 }
 0x325   : > { %v4137_v24 = vpack.c.bf16 %v2961_v9, %v2959_v3  ;;  %v1997_v27 = vsub.f32 0.0, %v1965_v46  ;;  %v1998_v38 = vsub.f32 0.0, %v1966_v50  ;;  %v1914_v49 = vpop.f32.mrf.mxu1 }
 0x326   : > { %2964 = vpow2.f32 %v2085_v7  ;;  %v1865_v23 = vpop.f32.mrf.mxu0  ;;  %v4140_v26 = vadd.f32 %v1914_v49, %v4062_v51 }
 0x327   : > { %v2154_v54 = vunpack.c.h.bf16 %v4137_v24  ;;  %2966 = vpow2.f32 %v2087_v57  ;;  %v2023_v28 = vpack.c.bf16 %v1998_v38, %v1997_v27  ;;  %v4144_v45 = vadd.f32 %v1865_v23, %v4062_v51 }
 0x328   : > { %v2147_v23 = vunpack.c.l.bf16 %v4097_v40 }
 0x329   : > { %v2186_v63 = vadd.f32 1.0, %v2154_v54  ;;  %v2045_v13 = vunpack.c.l.bf16 %v2023_v28  ;;  %v2046_v15 = vunpack.c.h.bf16 %v2023_v28  ;;  %v1944_v18 = vpack.c.bf16 %v4140_v26, %v4144_v45 }
 0x32a   : > { %v2963_v30 = vpop.eup %2962 }
 0x32b   : > { %v4149_v47 = vmul.f32 %v2963_v30, %v4090_v42  ;;  %2968 = vrcp.f32 %v2186_v63  ;;  %v2089_v32 = vmul.f32 1.442695, %v2045_v13  ;;  %v2091_v25 = vmul.f32 1.442695, %v2046_v15 }
 0x32c   : > { %v2965_v53 = vpop.eup %2964  ;;  %v1967_v8 = vunpack.c.l.bf16 %v1944_v18  ;;  %v1968_v43 = vunpack.c.h.bf16 %v1944_v18  ;;  %v2179_v15 = vadd.f32 1.0, %v2147_v23 }
 0x32d   : > { %v2967_v51 = vpop.eup %2966  ;;  %2970 = vpow2.f32 %v2089_v32  ;;  %v1917_v39 = vpop.f32.mrf.mxu1 }
 0x32e   : > { %v4152_v10 = vpack.c.bf16 %v2967_v51, %v2965_v53  ;;  %2972 = vpow2.f32 %v2091_v25  ;;  %v1999_v4 = vsub.f32 0.0, %v1967_v8  ;;  %v2000_v16 = vsub.f32 0.0, %v1968_v43  ;;  %v1868_v14 = vpop.f32.mrf.mxu0 }
 0x32f   : > { %v4155_v42 = vadd.f32 %v1868_v14, %v4053_v41  ;;  %v4158_v34 = vadd.f32 %v1917_v39, %v4053_v41  ;;  %2974 = vrcp.f32 %v2177_v58 }
 0x330   : > { %v2156_v19 = vunpack.c.h.bf16 %v4152_v10  ;;  %v2024_v20 = vpack.c.bf16 %v2000_v16, %v1999_v4  ;;  %v2149_v16 = vunpack.c.l.bf16 %v4109_v37 }
 0x331   : > { %v2969_v21 = vpop.eup %2968  ;;  %v1945_v35 = vpack.c.bf16 %v4158_v34, %v4155_v42 }
 0x332   : > { %v4164_v3 = vmul.f32 %v2969_v21, %v4099_v5  ;;  %v2188_v46 = vadd.f32 1.0, %v2156_v19  ;;  %v2047_v50 = vunpack.c.l.bf16 %v2024_v20  ;;  %v2048_v9 = vunpack.c.h.bf16 %v2024_v20 }
 0x333   : > { %v2971_v7 = vpop.eup %2970  ;;  %v1969_v57 = vunpack.c.l.bf16 %v1945_v35  ;;  %v1970_v27 = vunpack.c.h.bf16 %v1945_v35  ;;  %v2181_v21 = vadd.f32 1.0, %v2149_v16 }
 0x334   : > { %v2973_v41 = vpop.eup %2972  ;;  %2976 = vrcp.f32 %v2188_v46  ;;  %v2093_v38 = vmul.f32 1.442695, %v2047_v50  ;;  %v2095_v49 = vmul.f32 1.442695, %v2048_v9 }
 0x335   : > { %v4167_v54 = vpack.c.bf16 %v2973_v41, %v2971_v7  ;;  %v2001_v28 = vsub.f32 0.0, %v1969_v57  ;;  %v2002_v63 = vsub.f32 0.0, %v1970_v27  ;;  %v1919_v13 = vpop.f32.mrf.mxu1  ;;  %v2975_v18 = vpop.eup %2974 }
 0x336   : > { %2978 = vpow2.f32 %v2093_v38  ;;  %v1870_v5 = vpop.f32.mrf.mxu0  ;;  %v4171_v25 = vmul.f32 %v2975_v18, %v4070_v48 }
 0x337   : > { %v2158_v30 = vunpack.c.h.bf16 %v4167_v54  ;;  %2980 = vpow2.f32 %v2095_v49  ;;  %v2025_v32 = vpack.c.bf16 %v2002_v63, %v2001_v28 }
 0x338   : > { %2982 = vrcp.f32 %v2179_v15  ;;  %v4195_v15 = vadd.f32 %v1870_v5, %v4072_v6 }
 0x339   : > { %v2190_v53 = vadd.f32 1.0, %v2158_v30  ;;  %v2049_v8 = vunpack.c.l.bf16 %v2025_v32  ;;  %v2050_v40 = vunpack.c.h.bf16 %v2025_v32 }
 0x33a   : > { %v2977_v43 = vpop.eup %2976 }
 0x33b   : > { %v4174_v11 = vmul.f32 %v2977_v43, %v4112_v31  ;;  %2984 = vrcp.f32 %v2190_v53  ;;  %v2097_v51 = vmul.f32 1.442695, %v2049_v8  ;;  %v2099_v39 = vmul.f32 1.442695, %v2050_v40 }
 0x33c   : > { %v2979_v4 = vpop.eup %2978  ;;  %v2153_v8 = vunpack.c.l.bf16 %v4137_v24 }
 0x33d   : > { %v2981_v14 = vpop.eup %2980  ;;  %2986 = vpow2.f32 %v2097_v51  ;;  %v1922_v58 = vpop.f32.mrf.mxu1 }
 0x33e   : > { %v2983_v19 = vpop.eup %2982  ;;  %v4177_v20 = vpack.c.bf16 %v2981_v14, %v2979_v4  ;;  %2988 = vpow2.f32 %v2099_v39  ;;  %v1873_v48 = vpop.f32.mrf.mxu0  ;;  %v2185_v51 = vadd.f32 1.0, %v2153_v8 }
 0x33f   : > { %v4180_v35 = vmul.f32 %v2983_v19, %v4078_v2  ;;  %2990 = vrcp.f32 %v2181_v21  ;;  %v2151_v2 = vunpack.c.l.bf16 %v4123_v60  ;;  %v4226_v21 = vadd.f32 %v1873_v48, %v4066_v33 }
 0x340   : > { %v2160_v31 = vunpack.c.h.bf16 %v4177_v20 }
 0x341   : > { %v2985_v46 = vpop.eup %2984  ;;  %v2183_v23 = vadd.f32 1.0, %v2151_v2 }
 0x342   : > { %v4188_v9 = vmul.f32 %v2985_v46, %v4126_v1  ;;  %v2192_v7 = vadd.f32 1.0, %v2160_v31  ;;  %v4198_v1 = vadd.f32 %v1919_v13, %v4072_v6  ;;  %v4229_v31 = vadd.f32 %v1922_v58, %v4066_v33 }
 0x343   : > { %v2987_v57 = vpop.eup %2986  ;;  %v2155_v46 = vunpack.c.l.bf16 %v4152_v10 }
 0x344   : > { %v2989_v27 = vpop.eup %2988  ;;  %2992 = vrcp.f32 %v2192_v7  ;;  %v1946_v53 = vpack.c.bf16 %v4198_v1, %v4195_v15  ;;  %v1947_v10 = vpack.c.bf16 %v4229_v31, %v4226_v21 }
 0x345   : > { %v4191_v41 = vpack.c.bf16 %v2989_v27, %v2987_v57  ;;  %v1924_v38 = vpop.f32.mrf.mxu1  ;;  %v2991_v28 = vpop.eup %2990  ;;  %2994 = vrcp.f32 %v2183_v23  ;;  %v2187_v48 = vadd.f32 1.0, %v2155_v46 }
 0x346   : > { %v1875_v49 = vpop.f32.mrf.mxu0  ;;  %v4201_v18 = vmul.f32 %v2991_v28, %v4084_v61  ;;  %v1971_v6 = vunpack.c.l.bf16 %v1946_v53  ;;  %v1972_v13 = vunpack.c.h.bf16 %v1946_v53  ;;  %v1974_v53 = vunpack.c.h.bf16 %v1947_v10 }
 0x347   : > { %v2162_v63 = vunpack.c.h.bf16 %v4191_v41  ;;  %v4233_v7 = vadd.f32 %v1875_v49, %v4051_v59 }
 0x348   : > { %v2003_v19 = vsub.f32 0.0, %v1971_v6 }
 0x349   : > { %v2194_v30 = vadd.f32 1.0, %v2162_v63 }
 0x34a   : > { %v2993_v60 = vpop.eup %2992 }
 0x34b   : > { %v4204_v32 = vmul.f32 %v2993_v60, %v4140_v26  ;;  %2996 = vrcp.f32 %v2194_v30  ;;  %v2995_v40 = vpop.eup %2994  ;;  %v1973_v60 = vunpack.c.l.bf16 %v1947_v10 }
 0x34c   : > { %v4210_v61 = vmul.f32 %v2995_v40, %v4093_v62  ;;  %2998 = vrcp.f32 %v2185_v51  ;;  %v2004_v62 = vsub.f32 0.0, %v1972_v13 }
 0x34d   : > { %v1927_v5 = vpop.f32.mrf.mxu1  ;;  %3000 = vrcp.f32 %v2187_v48 }
 0x34e   : > { %v1878_v43 = vpop.f32.mrf.mxu0  ;;  %v4223_v14 = vadd.f32 %v1927_v5, %v4044_v12  ;;  %v2026_v33 = vpack.c.bf16 %v2004_v62, %v2003_v19 }
 0x34f   : > { %v4220_v24 = vadd.f32 %v1878_v43, %v4044_v12 }
 0x350   : > { %v2051_v30 = vunpack.c.l.bf16 %v2026_v33  ;;  %v2052_v40 = vunpack.c.h.bf16 %v2026_v33  ;;  %v2006_v33 = vsub.f32 0.0, %v1974_v53  ;;  %v2159_v53 = vunpack.c.l.bf16 %v4177_v20 }
 0x351   : > { %v2997_v39 = vpop.eup %2996  ;;  %v1949_v12 = vpack.c.bf16 %v4223_v14, %v4220_v24 }
 0x352   : > { %v4217_v16 = vmul.f32 %v2997_v39, %v4158_v34  ;;  %v4236_v34 = vadd.f32 %v1924_v38, %v4051_v59  ;;  %v2999_v23 = vpop.eup %2998 }
 0x353   : > { %v4249_v59 = vmul.f32 %v2999_v23, %v4102_v29  ;;  %v1977_v28 = vunpack.c.l.bf16 %v1949_v12  ;;  %v1978_v63 = vunpack.c.h.bf16 %v1949_v12  ;;  %v3001_v13 = vpop.eup %3000  ;;  %v2005_v23 = vsub.f32 0.0, %v1973_v60 }
 0x354   : > { %v1948_v38 = vpack.c.bf16 %v4236_v34, %v4233_v7  ;;  %v4263_v48 = vmul.f32 %v3001_v13, %v4116_v36  ;;  %v2103_v60 = vmul.f32 1.442695, %v2052_v40 }
 0x355   : > { %v1929_v57 = vpop.f32.mrf.mxu1  ;;  %v2009_v51 = vsub.f32 0.0, %v1977_v28  ;;  %v2010_v39 = vsub.f32 0.0, %v1978_v63 }
 0x356   : > { %v1880_v27 = vpop.f32.mrf.mxu0  ;;  %v4241_v2 = vadd.f32 %v1929_v57, %v4049_v17  ;;  %v1975_v43 = vunpack.c.l.bf16 %v1948_v38  ;;  %v1976_v6 = vunpack.c.h.bf16 %v1948_v38 }
 0x357   : > { %v4246_v58 = vadd.f32 %v1880_v27, %v4049_v17  ;;  %v2157_v17 = vunpack.c.l.bf16 %v4167_v54  ;;  %v2101_v54 = vmul.f32 1.442695, %v2051_v30 }
 0x358   : > { %v2008_v63 = vsub.f32 0.0, %v1976_v6 }
 0x359   : > { %v1950_v49 = vpack.c.bf16 %v4241_v2, %v4246_v58  ;;  %v2189_v27 = vadd.f32 1.0, %v2157_v17 }
 0x35b   : > { %v1979_v8 = vunpack.c.l.bf16 %v1950_v49  ;;  %v1980_v5 = vunpack.c.h.bf16 %v1950_v49  ;;  %3002 = vrcp.f32 %v2189_v27  ;;  %v2277_v49 = vpack.c.bf16 %v4263_v48, %v4249_v59 }
 0x35c   : > { %3004 = vpow2.f32 %v2101_v54 }
 0x35d   : > { %v1932_v29 = vpop.f32.mrf.mxu1  ;;  %v2011_v19 = vsub.f32 0.0, %v1979_v8  ;;  %v2012_v62 = vsub.f32 0.0, %v1980_v5  ;;  %v2029_v5 = vpack.c.bf16 %v2010_v39, %v2009_v51 }
 0x35e   : > { %v1883_v46 = vpop.f32.mrf.mxu0  ;;  %v4260_v12 = vadd.f32 %v1932_v29, %v4042_v22  ;;  %v2027_v29 = vpack.c.bf16 %v2006_v33, %v2005_v23 }
 0x35f   : > { %v4257_v57 = vadd.f32 %v1883_v46, %v4042_v22  ;;  %v2030_v10 = vpack.c.bf16 %v2012_v62, %v2011_v19  ;;  %v2007_v22 = vsub.f32 0.0, %v1975_v43  ;;  %v2191_v43 = vadd.f32 1.0, %v2159_v53 }
 0x360   : > { %v2057_v51 = vunpack.c.l.bf16 %v2029_v5  ;;  %v2058_v20 = vunpack.c.h.bf16 %v2029_v5  ;;  %v2054_v53 = vunpack.c.h.bf16 %v2027_v29 }
 0x361   : > { %v1951_v38 = vpack.c.bf16 %v4260_v12, %v4257_v57  ;;  %v2059_v8 = vunpack.c.l.bf16 %v2030_v10  ;;  %v2060_v36 = vunpack.c.h.bf16 %v2030_v10  ;;  %v2028_v46 = vpack.c.bf16 %v2008_v63, %v2007_v22  ;;  %v3003_v6 = vpop.eup %3002 }
 0x362   : > { %3006 = vrcp.f32 %v2191_v43  ;;  %v4279_v54 = vmul.f32 %v3003_v6, %v4129_v55  ;;  %v2053_v22 = vunpack.c.l.bf16 %v2027_v29  ;;  %v2115_v5 = vmul.f32 1.442695, %v2058_v20 }
 0x363   : > { %v1981_v17 = vunpack.c.l.bf16 %v1951_v38  ;;  %v1982_v30 = vunpack.c.h.bf16 %v1951_v38  ;;  %v2117_v27 = vmul.f32 1.442695, %v2059_v8  ;;  %v2119_v39 = vmul.f32 1.442695, %v2060_v36  ;;  %v4283_v36 = vpop.eup %3004 }
 0x364   : > { %3008 = vpow2.f32 %v2103_v60  ;;  %v2055_v63 = vunpack.c.l.bf16 %v2028_v46  ;;  %v2056_v8 = vunpack.c.h.bf16 %v2028_v46  ;;  %v2161_v60 = vunpack.c.l.bf16 %v4191_v41 }
 0x365   : > { %v2013_v13 = vsub.f32 0.0, %v1981_v17  ;;  %v2014_v19 = vsub.f32 0.0, %v1982_v30  ;;  %v1934_v62 = vpop.f32.mrf.mxu1  ;;  %3010 = vpow2.f32 %v2117_v27  ;;  %v2113_v17 = vmul.f32 1.442695, %v2057_v51 }
 0x366   : > { %v1885_v37 = vpop.f32.mrf.mxu0  ;;  %v4273_v50 = vadd.f32 %v1934_v62, %v4060_v56  ;;  %3012 = vpow2.f32 %v2119_v39  ;;  %v2111_v27 = vmul.f32 1.442695, %v2056_v8  ;;  %v2193_v6 = vadd.f32 1.0, %v2161_v60 }
 0x367   : > { %v2031_v10 = vpack.c.bf16 %v2014_v19, %v2013_v13  ;;  %v4276_v40 = vadd.f32 %v1885_v37, %v4060_v56  ;;  %v2109_v19 = vmul.f32 1.442695, %v2055_v63  ;;  %v2107_v41 = vmul.f32 1.442695, %v2054_v53 }
 0x368   : > { %v3007_v13 = vpop.eup %3006 }
 0x369   : > { %v2061_v23 = vunpack.c.l.bf16 %v2031_v10  ;;  %v2062_v33 = vunpack.c.h.bf16 %v2031_v10  ;;  %v1952_v38 = vpack.c.bf16 %v4273_v50, %v4276_v40  ;;  %v4287_v51 = vmul.f32 %v3007_v13, %v4144_v45 }
 0x36a   : > { %v3009_v46 = vpop.eup %3008  ;;  %v2105_v10 = vmul.f32 1.442695, %v2053_v22 }
 0x36b   : > { %v2121_v56 = vmul.f32 1.442695, %v2061_v23  ;;  %v2123_v37 = vmul.f32 1.442695, %v2062_v33  ;;  %v1983_v30 = vunpack.c.l.bf16 %v1952_v38  ;;  %v1984_v55 = vunpack.c.h.bf16 %v1952_v38  ;;  %v3011_v39 = vpop.eup %3010 }
 0x36c   : > { %v3013_v23 = vpop.eup %3012  ;;  %v2279_v29 = vpack.c.bf16 %v4287_v51, %v4279_v54  ;;  %v2280_v33 = vpack.c.bf16 %v4204_v32, %v4188_v9  ;;  %v2138_v4 = vpack.c.bf16 %v3009_v46, %v4283_v36  ;;  %v2617_v9 = vld [vmem:[%s4389_s8] sm:$0xff]  ;;  %v4429_v32 = vpack.c.bf16 %v4180_v35, %v4171_v25 }
 0x36d   : > { %3014 = vpow2.f32 %v2121_v56  ;;  %v2015_v62 = vsub.f32 0.0, %v1983_v30  ;;  %v2016_v43 = vsub.f32 0.0, %v1984_v55  ;;  %v2337_v35 = vld [vmem:[%s412_s24] sm:$0xff] }
 0x36e   : > { %3016 = vpow2.f32 %v2123_v37  ;;  %v2164_v36 = vunpack.c.h.bf16 %v2138_v4 }
 0x36f   : > { %3018 = vpow2.f32 %v2113_v17  ;;  %v2032_v20 = vpack.c.bf16 %v2016_v43, %v2015_v62  ;;  %v2142_v17 = vpack.c.bf16 %v3013_v23, %v3011_v39 }
 0x370   : > { %3020 = vpow2.f32 %v2115_v5 }
 0x371   : > { %3022 = vrcp.f32 %v2193_v6  ;;  %v2063_v38 = vunpack.c.l.bf16 %v2032_v20  ;;  %v2064_v63 = vunpack.c.h.bf16 %v2032_v20  ;;  %v2172_v53 = vunpack.c.h.bf16 %v2142_v17 }
 0x372   : > { %3024 = vpow2.f32 %v2109_v19  ;;  %v2171_v43 = vunpack.c.l.bf16 %v2142_v17 }
 0x373   : > { %v3015_v8 = vpop.eup %3014  ;;  %3026 = vpow2.f32 %v2111_v27  ;;  %v2125_v22 = vmul.f32 1.442695, %v2063_v38  ;;  %v2127_v56 = vmul.f32 1.442695, %v2064_v63 }
 0x374   : > { %v3017_v45 = vpop.eup %3016  ;;  %3028 = vpow2.f32 %v2105_v10 }
 0x375   : > { %v3019_v37 = vpop.eup %3018  ;;  %3030 = vpow2.f32 %v2107_v41  ;;  %v2143_v30 = vpack.c.bf16 %v3017_v45, %v3015_v8  ;;  %v2204_v41 = vadd.f32 1.0, %v2172_v53  ;;  %v2203_v8 = vadd.f32 1.0, %v2171_v43 }
 0x376   : > { %v3021_v5 = vpop.eup %3020  ;;  %3032 = vpow2.f32 %v2125_v22 }
 0x377   : > { %v3023_v55 = vpop.eup %3022  ;;  %3034 = vpow2.f32 %v2127_v56  ;;  %v2141_v62 = vpack.c.bf16 %v3021_v5, %v3019_v37  ;;  %v2173_v6 = vunpack.c.l.bf16 %v2143_v30  ;;  %v2174_v10 = vunpack.c.h.bf16 %v2143_v30 }
 0x378   : > { %v3025_v60 = vpop.eup %3024  ;;  %v4294_v13 = vmul.f32 %v3023_v55, %v4155_v42  ;;  %3036 = vrcp.f32 %v2204_v41 }
 0x379   : > { %v3027_v19 = vpop.eup %3026  ;;  %v2169_v63 = vunpack.c.l.bf16 %v2141_v62  ;;  %v2205_v22 = vadd.f32 1.0, %v2173_v6  ;;  %v2170_v42 = vunpack.c.h.bf16 %v2141_v62  ;;  %v2206_v55 = vadd.f32 1.0, %v2174_v10 }
 0x37a   : > { %v3029_v27 = vpop.eup %3028  ;;  %v2140_v23 = vpack.c.bf16 %v3027_v19, %v3025_v60  ;;  %3038 = vrcp.f32 %v2203_v8  ;;  %v2163_v6 = vunpack.c.l.bf16 %v2138_v4 }
 0x37b   : > { %v3031_v39 = vpop.eup %3030  ;;  %v2201_v28 = vadd.f32 1.0, %v2169_v63  ;;  %3040 = vrcp.f32 %v2205_v22  ;;  %v2202_v43 = vadd.f32 1.0, %v2170_v42  ;;  %v2196_v63 = vadd.f32 1.0, %v2164_v36 }
 0x37c   : > { %v3033_v20 = vpop.eup %3032  ;;  %v2139_v45 = vpack.c.bf16 %v3031_v39, %v3029_v27  ;;  %v2167_v5 = vunpack.c.l.bf16 %v2140_v23  ;;  %v2168_v26 = vunpack.c.h.bf16 %v2140_v23  ;;  %3042 = vrcp.f32 %v2206_v55 }
 0x37d   : > { %v3035_v38 = vpop.eup %3034  ;;  %v2195_v41 = vadd.f32 1.0, %v2163_v6 }
 0x37e   : > { %v2144_v56 = vpack.c.bf16 %v3035_v38, %v3033_v20  ;;  %v2165_v53 = vunpack.c.l.bf16 %v2139_v45  ;;  %v2166_v19 = vunpack.c.h.bf16 %v2139_v45  ;;  %v2199_v27 = vadd.f32 1.0, %v2167_v5  ;;  %v3037_v62 = vpop.eup %3036 }
 0x37f   : > { %v2200_v46 = vadd.f32 1.0, %v2168_v26  ;;  %v2268_v5 = vmul.f32 %v3037_v62, %v4241_v2 }
 0x380   : > { %v2175_v37 = vunpack.c.l.bf16 %v2144_v56  ;;  %v2176_v17 = vunpack.c.h.bf16 %v2144_v56  ;;  %v2197_v39 = vadd.f32 1.0, %v2165_v53  ;;  %v3039_v10 = vpop.eup %3038  ;;  %v2198_v20 = vadd.f32 1.0, %v2166_v19 }
 0x381   : > { %v3041_v23 = vpop.eup %3040 }
 0x382   : > { %v2207_v30 = vadd.f32 1.0, %v2175_v37  ;;  %v2208_v60 = vadd.f32 1.0, %v2176_v17  ;;  %v3043_v38 = vpop.eup %3042  ;;  %v2269_v4 = vmul.f32 %v3041_v23, %v4257_v57  ;;  %v2267_v37 = vmul.f32 %v3039_v10, %v4246_v58 }
 0x384   : > { %3044 = vrcp.f32 %v2207_v30 }
 0x385   : > { %3046 = vrcp.f32 %v2208_v60 }
 0x386   : > { %3048 = vrcp.f32 %v2201_v28  ;;  %v2270_v28 = vmul.f32 %v3043_v38, %v4260_v12 }
 0x387   : > { %3050 = vrcp.f32 %v2202_v43 }
 0x388   : > { %3052 = vrcp.f32 %v2199_v27 }
 0x389   : > { %3054 = vrcp.f32 %v2200_v46 }
 0x38a   : > { %v3045_v8 = vpop.eup %3044  ;;  %3056 = vrcp.f32 %v2197_v39 }
 0x38b   : > { %v3047_v45 = vpop.eup %3046  ;;  %3058 = vrcp.f32 %v2198_v20  ;;  %v2271_v26 = vmul.f32 %v3045_v8, %v4276_v40 }
 0x38c   : > { %v3049_v22 = vpop.eup %3048  ;;  %v2272_v56 = vmul.f32 %v3047_v45, %v4273_v50  ;;  %3060 = vrcp.f32 %v2195_v41 }
 0x38d   : > { %v3051_v42 = vpop.eup %3050  ;;  %3062 = vrcp.f32 %v2196_v63  ;;  %v2287_v55 = vpack.c.bf16 %v2271_v26, %v2269_v4  ;;  %v2265_v57 = vmul.f32 %v3049_v22, %v4220_v24 }
 0x38e   : > { %v3053_v17 = vpop.eup %3052  ;;  %v2288_v30 = vpack.c.bf16 %v2272_v56, %v2270_v28  ;;  %v2266_v53 = vmul.f32 %v3051_v42, %v4223_v14 }
 0x38f   : > { %v3055_v60 = vpop.eup %3054  ;;  %2309 = vmatpush.bf16.msra.mxu2 %v2287_v55  ;;  %v2285_v50 = vpack.c.bf16 %v2267_v37, %v2265_v57  ;;  %v2263_v19 = vmul.f32 %v3053_v17, %v4233_v7 }
 0x390   : > { %v3057_v40 = vpop.eup %3056  ;;  %2323 = vmatpush.bf16.msra.mxu3 %v2288_v30  ;;  %v2264_v27 = vmul.f32 %v3055_v60, %v4236_v34  ;;  %v2286_v58 = vpack.c.bf16 %v2268_v5, %v2266_v53 }
 0x391   : > { %v3059_v12 = vpop.eup %3058  ;;  %v2261_v2 = vmul.f32 %v3057_v40, %v4226_v21 }
 0x392   : > { %v3061_v43 = vpop.eup %3060  ;;  %v2262_v36 = vmul.f32 %v3059_v12, %v4229_v31 }
 0x393   : > { %v3063_v6 = vpop.eup %3062  ;;  %2310 = vmatpush.bf16.msra.mxu2 %v2285_v50  ;;  %v2283_v24 = vpack.c.bf16 %v2263_v19, %v2261_v2  ;;  %v2259_v46 = vmul.f32 %v3061_v43, %v4195_v15  ;;  %v4426_v15 = vpack.c.bf16 %v4174_v11, %v4164_v3  ;;  %v4430_v3 = vpack.c.bf16 %v4121_v52, %v4107_v44  ;;  %v2296_v11 = vpop.permute.xlu0 %2295  ;;  %v2338_v44 = vld [vmem:[%s412_s24 + $0x8] sm:$0xff]  ;;  %s3080_s24 = scalar_lea.hbm %s3079_s22, 16 }
 0x394   : > { %2324 = vmatpush.bf16.msra.mxu3 %v2286_v58  ;;  %v2260_v14 = vmul.f32 %v3063_v6, %v4198_v1  ;;  %v2284_v62 = vpack.c.bf16 %v2264_v27, %v2262_v36  ;;  %v4427_v1 = vpack.c.bf16 %v4210_v61, %v4201_v18  ;;  %v2301_v52 = vpop.permute.xlu1 %2300  ;;  %p3081_p12 = scmp.ne.s32.totalorder %s3079_s22, %s3080_s24  ;;  %p3086_p2 = scmp.lt.s32.totalorder %s3084_s29, %s3080_s24 }
 0x395   : > { %v2281_v7 = vpack.c.bf16 %v2259_v46, %v4294_v13 }
 0x396   : > { %v2282_v34 = vpack.c.bf16 %v2260_v14, %v4217_v16  ;;  %v4428_v16 = vpack.c.bf16 %v4149_v47, %v4135_v0  ;;  %p3082_p13 = pnand %p3081_p12, %p3240_p4  ;;  %p3087_p3 = por %p3086_p2, %p3085_p1 }
 0x397   : > { %2311 = vmatpush.bf16.msra.mxu2 %v2283_v24 }
 0x398   : > { %2325 = vmatpush.bf16.msra.mxu3 %v2284_v62  ;;  %p3083_p0 = pneg %p3082_p13 }
 0x39a   : > { %p3088_p5 = pnand %p3087_p3, %p3083_p0 }
 0x39b   : > { %2312 = vmatpush.bf16.msra.mxu2 %v2281_v7 }
 0x39c   : > { %2326 = vmatpush.bf16.msra.mxu3 %v2282_v34 }
 0x39f   : > { %2313 = vmatpush.bf16.msra.mxu2 %v2279_v29 }
 0x3a0   : > { %2327 = vmatpush.bf16.msra.mxu3 %v2280_v33 }
 0x3a3   : > { %2314 = vmatpush.bf16.msra.mxu2 %v2277_v49 }
 0x3a4   : > { %2328 = vmatpush.bf16.msra.mxu3 %v4426_v15 }
 0x3a7   : > { %2315 = vmatpush.bf16.msra.mxu2 %v4427_v1 }
 0x3a8   : > { %2329 = vmatpush.bf16.msra.mxu3 %v4428_v16 }
 0x3ab   : > { %2316 = vmatpush.bf16.msra.mxu2 %v4429_v32 }
 0x3ac   : > { %2330 = vmatpush.bf16.msra.mxu3 %v4430_v3 }
 0x3ae   : > { %2317 = vmatmul.bf16.vlgmr.msra.gmra.mxu2 %v2617_v9 }
 0x3af   : > { %2331 = vmatmul.bf16.vlgmr.msra.gmra.mxu3 %v2617_v9 }
 0x431   : > { %v2318_v18 = vpop.f32.mrf.mxu2 }
 0x432   : > { %v2319_v0 = vadd.f32 %v2318_v18, %v2296_v11  ;;  %v2332_v47 = vpop.f32.mrf.mxu3 }
 0x433   : > { %v2333_v61 = vadd.f32 %v2332_v47, %v2296_v11 }
 0x434   : > { %v2339_v25 = vadd.f32 1.0, %v2319_v0 }
 0x435   : > { %v2340_v21 = vadd.f32 1.0, %v2333_v61 }
 0x436   : > { %v2341_v59 = vmul.f32 %v2339_v25, %v2337_v35 }
 0x437   : > { %v2342_v54 = vmul.f32 %v2340_v21, %v2338_v44 }
 0x439   : > { %v2320_v31 = vpop.f32.mrf.mxu2 }
 0x43a   : > { %v2321_v48 = vadd.f32 %v2320_v31, %v2301_v52  ;;  %v2334_v49 = vpop.f32.mrf.mxu3 }
 0x43b   : > { %v2335_v51 = vadd.f32 %v2334_v49, %v2301_v52 }
 0x43c   : > { %v2343_v29 = vadd.f32 %v2341_v59, %v2321_v48 }
 0x43d   : > { %v2344_v33 = vadd.f32 %v2342_v54, %v2335_v51 }
 0x43e   : > { %2345 = vst [vmem:[%s403_s19] sm:$0xff] %v2343_v29 }
 0x43f   : > { %2346 = vst [vmem:[%s403_s19 + $0x8] sm:$0xff] %v2344_v33 }
 0x440   : > { %3091 = shalt.err (!%p3088_p5)
}
 0x441   : > { %2621 = dma.vmem_to_hbm [thread:$0]  (%p3240_p4), %s2364_s20, 256, %s2366_s11, %s2348_s16  }
 0x442 PF: > { %p2627_p6 = scmp.ge.s32.totalorder %s3142_s18, 2  ;;  %s2377_s12 = sand.u32 1, %s3122_s13  }
 0x443   : > { %s2378_s19 = scalar_lea.sflag [#allocation3], %s2377_s12 }
 0x444   : > { %p2624_p7 = pnand %p2627_p6, %p3247_p8 }
 0x446   : > { %p2625_p9 = pneg %p2624_p7 }
 0x448   : > { %3117 = dma.done.wait (%p2625_p9), %s2378_s19, 256  }
 0x449   : > { %3119 = vsyncadd (%p2625_p9), %s2378_s19, 4294967040  ;;  %s23_s18 = sadd.s32 1, %s3142_s18   ;;  %s4431_s23 = sld [smem:[#allocation5_spill]] }
 0x44a   : > { %p20_p10 = scmp.ge.s32.totalorder %s23_s18, 4   ;;  %s4432_s13 = smov %s3126_s14 }
 0x44b   : > { %s4433_s14 = smov %s3130_s15  ;;  %s4434_s15 = smov %s3253_s26 }
 0x44c   : > { %s4435_s16 = smov %s3138_s17  ;;  %22 = sbr.rel (!%p20_p10) target bundleno = 4 (0x4), region = 98 }
 0x44f   : > { %s4436_s17 = smov %s4431_s23 }
 0x451   :  { %2384 = vsyncpa [#allocation3], 1 }
 0x452   :  { %2386 = vsyncpa [#allocation3 + $0x1], 1 }

// kernel: tpu_custom_call.1
= control target key start
LH: loop header
LB: loop body
LE: loop exit
PB: predicated region body
PF: predicated region fallthrough
CT: control target
= control target key end

     0   :  { %15 = vsyncpa [#allocation3], 0  ;;  %s4381_s0 = inlined_call_operand.vmem [shape: f32[2,8,256], index: 0, kind: input, shape index: {}]   ;;  %s4382_s1 = inlined_call_operand.vmem [shape: f32[2,4,256], index: 1, kind: input, shape index: {}]   ;;  %s4383_s2 = inlined_call_operand.vmem [shape: bf16[128,4], index: 2, kind: input, shape index: {}]   ;;  %s4384_s3 = inlined_call_operand.vmem [shape: f32[128,1], index: 3, kind: input, shape index: {}]   ;;  %s4385_s4 = inlined_call_operand.vmem [shape: bf16[128,128], index: 4, kind: input, shape index: {}]   ;;  %s4386_s5 = inlined_call_operand.vmem [shape: f32[128,1], index: 5, kind: input, shape index: {}]   ;;  %s4387_s6 = inlined_call_operand.vmem [shape: bf16[128,128], index: 6, kind: input, shape index: {}]   ;;  %s4388_s7 = inlined_call_operand.vmem [shape: f32[128,1], index: 7, kind: input, shape index: {}]   ;;  %s4389_s8 = inlined_call_operand.vmem [shape: bf16[16,128], index: 8, kind: input, shape index: {}]   ;;  %s4390_s9 = inlined_call_operand.vmem [shape: f32[16,1], index: 9, kind: input, shape index: {}]   ;;  %s4391_s10 = inlined_call_operand.hbm [shape: f32[2,8,256], index: 10, kind: output, shape index: {}]  }
   0x1   :  { %17 = vsyncpa [#allocation3 + $0x1], 0  ;;  %s3200_s13 = smov 0   ;;  %s3202_s14 = smov 0  }
   0x2   :  { %s3204_s15 = smov 0   ;;  %s3206_s16 = smov 0  }
   0x3   :  { %s3208_s17 = smov 0   ;;  %s3210_s18 = smov 0  }
   0x4 LB: > { %s2460_s19 = sadd.s32 4294967295, %s3142_s18   ;;  %s2461_s20 = sadd.s32 4294967294, %s3142_s18   ;;  %s3142_s18 = sphi %s3210_s18, %s23_s18   ;;  %s3138_s17 = sphi %s3208_s17, %s4436_s17   ;;  %s3134_s16 = sphi %s3206_s16, %s4435_s16   ;;  %s3130_s15 = sphi %s3204_s15, %s4434_s15   ;;  %s3126_s14 = sphi %s3202_s14, %s4433_s14   ;;  %s3122_s13 = sphi %s3200_s13, %s4432_s13  }
   0x5   : > { %s35_s21 = sadd.s32 1, %s3138_s17  ;;  %s268_s22 = sadd.s32 1, %s3130_s15 }
   0x6   : > { %p37_p0 = scmp.ge.s32.totalorder %s35_s21, 2  ;;  %p278_p1 = scmp.ne.s32.totalorder %s3130_s15, %s3126_s14 }
   0x7   : > { %p279_p2 = scmp.eq.s32.totalorder %s2460_s19, 1  ;;  %p284_p3 = scmp.ne.s32.totalorder %s3126_s14, %s3122_s13 }
   0x8   : > { %s4438_s21 = smov (%p37_p0, %s35_s21), 0  ;;  %p285_p5 = scmp.eq.s32.totalorder %s2461_s20, 1 }
   0x9   : > { %4400 = sst [smem:[#allocation5_spill]] %s4438_s21  ;;  %p3240_p4 = por %p279_p2, %p278_p1 }
   0xa   : > { %s263_s24 = ssub.s32 %s3138_s17, %s4438_s21  ;;  %p2464_p6 = scmp.ge.s32.totalorder %s3142_s18, 1 }
   0xb   : > { %p266_p7 = scmp.eq.s32.totalorder %s263_s24, 0  ;;  %p3247_p8 = por %p285_p5, %p284_p3 }
   0xc   : > { %p353_p9 = scmp.lt.s32.totalorder %s3142_s18, 3 }
   0xd   : > { %s3253_s26 = scalar_select %p266_p7, %s3130_s15, %s268_s22  }
   0xe   : > { %p354_p10 = pnand %p2464_p6, %p353_p9 }
  0x10   : > { %357 = sbr.rel (%p354_p10) target bundleno = 1090 (0x442), region = 60 }
  0x15   : > { %v465_v0 = vld [vmem:[%s4384_s3 + $0x70] sm:$0xff]  ;;  %v463_v1 = vld [vmem:[%s4384_s3 + $0x60] sm:$0xff]  ;;  %p405_p11 = scmp.lt.s32.totalorder %s3134_s16, 1  ;;  %v3144_v3 = vmov 0   ;;  %v464_v5 = vld [vmem:[%s4384_s3 + $0x68] sm:$0xff]  ;;  %vm612_vm0 = vcmask 1041408  }
  0x16   : > { %v461_v2 = vld [vmem:[%s4384_s3 + $0x50] sm:$0xff]  ;;  %2679 = vset.pattern.permute.xlu2 %v3144_v3  ;;  %2678 = vset.pattern.permute.xlu1 %v3144_v3  ;;  %v466_v6 = vld [vmem:[%s4384_s3 + $0x78] sm:$0xff]  ;;  %v460_v10 = vld [vmem:[%s4384_s3 + $0x48] sm:$0xff]  ;;  %vm587_vm1 = vcmask 31744   ;;  %s401_s12 = sand.u32 1, %s3126_s14   ;;  %s2618_s28 = sshll.u32 %s3134_s16, 4 }
  0x17   : > { %2677 = vset.pattern.permute.xlu0 %v3144_v3  ;;  %529 = vperm.xlu1 %2678, %v463_v1   ;;  %s3266_s19 = scalar_select %p405_p11, %s3134_s16, 1  ;;  %v462_v7 = vld [vmem:[%s4384_s3 + $0x58] sm:$0xff]  ;;  %v459_v13 = vld [vmem:[%s4384_s3 + $0x40] sm:$0xff]  ;;  %v457_v14 = vld [vmem:[%s4384_s3 + $0x30] sm:$0xff] }
  0x18   : > { %539 = vperm.xlu0 %2677, %v465_v0   ;;  %519 = vperm.xlu2 %2679, %v461_v2   ;;  %v2593_v17 = vld [vmem:[%s4383_s2] sm:$0xff]  ;;  %v2598_v18 = vld [vmem:[%s4383_s2 + $0x28] sm:$0xff]  ;;  %v458_v20 = vld [vmem:[%s4384_s3 + $0x38] sm:$0xff]  ;;  %s2361_s30 = scalar_lea.hbm %s4391_s10, %s2618_s28  ;;  %s2348_s16 = scalar_lea.sflag [#allocation3], %s401_s12 }
  0x19   : > { %s2592_s20 = sshll.u32 %s3266_s19, 3  ;;  %v455_v19 = vld [vmem:[%s4384_s3 + $0x20] sm:$0xff]  ;;  %v456_v21 = vld [vmem:[%s4384_s3 + $0x28] sm:$0xff]  ;;  %v454_v22 = vld [vmem:[%s4384_s3 + $0x18] sm:$0xff]  ;;  %s2591_s11 = sshll.u32 %s3266_s19, 4 }
  0x1a   : > { %s422_s27 = scalar_lea.vmem %s4382_s1, %s2592_s20  ;;  %v453_v23 = vld [vmem:[%s4384_s3 + $0x10] sm:$0xff]  ;;  %v451_v24 = vld [vmem:[%s4384_s3] sm:$0xff]  ;;  %v2594_v25 = vld [vmem:[%s4383_s2 + $0x8] sm:$0xff]  ;;  %s412_s24 = scalar_lea.vmem %s4381_s0, %s2591_s11 }
  0x1b   : > { %v426_v4 = vld [vmem:[%s422_s27] sm:$0xff]  ;;  %v2599_v26 = vld [vmem:[%s4383_s2 + $0x30] sm:$0xff]  ;;  %v452_v28 = vld [vmem:[%s4384_s3 + $0x8] sm:$0xff]  ;;  %s2465_s27 = sshll.u32 %s401_s12, 4  ;;  %s2365_s11 = sshll.u32 %s2361_s30, 4  ;;  %s2366_s11 = int_to_ptr.hbm [resolvable:$true] %s2365_s11 }
  0x1c   : > { %428 = vst [vmem:[#allocation1] ss:$2 sm:$0xff] %v426_v4  ;;  %v1099_v27 = vld [vmem:[%s4386_s5 + $0x70] sm:$0xff]  ;;  %v1100_v29 = vld [vmem:[%s4386_s5 + $0x78] sm:$0xff]  ;;  %v1098_v30 = vld [vmem:[%s4386_s5 + $0x68] sm:$0xff]  ;;  %s403_s19 = scalar_lea.vmem [#allocation2], %s2465_s27 }
  0x1d   : > { %v1097_v31 = vld [vmem:[%s4386_s5 + $0x60] sm:$0xff]  ;;  %v1095_v32 = vld [vmem:[%s4386_s5 + $0x50] sm:$0xff]  ;;  %v2600_v34 = vld [vmem:[%s4383_s2 + $0x38] sm:$0xff]  ;;  %s2363_s20 = sshll.u32 %s403_s19, 4  ;;  %s3078_s22 = sshra.s32 %s2366_s11, 4  ;;  %s2364_s20 = int_to_ptr.vmem [resolvable:$true] %s2363_s20  ;;  %s3079_s22 = int_to_ptr.hbm [resolvable:$true] %s3078_s22 }
  0x1e   : > { %v2595_v33 = vld [vmem:[%s4383_s2 + $0x10] sm:$0xff]  ;;  %v1093_v35 = vld [vmem:[%s4386_s5 + $0x40] sm:$0xff]  ;;  %v1096_v36 = vld [vmem:[%s4386_s5 + $0x58] sm:$0xff]  ;;  %s3084_s29 = scalar_lea.hbm %s4391_s10, 32  ;;  %p3085_p1 = scmp.lt.s32.totalorder %s3079_s22, %s4391_s10 }
  0x1f   : > { %534 = vperm.xlu1 %2678, %v464_v5   ;;  %v1094_v37 = vld [vmem:[%s4386_s5 + $0x48] sm:$0xff]  ;;  %v1092_v38 = vld [vmem:[%s4386_s5 + $0x38] sm:$0xff]  ;;  %v1091_v39 = vld [vmem:[%s4386_s5 + $0x30] sm:$0xff] }
  0x20   : > { %544 = vperm.xlu0 %2677, %v466_v6   ;;  %524 = vperm.xlu2 %2679, %v462_v7   ;;  %v1089_v40 = vld [vmem:[%s4386_s5 + $0x20] sm:$0xff]  ;;  %v2596_v41 = vld [vmem:[%s4383_s2 + $0x18] sm:$0xff]  ;;  %v1087_v42 = vld [vmem:[%s4386_s5 + $0x10] sm:$0xff] }
  0x21   : > { %v1090_v43 = vld [vmem:[%s4386_s5 + $0x28] sm:$0xff]  ;;  %v1088_v44 = vld [vmem:[%s4386_s5 + $0x18] sm:$0xff]  ;;  %v1085_v46 = vld [vmem:[%s4386_s5] sm:$0xff] }
  0x22   : > { %v1086_v45 = vld [vmem:[%s4386_s5 + $0x8] sm:$0xff]  ;;  %v1709_v47 = vld [vmem:[%s4388_s7 + $0x70] sm:$0xff]  ;;  %v2597_v48 = vld [vmem:[%s4383_s2 + $0x20] sm:$0xff] }
  0x23   : > { %v429_v8 = vld.sshfl [vmem:[#allocation1] sm:$0xff pattern:$0x75316420]  ;;  %v430_v9 = vld.sshfl [vmem:[#allocation1 + $0x8] sm:$0xff pattern:$0x75316420] }
  0x24   : > { %v433_v11 = vpack.c.bf16 %v429_v8, %v429_v8  ;;  %v434_v12 = vpack.c.bf16 %v430_v9, %v430_v9  ;;  %v1707_v49 = vld [vmem:[%s4388_s7 + $0x60] sm:$0xff]  ;;  %v1710_v50 = vld [vmem:[%s4388_s7 + $0x78] sm:$0xff]  ;;  %v1708_v51 = vld [vmem:[%s4388_s7 + $0x68] sm:$0xff] }
  0x25   : > { %v1706_v52 = vld [vmem:[%s4388_s7 + $0x58] sm:$0xff]  ;;  %v1705_v53 = vld [vmem:[%s4388_s7 + $0x50] sm:$0xff]  ;;  %v1703_v54 = vld [vmem:[%s4388_s7 + $0x40] sm:$0xff] }
  0x26   : > { %v614_v15 = vsel %vm612_vm0, %v433_v11, 0  ;;  %v617_v16 = vsel %vm612_vm0, %v434_v12, 0  ;;  %v1701_v55 = vld [vmem:[%s4388_s7 + $0x30] sm:$0xff]  ;;  %v1704_v56 = vld [vmem:[%s4388_s7 + $0x48] sm:$0xff]  ;;  %v1702_v57 = vld [vmem:[%s4388_s7 + $0x38] sm:$0xff] }
  0x27   : > { %514 = vperm.xlu1 %2678, %v460_v10   ;;  %626 = vmatpush.bf16.msra.mxu0 %v614_v15  ;;  %v1700_v59 = vld [vmem:[%s4388_s7 + $0x28] sm:$0xff]  ;;  %v1699_v60 = vld [vmem:[%s4388_s7 + $0x20] sm:$0xff]  ;;  %v1697_v61 = vld [vmem:[%s4388_s7 + $0x10] sm:$0xff] }
  0x28   : > { %509 = vperm.xlu0 %2677, %v459_v13   ;;  %499 = vperm.xlu2 %2679, %v457_v14   ;;  %v1695_v0 = vld [vmem:[%s4388_s7] sm:$0xff]  ;;  %v1698_v1 = vld [vmem:[%s4388_s7 + $0x18] sm:$0xff]  ;;  %v1696_v2 = vld [vmem:[%s4388_s7 + $0x8] sm:$0xff] }
  0x29   : > { %2619 = vmatpush.bf16.msra.mxu2 %v614_v15  ;;  %675 = vmatpush.bf16.msra.mxu1 %v617_v16  ;;  %v2292_v5 = vld [vmem:[%s4390_s9 + $0x8] sm:$0xff]  ;;  %v2291_v6 = vld [vmem:[%s4390_s9] sm:$0xff] }
  0x2a   : > { %2620 = vmatpush.bf16.msra.mxu3 %v617_v16  ;;  %2502 = vmatmul.msk.bf16.vlgmr.msra.gmra.mxu0 %vm587_vm1, %v2593_v17 }
  0x2c   : > { %2507 = vmatmul.msk.bf16.vlgmr.msra.gmra.mxu2 %vm587_vm1, %v2598_v18  ;;  %2510 = vmatmul.msk.bf16.vlgmr.msra.gmra.mxu1 %vm587_vm1, %v2593_v17 }
  0x2d   : > { %2515 = vmatmul.msk.bf16.vlgmr.msra.gmra.mxu3 %vm587_vm1, %v2598_v18 }
  0x2f   : > { %489 = vperm.xlu1 %2678, %v455_v19  }
  0x30   : > { %504 = vperm.xlu0 %2677, %v458_v20   ;;  %494 = vperm.xlu2 %2679, %v456_v21  }
  0x37   : > { %484 = vperm.xlu1 %2678, %v454_v22  }
  0x38   : > { %479 = vperm.xlu0 %2677, %v453_v23   ;;  %469 = vperm.xlu2 %2679, %v451_v24  }
  0x3a   : > { %2503 = vmatmul.msk.bf16.gmra.mxu0 %vm587_vm1, %v2594_v25 }
  0x3c   : > { %2508 = vmatmul.msk.bf16.gmra.mxu2 %vm587_vm1, %v2599_v26  ;;  %2511 = vmatmul.msk.bf16.gmra.mxu1 %vm587_vm1, %v2594_v25 }
  0x3d   : > { %2516 = vmatmul.msk.bf16.gmra.mxu3 %vm587_vm1, %v2599_v26 }
  0x3f   : > { %1173 = vperm.xlu1 %2678, %v1099_v27  }
  0x40   : > { %474 = vperm.xlu0 %2677, %v452_v28   ;;  %1178 = vperm.xlu2 %2679, %v1100_v29  }
  0x47   : > { %1168 = vperm.xlu1 %2678, %v1098_v30  }
  0x48   : > { %1163 = vperm.xlu0 %2677, %v1097_v31   ;;  %1153 = vperm.xlu2 %2679, %v1095_v32  }
  0x4a   : > { %2504 = vmatmul.msk.bf16.gmra.mxu0 %vm587_vm1, %v2595_v33 }
  0x4c   : > { %2509 = vmatmul.msk.bf16.gmra.mxu2 %vm587_vm1, %v2600_v34  ;;  %2512 = vmatmul.msk.bf16.gmra.mxu1 %vm587_vm1, %v2595_v33 }
  0x4d   : > { %2517 = vmatmul.msk.bf16.gmra.mxu3 %vm587_vm1, %v2600_v34 }
  0x4f   : > { %1143 = vperm.xlu1 %2678, %v1093_v35  }
  0x50   : > { %1158 = vperm.xlu0 %2677, %v1096_v36   ;;  %1148 = vperm.xlu2 %2679, %v1094_v37  }
  0x57   : > { %1138 = vperm.xlu1 %2678, %v1092_v38  }
  0x58   : > { %1133 = vperm.xlu0 %2677, %v1091_v39   ;;  %1123 = vperm.xlu2 %2679, %v1089_v40  }
  0x5a   : > { %2505 = vmatmul.msk.bf16.gmra.mxu0 %vm587_vm1, %v2596_v41 }
  0x5c   : > { %2513 = vmatmul.msk.bf16.gmra.mxu1 %vm587_vm1, %v2596_v41 }
  0x5f   : > { %1113 = vperm.xlu1 %2678, %v1087_v42  }
  0x60   : > { %1128 = vperm.xlu0 %2677, %v1090_v43   ;;  %1118 = vperm.xlu2 %2679, %v1088_v44  }
  0x67   : > { %1108 = vperm.xlu1 %2678, %v1086_v45  }
  0x68   : > { %1103 = vperm.xlu0 %2677, %v1085_v46   ;;  %1783 = vperm.xlu2 %2679, %v1709_v47  }
  0x6a   : > { %2506 = vmatmul.msk.bf16.gmra.mxu0 %vm587_vm1, %v2597_v48 }
  0x6c   : > { %2514 = vmatmul.msk.bf16.gmra.mxu1 %vm587_vm1, %v2597_v48 }
  0x6f   : > { %1773 = vperm.xlu1 %2678, %v1707_v49  }
  0x70   : > { %1788 = vperm.xlu0 %2677, %v1710_v50   ;;  %1778 = vperm.xlu2 %2679, %v1708_v51  }
  0x72   : > { %v520_v58 = vpop.permute.xlu2 %519 }
  0x77   : > { %1768 = vperm.xlu1 %2678, %v1706_v52  }
  0x78   : > { %1763 = vperm.xlu0 %2677, %v1705_v53   ;;  %1753 = vperm.xlu2 %2679, %v1703_v54  }
  0x7a   : > { %v525_v62 = vpop.permute.xlu2 %524 }
  0x7f   : > { %1743 = vperm.xlu1 %2678, %v1701_v55  }
  0x80   : > { %1758 = vperm.xlu0 %2677, %v1704_v56   ;;  %1748 = vperm.xlu2 %2679, %v1702_v57  }
  0x82   : > { %v3451_v4 = vpop.permute.xlu2 %499 }
  0x87   : > { %1738 = vperm.xlu1 %2678, %v1700_v59  }
  0x88   : > { %1733 = vperm.xlu0 %2677, %v1699_v60   ;;  %1723 = vperm.xlu2 %2679, %v1697_v61  }
  0x89   : > { %v3459_v7 = vpop.permute.xlu1 %529 }
  0x8a   : > { %v3438_v63 = vpop.permute.xlu0 %539  ;;  %v3463_v9 = vpop.permute.xlu2 %494 }
  0x8f   : > { %1713 = vperm.xlu1 %2678, %v1695_v0  }
  0x90   : > { %1728 = vperm.xlu0 %2677, %v1698_v1   ;;  %1718 = vperm.xlu2 %2679, %v1696_v2  }
  0x91   : > { %v3467_v11 = vpop.permute.xlu1 %534 }
  0x92   : > { %v3449_v3 = vpop.permute.xlu0 %544  ;;  %v470_v12 = vpop.permute.xlu2 %469 }
  0x97   : > { %2300 = vperm.xlu1 %2678, %v2292_v5  }
  0x98   : > { %2295 = vperm.xlu0 %2677, %v2291_v6  }
  0x99   : > { %v3475_v19 = vpop.permute.xlu1 %514 }
  0x9a   : > { %v3461_v8 = vpop.permute.xlu0 %509 }
  0xa1   : > { %v3489_v46 = vpop.permute.xlu1 %489 }
  0xa2   : > { %v3465_v10 = vpop.permute.xlu0 %504 }
  0xa7   : > { %v628_v13 = vpop.f32.mrf.mxu0 }
  0xa8   : > { %v3469_v14 = vadd.f32 %v628_v13, %v470_v12 }
  0xa9   : > { %v677_v15 = vpop.f32.mrf.mxu1 }
  0xaa   : > { %v3471_v16 = vadd.f32 %v677_v15, %v470_v12  ;;  %v480_v17 = vpop.permute.xlu0 %479 }
  0xac   : > { %v717_v18 = vpack.c.bf16 %v3471_v16, %v3469_v14 }
  0xae   : > { %v733_v20 = vunpack.c.l.bf16 %v717_v18  ;;  %v734_v21 = vunpack.c.h.bf16 %v717_v18 }
  0xaf   : > { %v653_v22 = vpop.f32.mrf.mxu2  ;;  %v630_v23 = vpop.f32.mrf.mxu0 }
  0xb0   : > { %v765_v24 = vsub.f32 0.0, %v733_v20  ;;  %v766_v25 = vsub.f32 0.0, %v734_v21  ;;  %v3477_v26 = vadd.f32 %v653_v22, %v520_v58  ;;  %v702_v27 = vpop.f32.mrf.mxu3 }
  0xb1   : > { %v3479_v28 = vadd.f32 %v702_v27, %v520_v58  ;;  %v679_v29 = vpop.f32.mrf.mxu1 }
  0xb2   : > { %v797_v30 = vpack.c.bf16 %v766_v25, %v765_v24  ;;  %v475_v31 = vpop.permute.xlu0 %474 }
  0xb3   : > { %v727_v32 = vpack.c.bf16 %v3479_v28, %v3477_v26  ;;  %v3483_v33 = vadd.f32 %v630_v23, %v475_v31  ;;  %v3485_v34 = vadd.f32 %v679_v29, %v475_v31 }
  0xb4   : > { %v813_v35 = vunpack.c.l.bf16 %v797_v30  ;;  %v814_v36 = vunpack.c.h.bf16 %v797_v30  ;;  %v485_v30 = vpop.permute.xlu1 %484 }
  0xb5   : > { %4403 = vst [vmem:[#allocation6_spill] sm:$0xff] %v3483_v33  ;;  %v753_v37 = vunpack.c.l.bf16 %v727_v32  ;;  %v754_v38 = vunpack.c.h.bf16 %v727_v32  ;;  %v718_v43 = vpack.c.bf16 %v3485_v34, %v3483_v33 }
  0xb6   : > { %4404 = vst [vmem:[#allocation7_spill] sm:$0xff] %v3485_v34  ;;  %v845_v39 = vmul.f32 1.442695, %v813_v35  ;;  %v847_v40 = vmul.f32 1.442695, %v814_v36 }
  0xb7   : > { %v785_v41 = vsub.f32 0.0, %v753_v37  ;;  %v786_v42 = vsub.f32 0.0, %v754_v38  ;;  %v655_v44 = vpop.f32.mrf.mxu2  ;;  %v633_v45 = vpop.f32.mrf.mxu0  ;;  %v735_v56 = vunpack.c.l.bf16 %v718_v43  ;;  %v736_v57 = vunpack.c.h.bf16 %v718_v43 }
  0xb8   : > { %2680 = vpow2.f32 %v845_v39  ;;  %v3491_v47 = vadd.f32 %v655_v44, %v525_v62  ;;  %v704_v48 = vpop.f32.mrf.mxu3  ;;  %v3493_v49 = vadd.f32 %v633_v45, %v480_v17 }
  0xb9   : > { %2682 = vpow2.f32 %v847_v40  ;;  %v807_v50 = vpack.c.bf16 %v786_v42, %v785_v41  ;;  %v682_v51 = vpop.f32.mrf.mxu1  ;;  %v3495_v52 = vadd.f32 %v704_v48, %v525_v62  ;;  %v767_v12 = vsub.f32 0.0, %v735_v56 }
  0xba   : > { %v3497_v53 = vadd.f32 %v682_v51, %v480_v17  ;;  %v768_v18 = vsub.f32 0.0, %v736_v57 }
  0xbb   : > { %v833_v54 = vunpack.c.l.bf16 %v807_v50  ;;  %v834_v55 = vunpack.c.h.bf16 %v807_v50  ;;  %v728_v58 = vpack.c.bf16 %v3495_v52, %v3491_v47 }
  0xbc   : > { %v719_v59 = vpack.c.bf16 %v3497_v53, %v3493_v49  ;;  %v798_v40 = vpack.c.bf16 %v768_v18, %v767_v12 }
  0xbd   : > { %v885_v60 = vmul.f32 1.442695, %v833_v54  ;;  %v887_v61 = vmul.f32 1.442695, %v834_v55  ;;  %v755_v1 = vunpack.c.l.bf16 %v728_v58  ;;  %v756_v2 = vunpack.c.h.bf16 %v728_v58 }
  0xbe   : > { %v2681_v0 = vpop.eup %2680  ;;  %v737_v5 = vunpack.c.l.bf16 %v719_v59  ;;  %v738_v62 = vunpack.c.h.bf16 %v719_v59 }
  0xbf   : > { %v2683_v6 = vpop.eup %2682  ;;  %v658_v13 = vpop.f32.mrf.mxu2  ;;  %v787_v20 = vsub.f32 0.0, %v755_v1  ;;  %v788_v21 = vsub.f32 0.0, %v756_v2  ;;  %2684 = vpow2.f32 %v885_v60  ;;  %v816_v1 = vunpack.c.h.bf16 %v798_v40 }
  0xc0   : > { %v635_v15 = vpop.f32.mrf.mxu0  ;;  %v3503_v17 = vpack.c.bf16 %v2683_v6, %v2681_v0  ;;  %v707_v22 = vpop.f32.mrf.mxu3  ;;  %v769_v23 = vsub.f32 0.0, %v737_v5  ;;  %v770_v24 = vsub.f32 0.0, %v738_v62  ;;  %v3506_v25 = vadd.f32 %v658_v13, %v3459_v7 }
  0xc1   : > { %v684_v27 = vpop.f32.mrf.mxu1  ;;  %2686 = vpow2.f32 %v887_v61  ;;  %v808_v31 = vpack.c.bf16 %v788_v21, %v787_v20  ;;  %v3510_v32 = vadd.f32 %v707_v22, %v3459_v7  ;;  %v3512_v36 = vadd.f32 %v635_v15, %v485_v30 }
  0xc2   : > { %v926_v29 = vunpack.c.h.bf16 %v3503_v17  ;;  %v799_v35 = vpack.c.bf16 %v770_v24, %v769_v23  ;;  %v3514_v37 = vadd.f32 %v684_v27, %v485_v30  ;;  %v815_v0 = vunpack.c.l.bf16 %v798_v40 }
  0xc3   : > { %4405 = vst [vmem:[#allocation8_spill] sm:$0xff] %v3512_v36  ;;  %v729_v39 = vpack.c.bf16 %v3510_v32, %v3506_v25  ;;  %v835_v44 = vunpack.c.l.bf16 %v808_v31  ;;  %v836_v45 = vunpack.c.h.bf16 %v808_v31 }
  0xc4   : > { %4406 = vst [vmem:[#allocation9_spill] sm:$0xff] %v3514_v37  ;;  %v958_v38 = vadd.f32 1.0, %v926_v29  ;;  %v817_v41 = vunpack.c.l.bf16 %v799_v35  ;;  %v818_v42 = vunpack.c.h.bf16 %v799_v35  ;;  %v720_v43 = vpack.c.bf16 %v3514_v37, %v3512_v36 }
  0xc5   : > { %v757_v7 = vunpack.c.l.bf16 %v729_v39  ;;  %v2685_v48 = vpop.eup %2684  ;;  %v758_v54 = vunpack.c.h.bf16 %v729_v39  ;;  %v889_v6 = vmul.f32 1.442695, %v835_v44  ;;  %v891_v12 = vmul.f32 1.442695, %v836_v45 }
  0xc6   : > { %2688 = vrcp.f32 %v958_v38  ;;  %v853_v50 = vmul.f32 1.442695, %v817_v41  ;;  %v855_v51 = vmul.f32 1.442695, %v818_v42  ;;  %v739_v59 = vunpack.c.l.bf16 %v720_v43 }
  0xc7   : > { %v660_v55 = vpop.f32.mrf.mxu2  ;;  %v2687_v57 = vpop.eup %2686  ;;  %v789_v58 = vsub.f32 0.0, %v757_v7  ;;  %v740_v60 = vunpack.c.h.bf16 %v720_v43  ;;  %v790_v2 = vsub.f32 0.0, %v758_v54  ;;  %v849_v30 = vmul.f32 1.442695, %v815_v0 }
  0xc8   : > { %v638_v56 = vpop.f32.mrf.mxu0  ;;  %v709_v61 = vpop.f32.mrf.mxu3  ;;  %v3521_v5 = vadd.f32 %v660_v55, %v3467_v11  ;;  %2690 = vpow2.f32 %v853_v50  ;;  %v3526_v15 = vpack.c.bf16 %v2687_v57, %v2685_v48  ;;  %v771_v22 = vsub.f32 0.0, %v739_v59 }
  0xc9   : > { %v687_v62 = vpop.f32.mrf.mxu1  ;;  %v3524_v13 = vadd.f32 %v709_v61, %v3467_v11  ;;  %2692 = vpow2.f32 %v855_v51  ;;  %v809_v18 = vpack.c.bf16 %v790_v2, %v789_v58  ;;  %v3529_v20 = vadd.f32 %v638_v56, %v3489_v46 }
  0xca   : > { %v772_v23 = vsub.f32 0.0, %v740_v60  ;;  %v3534_v27 = vadd.f32 %v687_v62, %v3489_v46  ;;  %v851_v39 = vmul.f32 1.442695, %v816_v1  ;;  %2694 = vpow2.f32 %v889_v6 }
  0xcb   : > { %4407 = vst [vmem:[#allocation10_spill] sm:$0xff] %v3529_v20  ;;  %v730_v24 = vpack.c.bf16 %v3524_v13, %v3521_v5  ;;  %v837_v11 = vunpack.c.l.bf16 %v809_v18  ;;  %v838_v31 = vunpack.c.h.bf16 %v809_v18  ;;  %v946_v44 = vunpack.c.h.bf16 %v3526_v15 }
  0xcc   : > { %v2689_v21 = vpop.eup %2688  ;;  %4408 = vst [vmem:[#allocation11_spill] sm:$0xff] %v3534_v27  ;;  %v721_v40 = vpack.c.bf16 %v3534_v27, %v3529_v20  ;;  %2696 = vpow2.f32 %v891_v12  ;;  %v800_v46 = vpack.c.bf16 %v772_v23, %v771_v22 }
  0xcd   : > { %v3537_v29 = vmul.f32 %v2689_v21, %v3471_v16  ;;  %v759_v35 = vunpack.c.l.bf16 %v730_v24  ;;  %v760_v38 = vunpack.c.h.bf16 %v730_v24  ;;  %v893_v7 = vmul.f32 1.442695, %v837_v11 }
  0xce   : > { %v2691_v43 = vpop.eup %2690  ;;  %2698 = vpow2.f32 %v849_v30  ;;  %v895_v55 = vmul.f32 1.442695, %v838_v31  ;;  %v741_v57 = vunpack.c.l.bf16 %v721_v40  ;;  %v742_v58 = vunpack.c.h.bf16 %v721_v40 }
  0xcf   : > { %4409 = vst [vmem:[#allocation12_spill] sm:$0xff] %v3537_v29  ;;  %v663_v41 = vpop.f32.mrf.mxu2  ;;  %v791_v45 = vsub.f32 0.0, %v759_v35  ;;  %v2693_v16 = vpop.eup %2692  ;;  %v792_v48 = vsub.f32 0.0, %v760_v38  ;;  %2700 = vpow2.f32 %v851_v39  ;;  %v978_v59 = vadd.f32 1.0, %v946_v44 }
  0xd0   : > { %v640_v42 = vpop.f32.mrf.mxu0  ;;  %v712_v50 = vpop.f32.mrf.mxu3  ;;  %v3542_v54 = vpack.c.bf16 %v2693_v16, %v2691_v43  ;;  %v819_v61 = vunpack.c.l.bf16 %v800_v46  ;;  %v3546_v0 = vadd.f32 %v663_v41, %v3438_v63  ;;  %2702 = vpow2.f32 %v893_v7 }
  0xd1   : > { %v689_v51 = vpop.f32.mrf.mxu1  ;;  %v810_v56 = vpack.c.bf16 %v792_v48, %v791_v45  ;;  %v2695_v1 = vpop.eup %2694  ;;  %v3549_v6 = vadd.f32 %v712_v50, %v3438_v63  ;;  %2704 = vpow2.f32 %v895_v55  ;;  %v3552_v21 = vadd.f32 %v640_v42, %v3463_v9 }
  0xd2   : > { %v930_v60 = vunpack.c.h.bf16 %v3542_v54  ;;  %v2697_v12 = vpop.eup %2696  ;;  %v3555_v22 = vadd.f32 %v689_v51, %v3463_v9  ;;  %v773_v11 = vsub.f32 0.0, %v741_v57  ;;  %v774_v30 = vsub.f32 0.0, %v742_v58 }
  0xd3   : > { %v839_v2 = vunpack.c.l.bf16 %v810_v56  ;;  %v840_v62 = vunpack.c.h.bf16 %v810_v56  ;;  %4410 = vst [vmem:[#allocation13_spill] sm:$0xff] %v3552_v21  ;;  %v820_v38 = vunpack.c.h.bf16 %v800_v46  ;;  %v731_v63 = vpack.c.bf16 %v3549_v6, %v3546_v0 }
  0xd4   : > { %v962_v18 = vadd.f32 1.0, %v930_v60  ;;  %v3557_v35 = vpop.eup %2698  ;;  %v722_v39 = vpack.c.bf16 %v3555_v22, %v3552_v21  ;;  %v3565_v41 = vpack.c.bf16 %v2697_v12, %v2695_v1  ;;  %v857_v9 = vmul.f32 1.442695, %v819_v61 }
  0xd5   : > { %v897_v23 = vmul.f32 1.442695, %v839_v2  ;;  %v899_v24 = vmul.f32 1.442695, %v840_v62  ;;  %v3563_v40 = vpop.eup %2700  ;;  %v761_v44 = vunpack.c.l.bf16 %v731_v63  ;;  %v762_v45 = vunpack.c.h.bf16 %v731_v63 }
  0xd6   : > { %2706 = vrcp.f32 %v962_v18  ;;  %v743_v16 = vunpack.c.l.bf16 %v722_v39  ;;  %v2703_v7 = vpop.eup %2702  ;;  %v801_v46 = vpack.c.bf16 %v774_v30, %v773_v11  ;;  %v744_v48 = vunpack.c.h.bf16 %v722_v39 }
  0xd7   : > { %2708 = vpow2.f32 %v897_v23  ;;  %v665_v42 = vpop.f32.mrf.mxu2  ;;  %v2705_v51 = vpop.eup %2704  ;;  %v859_v55 = vmul.f32 1.442695, %v820_v38  ;;  %v793_v56 = vsub.f32 0.0, %v761_v44  ;;  %v794_v57 = vsub.f32 0.0, %v762_v45 }
  0xd8   : > { %v643_v31 = vpop.f32.mrf.mxu0  ;;  %2710 = vpow2.f32 %v899_v24  ;;  %v714_v50 = vpop.f32.mrf.mxu3  ;;  %v3568_v58 = vadd.f32 %v665_v42, %v3449_v3  ;;  %v948_v60 = vunpack.c.h.bf16 %v3565_v41  ;;  %v775_v61 = vsub.f32 0.0, %v743_v16 }
  0xd9   : > { %v692_v43 = vpop.f32.mrf.mxu1  ;;  %2712 = vrcp.f32 %v978_v59  ;;  %v776_v1 = vsub.f32 0.0, %v744_v48  ;;  %v811_v62 = vpack.c.bf16 %v794_v57, %v793_v56  ;;  %v3572_v12 = vadd.f32 %v714_v50, %v3449_v3 }
  0xda   : > { %2714 = vpow2.f32 %v857_v9  ;;  %v3575_v59 = vadd.f32 %v643_v31, %v3451_v4  ;;  %v3578_v18 = vadd.f32 %v692_v43, %v3451_v4  ;;  %v3583_v11 = vpack.c.bf16 %v2705_v51, %v2703_v7 }
  0xdb   : > { %v821_v30 = vunpack.c.l.bf16 %v801_v46  ;;  %v822_v38 = vunpack.c.h.bf16 %v801_v46  ;;  %v841_v9 = vunpack.c.l.bf16 %v811_v62  ;;  %v842_v42 = vunpack.c.h.bf16 %v811_v62 }
  0xdc   : > { %v2707_v2 = vpop.eup %2706  ;;  %v732_v3 = vpack.c.bf16 %v3572_v12, %v3568_v58  ;;  %v723_v31 = vpack.c.bf16 %v3578_v18, %v3575_v59  ;;  %v980_v43 = vadd.f32 1.0, %v948_v60  ;;  %2716 = vpow2.f32 %v859_v55 }
  0xdd   : > { %v2709_v23 = vpop.eup %2708  ;;  %v3581_v24 = vmul.f32 %v2707_v2, %v3497_v53  ;;  %v802_v53 = vpack.c.bf16 %v776_v1, %v775_v61  ;;  %v901_v45 = vmul.f32 1.442695, %v841_v9  ;;  %v903_v16 = vmul.f32 1.442695, %v842_v42 }
  0xde   : > { %v2711_v39 = vpop.eup %2710  ;;  %v763_v7 = vunpack.c.l.bf16 %v732_v3  ;;  %v764_v46 = vunpack.c.h.bf16 %v732_v3  ;;  %v950_v50 = vunpack.c.h.bf16 %v3583_v11  ;;  %v861_v56 = vmul.f32 1.442695, %v821_v30 }
  0xdf   : > { %4411 = vst [vmem:[#allocation14_spill] sm:$0xff] %v3581_v24  ;;  %v3589_v4 = vpop.eup %2712  ;;  %v3594_v51 = vpack.c.bf16 %v2711_v39, %v2709_v23  ;;  %v863_v57 = vmul.f32 1.442695, %v822_v38  ;;  %2718 = vpow2.f32 %v901_v45  ;;  %v745_v29 = vunpack.c.l.bf16 %v723_v31 }
  0xe0   : > { %v645_v63 = vpop.f32.mrf.mxu0  ;;  %v3591_v48 = vpop.eup %2714  ;;  %v795_v2 = vsub.f32 0.0, %v763_v7  ;;  %v796_v62 = vsub.f32 0.0, %v764_v46  ;;  %2720 = vpow2.f32 %v903_v16  ;;  %v746_v55 = vunpack.c.h.bf16 %v723_v31 }
  0xe1   : > { %v694_v44 = vpop.f32.mrf.mxu1  ;;  %2722 = vrcp.f32 %v980_v43  ;;  %v823_v60 = vunpack.c.l.bf16 %v802_v53  ;;  %v777_v1 = vsub.f32 0.0, %v745_v29  ;;  %v982_v42 = vadd.f32 1.0, %v950_v50 }
  0xe2   : > { %v812_v61 = vpack.c.bf16 %v796_v62, %v795_v2  ;;  %v3596_v9 = vpop.eup %2716  ;;  %2724 = vpow2.f32 %v861_v56  ;;  %v778_v3 = vsub.f32 0.0, %v746_v55  ;;  %v3599_v23 = vadd.f32 %v645_v63, %v3465_v10 }
  0xe3   : > { %v952_v38 = vunpack.c.h.bf16 %v3594_v51  ;;  %2726 = vpow2.f32 %v863_v57  ;;  %v824_v16 = vunpack.c.h.bf16 %v802_v53  ;;  %v3603_v43 = vadd.f32 %v694_v44, %v3465_v10 }
  0xe4   : > { %v843_v39 = vunpack.c.l.bf16 %v812_v61  ;;  %v844_v45 = vunpack.c.h.bf16 %v812_v61  ;;  %v803_v31 = vpack.c.bf16 %v778_v3, %v777_v1  ;;  %v865_v50 = vmul.f32 1.442695, %v823_v60 }
  0xe5   : > { %v2719_v46 = vpop.eup %2718  ;;  %2728 = vrcp.f32 %v982_v42  ;;  %v724_v53 = vpack.c.bf16 %v3603_v43, %v3599_v23  ;;  %v984_v44 = vadd.f32 1.0, %v952_v38 }
  0xe6   : > { %v905_v56 = vmul.f32 1.442695, %v843_v39  ;;  %v907_v63 = vmul.f32 1.442695, %v844_v45  ;;  %v2721_v62 = vpop.eup %2720  ;;  %v825_v57 = vunpack.c.l.bf16 %v803_v31  ;;  %v826_v55 = vunpack.c.h.bf16 %v803_v31 }
  0xe7   : > { %v3613_v10 = vpop.eup %2722  ;;  %v3615_v61 = vpack.c.bf16 %v2721_v62, %v2719_v46  ;;  %v747_v3 = vunpack.c.l.bf16 %v724_v53  ;;  %v748_v39 = vunpack.c.h.bf16 %v724_v53 }
  0xe8   : > { %v648_v30 = vpop.f32.mrf.mxu0  ;;  %2730 = vpow2.f32 %v905_v56  ;;  %v3619_v1 = vpop.eup %2724  ;;  %v871_v38 = vmul.f32 1.442695, %v826_v55 }
  0xe9   : > { %v3606_v29 = vadd.f32 %v648_v30, %v3461_v8  ;;  %v697_v7 = vpop.f32.mrf.mxu1  ;;  %2732 = vpow2.f32 %v907_v63  ;;  %v3621_v42 = vpop.eup %2726  ;;  %v869_v30 = vmul.f32 1.442695, %v825_v57  ;;  %v954_v31 = vunpack.c.h.bf16 %v3615_v61 }
  0xea   : > { %v3609_v2 = vadd.f32 %v697_v7, %v3461_v8  ;;  %v867_v8 = vmul.f32 1.442695, %v824_v16  ;;  %2734 = vpow2.f32 %v865_v50  ;;  %v779_v7 = vsub.f32 0.0, %v747_v3 }
  0xeb   : > { %2736 = vrcp.f32 %v984_v44  ;;  %v780_v62 = vsub.f32 0.0, %v748_v39  ;;  %v3624_v33 = vpop.eup %2728  ;;  %v949_v3 = vunpack.c.l.bf16 %v3583_v11 }
  0xec   : > { %v725_v60 = vpack.c.bf16 %v3609_v2, %v3606_v29  ;;  %2738 = vpow2.f32 %v867_v8 }
  0xed   : > { %2740 = vpow2.f32 %v869_v30  ;;  %v804_v53 = vpack.c.bf16 %v780_v62, %v779_v7  ;;  %v953_v7 = vunpack.c.l.bf16 %v3615_v61  ;;  %v981_v21 = vadd.f32 1.0, %v949_v3 }
  0xee   : > { %v749_v45 = vunpack.c.l.bf16 %v725_v60  ;;  %v750_v46 = vunpack.c.h.bf16 %v725_v60  ;;  %v2731_v57 = vpop.eup %2730  ;;  %v986_v60 = vadd.f32 1.0, %v954_v31  ;;  %2742 = vpow2.f32 %v871_v38 }
  0xef   : > { %v2733_v55 = vpop.eup %2732 }
  0xf0   : > { %v650_v56 = vpop.f32.mrf.mxu0  ;;  %v781_v16 = vsub.f32 0.0, %v749_v45  ;;  %v782_v63 = vsub.f32 0.0, %v750_v46  ;;  %v3633_v39 = vpop.eup %2734  ;;  %v924_v8 = vpack.c.bf16 %v2733_v55, %v2731_v57  ;;  %v827_v45 = vunpack.c.l.bf16 %v804_v53 }
  0xf1   : > { %v3627_v34 = vadd.f32 %v650_v56, %v3475_v19  ;;  %v699_v50 = vpop.f32.mrf.mxu1  ;;  %v828_v46 = vunpack.c.h.bf16 %v804_v53  ;;  %v2737_v62 = vpop.eup %2736  ;;  %2744 = vrcp.f32 %v986_v60 }
  0xf2   : > { %v3630_v24 = vadd.f32 %v699_v50, %v3475_v19  ;;  %v805_v44 = vpack.c.bf16 %v782_v63, %v781_v16  ;;  %v951_v19 = vunpack.c.l.bf16 %v3594_v51  ;;  %v956_v31 = vunpack.c.h.bf16 %v924_v8  ;;  %v2739_v11 = vpop.eup %2738 }
  0xf3   : > { %v873_v38 = vmul.f32 1.442695, %v827_v45  ;;  %v875_v16 = vmul.f32 1.442695, %v828_v46  ;;  %v2741_v53 = vpop.eup %2740  ;;  %v955_v27 = vunpack.c.l.bf16 %v924_v8  ;;  %v3641_v51 = vpack.c.bf16 %v3596_v9, %v3591_v48 }
  0xf4   : > { %v726_v56 = vpack.c.bf16 %v3630_v24, %v3627_v34  ;;  %v829_v36 = vunpack.c.l.bf16 %v805_v44  ;;  %v830_v30 = vunpack.c.h.bf16 %v805_v44  ;;  %v988_v37 = vadd.f32 1.0, %v956_v31  ;;  %v2743_v44 = vpop.eup %2742 }
  0xf5   : > { %2746 = vpow2.f32 %v873_v38  ;;  %v985_v45 = vadd.f32 1.0, %v953_v7  ;;  %v983_v46 = vadd.f32 1.0, %v951_v19  ;;  %v3645_v31 = vpack.c.bf16 %v2743_v44, %v2741_v53 }
  0xf6   : > { %v751_v63 = vunpack.c.l.bf16 %v726_v56  ;;  %v877_v50 = vmul.f32 1.442695, %v829_v36  ;;  %v879_v57 = vmul.f32 1.442695, %v830_v30  ;;  %v752_v55 = vunpack.c.h.bf16 %v726_v56 }
  0xf7   : > { %2748 = vpow2.f32 %v875_v16  ;;  %v987_v36 = vadd.f32 1.0, %v955_v27  ;;  %v945_v56 = vunpack.c.l.bf16 %v3526_v15  ;;  %v947_v30 = vunpack.c.l.bf16 %v3565_v41  ;;  %v2745_v8 = vpop.eup %2744 }
  0xf8   : > { %v783_v20 = vsub.f32 0.0, %v751_v63  ;;  %v784_v61 = vsub.f32 0.0, %v752_v55  ;;  %2750 = vrcp.f32 %v988_v37  ;;  %v932_v48 = vunpack.c.h.bf16 %v3641_v51 }
  0xf9   : > { %2752 = vpow2.f32 %v877_v50  ;;  %v1050_v41 = vmul.f32 %v2745_v8, %v3549_v6  ;;  %v979_v19 = vadd.f32 1.0, %v947_v30  ;;  %v938_v50 = vunpack.c.h.bf16 %v3645_v31 }
  0xfa   : > { %v806_v60 = vpack.c.bf16 %v784_v61, %v783_v20  ;;  %2754 = vpow2.f32 %v879_v57  ;;  %v3650_v20 = vmul.f32 %v3589_v4, %v3479_v28  ;;  %v977_v57 = vadd.f32 1.0, %v945_v56 }
  0xfb   : > { %2756 = vrcp.f32 %v981_v21  ;;  %v2747_v16 = vpop.eup %2746  ;;  %v964_v53 = vadd.f32 1.0, %v932_v48  ;;  %v3657_v28 = vpack.c.bf16 %v3621_v42, %v3619_v1  ;;  %v1048_v6 = vmul.f32 %v2737_v62, %v3524_v13 }
  0xfc   : > { %v831_v38 = vunpack.c.l.bf16 %v806_v60  ;;  %v832_v3 = vunpack.c.h.bf16 %v806_v60  ;;  %2758 = vrcp.f32 %v985_v45  ;;  %v929_v56 = vunpack.c.l.bf16 %v3542_v54 }
  0xfd   : > { %v2749_v37 = vpop.eup %2748  ;;  %2760 = vrcp.f32 %v987_v36  ;;  %v1046_v1 = vmul.f32 %v3624_v33, %v3510_v32  ;;  %v970_v42 = vadd.f32 1.0, %v938_v50 }
  0xfe   : > { %v881_v27 = vmul.f32 1.442695, %v831_v38  ;;  %v883_v9 = vmul.f32 1.442695, %v832_v3  ;;  %v2751_v15 = vpop.eup %2750  ;;  %v916_v7 = vpack.c.bf16 %v2749_v37, %v2747_v16  ;;  %2762 = vrcp.f32 %v983_v46 }
  0xff   : > { %v2753_v63 = vpop.eup %2752  ;;  %v1052_v21 = vmul.f32 %v2751_v15, %v3572_v12  ;;  %v1044_v12 = vmul.f32 %v3613_v10, %v3495_v52  ;;  %v914_v46 = vpack.c.bf16 %v2739_v11, %v3633_v39  ;;  %v934_v39 = vunpack.c.h.bf16 %v3657_v28 }
 0x100   : > { %2764 = vpow2.f32 %v881_v27  ;;  %v2755_v55 = vpop.eup %2754  ;;  %v940_v4 = vunpack.c.h.bf16 %v916_v7  ;;  %v939_v60 = vunpack.c.l.bf16 %v916_v7  ;;  %v1082_v54 = vpack.c.bf16 %v1048_v6, %v1046_v1 }
 0x101   : > { %2766 = vpow2.f32 %v883_v9  ;;  %v2757_v44 = vpop.eup %2756  ;;  %v917_v61 = vpack.c.bf16 %v2755_v55, %v2753_v63  ;;  %v1084_v45 = vpack.c.bf16 %v1052_v21, %v1050_v41  ;;  %v936_v48 = vunpack.c.h.bf16 %v914_v46 }
 0x102   : > { %v2759_v36 = vpop.eup %2758  ;;  %2768 = vrcp.f32 %v979_v19  ;;  %v972_v62 = vadd.f32 1.0, %v940_v4  ;;  %v971_v11 = vadd.f32 1.0, %v939_v60  ;;  %v961_v37 = vadd.f32 1.0, %v929_v56 }
 0x103   : > { %v2761_v30 = vpop.eup %2760  ;;  %v942_v8 = vunpack.c.h.bf16 %v917_v61  ;;  %1278 = vmatpush.bf16.msrb.mxu3 %v1084_v45  ;;  %2770 = vrcp.f32 %v977_v57  ;;  %v1049_v38 = vmul.f32 %v2759_v36, %v3546_v0  ;;  %v941_v52 = vunpack.c.l.bf16 %v917_v61 }
 0x104   : > { %v2763_v13 = vpop.eup %2762  ;;  %v1051_v3 = vmul.f32 %v2761_v30, %v3568_v58  ;;  %2772 = vrcp.f32 %v964_v53  ;;  %v925_v0 = vunpack.c.l.bf16 %v3503_v17  ;;  %v1045_v15 = vmul.f32 %v2757_v44, %v3506_v25 }
 0x105   : > { %v1047_v32 = vmul.f32 %v2763_v13, %v3521_v5  ;;  %2774 = vrcp.f32 %v970_v42  ;;  %v974_v27 = vadd.f32 1.0, %v942_v8  ;;  %v973_v41 = vadd.f32 1.0, %v941_v52 }
 0x106   : > { %v2765_v10 = vpop.eup %2764  ;;  %v1083_v33 = vpack.c.bf16 %v1051_v3, %v1049_v38  ;;  %2776 = vrcp.f32 %v972_v62  ;;  %v937_v7 = vunpack.c.l.bf16 %v3645_v31  ;;  %v1080_v21 = vpack.c.bf16 %v1044_v12, %v3650_v20 }
 0x107   : > { %v2767_v16 = vpop.eup %2766  ;;  %1279 = vmatpush.bf16.msrb.mxu3 %v1082_v54  ;;  %2778 = vrcp.f32 %v971_v11  ;;  %v1081_v50 = vpack.c.bf16 %v1047_v32, %v1045_v15  ;;  %v935_v55 = vunpack.c.l.bf16 %v914_v46  ;;  %v957_v4 = vadd.f32 1.0, %v925_v0 }
 0x108   : > { %v918_v9 = vpack.c.bf16 %v2767_v16, %v2765_v10  ;;  %v2769_v58 = vpop.eup %2768  ;;  %1229 = vmatpush.bf16.msrb.mxu2 %v1083_v33  ;;  %2780 = vrcp.f32 %v961_v37  ;;  %v969_v44 = vadd.f32 1.0, %v937_v7  ;;  %v933_v20 = vunpack.c.l.bf16 %v3657_v28 }
 0x109   : > { %v2771_v19 = vpop.eup %2770  ;;  %v1043_v57 = vmul.f32 %v2769_v58, %v3491_v47  ;;  %2782 = vrcp.f32 %v974_v27  ;;  %v968_v61 = vadd.f32 1.0, %v936_v48  ;;  %v910_v47 = vpack.c.bf16 %v3563_v40, %v3557_v35 }
 0x10a   : > { %v944_v63 = vunpack.c.h.bf16 %v918_v9  ;;  %v943_v5 = vunpack.c.l.bf16 %v918_v9  ;;  %v3675_v17 = vpop.eup %2772  ;;  %v1041_v31 = vmul.f32 %v2771_v19, %v3477_v26  ;;  %2784 = vrcp.f32 %v973_v41  ;;  %v4413_v41 = vld [vmem:[#allocation11_spill] sm:$0xff]  ;;  %v4415_v19 = vld [vmem:[#allocation9_spill] sm:$0xff] }
 0x10b   : > { %1280 = vmatpush.bf16.msrb.mxu3 %v1080_v21  ;;  %v2775_v6 = vpop.eup %2774  ;;  %v967_v36 = vadd.f32 1.0, %v935_v55  ;;  %v931_v12 = vunpack.c.l.bf16 %v3641_v51  ;;  %v966_v56 = vadd.f32 1.0, %v934_v39  ;;  %v965_v30 = vadd.f32 1.0, %v933_v20  ;;  %v4417_v55 = vld [vmem:[#allocation14_spill] sm:$0xff] }
 0x10c   : > { %v976_v53 = vadd.f32 1.0, %v944_v63  ;;  %v975_v25 = vadd.f32 1.0, %v943_v5  ;;  %1230 = vmatpush.bf16.msrb.mxu2 %v1081_v50  ;;  %v2777_v45 = vpop.eup %2776  ;;  %v1079_v60 = vpack.c.bf16 %v1043_v57, %v1041_v31  ;;  %v927_v42 = vunpack.c.l.bf16 %v910_v47  ;;  %v4416_v50 = vld [vmem:[#allocation8_spill] sm:$0xff] }
 0x10d   : > { %v2779_v46 = vpop.eup %2778  ;;  %v928_v8 = vunpack.c.h.bf16 %v910_v47  ;;  %v963_v40 = vadd.f32 1.0, %v931_v12  ;;  %v1036_v11 = vmul.f32 %v2777_v45, %v3603_v43  ;;  %v1034_v37 = vmul.f32 %v2775_v6, %v3578_v18  ;;  %v4414_v18 = vld [vmem:[#allocation10_spill] sm:$0xff]  ;;  %v4420_v6 = vld [vmem:[#allocation12_spill] sm:$0xff]  ;;  %v2601_v47 = vld [vmem:[%s4385_s4] sm:$0xff] }
 0x10e   : > { %2786 = vrcp.f32 %v976_v53  ;;  %v2781_v26 = vpop.eup %2780  ;;  %v959_v39 = vadd.f32 1.0, %v927_v42  ;;  %v1028_v63 = vmul.f32 %v3675_v17, %v4415_v19  ;;  %v2602_v45 = vld [vmem:[%s4385_s4 + $0x8] sm:$0xff]  ;;  %v2605_v12 = vld [vmem:[%s4385_s4 + $0x20] sm:$0xff]  ;;  %v2608_v42 = vld [vmem:[%s4385_s4 + $0x38] sm:$0xff] }
 0x10f   : > { %2788 = vrcp.f32 %v975_v25  ;;  %v2783_v28 = vpop.eup %2782  ;;  %v1025_v1 = vmul.f32 %v2781_v26, %v3493_v49  ;;  %v960_v49 = vadd.f32 1.0, %v928_v8  ;;  %v1076_v9 = vpack.c.bf16 %v1036_v11, %v1034_v37  ;;  %v4418_v25 = vld [vmem:[#allocation7_spill] sm:$0xff]  ;;  %v3723_v26 = vpop.permute.xlu0 %1163 }
 0x110   : > { %2790 = vrcp.f32 %v957_v4  ;;  %1231 = vmatpush.bf16.msrb.mxu2 %v1079_v60  ;;  %v2785_v35 = vpop.eup %2784  ;;  %v1038_v51 = vmul.f32 %v2783_v28, %v3609_v2  ;;  %v1035_v2 = vmul.f32 %v2779_v46, %v3599_v23  ;;  %v1072_v53 = vpack.c.bf16 %v1028_v63, %v4417_v55  ;;  %v2603_v60 = vld [vmem:[%s4385_s4 + $0x10] sm:$0xff]  ;;  %v2606_v46 = vld [vmem:[%s4385_s4 + $0x28] sm:$0xff] }
 0x111   : > { %2792 = vrcp.f32 %v969_v44  ;;  %v1037_v52 = vmul.f32 %v2785_v35, %v3606_v29  ;;  %v4419_v44 = vld [vmem:[#allocation6_spill] sm:$0xff] }
 0x112   : > { %2794 = vrcp.f32 %v968_v61 }
 0x113   : > { %2796 = vrcp.f32 %v967_v36  ;;  %v2604_v36 = vld [vmem:[%s4385_s4 + $0x18] sm:$0xff] }
 0x114   : > { %v2787_v13 = vpop.eup %2786  ;;  %2798 = vrcp.f32 %v966_v56  ;;  %v3721_v56 = vpop.permute.xlu1 %1173 }
 0x115   : > { %v2789_v62 = vpop.eup %2788  ;;  %v1040_v38 = vmul.f32 %v2787_v13, %v3630_v24  ;;  %2800 = vrcp.f32 %v965_v30  ;;  %v2607_v30 = vld [vmem:[%s4385_s4 + $0x30] sm:$0xff] }
 0x116   : > { %v2791_v3 = vpop.eup %2790  ;;  %v1039_v10 = vmul.f32 %v2789_v62, %v3627_v34  ;;  %2802 = vrcp.f32 %v963_v40  ;;  %v3739_v40 = vpop.permute.xlu2 %1178 }
 0x117   : > { %v2793_v54 = vpop.eup %2792  ;;  %v1078_v16 = vpack.c.bf16 %v1040_v38, %v1038_v51  ;;  %v1021_v48 = vmul.f32 %v2791_v3, %v3469_v14  ;;  %2804 = vrcp.f32 %v960_v49  ;;  %v4412_v14 = vld [vmem:[#allocation13_spill] sm:$0xff] }
 0x118   : > { %v2795_v33 = vpop.eup %2794  ;;  %v1077_v32 = vpack.c.bf16 %v1039_v10, %v1037_v52  ;;  %v1033_v34 = vmul.f32 %v2793_v54, %v3575_v59  ;;  %2806 = vrcp.f32 %v959_v39 }
 0x119   : > { %v2797_v24 = vpop.eup %2796  ;;  %1281 = vmatpush.bf16.msrb.mxu3 %v1078_v16  ;;  %v1032_v43 = vmul.f32 %v2795_v33, %v3555_v22 }
 0x11a   : > { %v2799_v29 = vpop.eup %2798  ;;  %1232 = vmatpush.bf16.msrb.mxu2 %v1077_v32  ;;  %v1075_v0 = vpack.c.bf16 %v1035_v2, %v1033_v34  ;;  %v1031_v58 = vmul.f32 %v2797_v24, %v4412_v14 }
 0x11b   : > { %v2801_v27 = vpop.eup %2800  ;;  %v1030_v23 = vmul.f32 %v2799_v29, %v4413_v41 }
 0x11c   : > { %v2803_v15 = vpop.eup %2802  ;;  %v1029_v7 = vmul.f32 %v2801_v27, %v4414_v18  ;;  %v3728_v28 = vpop.permute.xlu1 %1168 }
 0x11d   : > { %1282 = vmatpush.bf16.msrb.mxu3 %v1076_v9  ;;  %v1074_v59 = vpack.c.bf16 %v1032_v43, %v1030_v23  ;;  %v2805_v21 = vpop.eup %2804  ;;  %v1027_v22 = vmul.f32 %v2803_v15, %v4416_v50 }
 0x11e   : > { %1233 = vmatpush.bf16.msrb.mxu2 %v1075_v0  ;;  %v1073_v5 = vpack.c.bf16 %v1031_v58, %v1029_v7  ;;  %v2807_v57 = vpop.eup %2806  ;;  %v1024_v4 = vmul.f32 %v2805_v21, %v4418_v25  ;;  %v3745_v51 = vpop.permute.xlu2 %1153 }
 0x11f   : > { %v1071_v31 = vpack.c.bf16 %v1027_v22, %v1025_v1  ;;  %v1023_v20 = vmul.f32 %v2807_v57, %v4419_v44  ;;  %v3730_v1 = vpop.permute.xlu0 %1158 }
 0x120   : > { %v1070_v61 = vpack.c.bf16 %v1024_v4, %v4420_v6 }
 0x121   : > { %1283 = vmatpush.bf16.msrb.mxu3 %v1074_v59  ;;  %v1069_v17 = vpack.c.bf16 %v1023_v20, %v1021_v48 }
 0x122   : > { %1234 = vmatpush.bf16.msrb.mxu2 %v1073_v5 }
 0x124   : > { %v3735_v8 = vpop.permute.xlu1 %1143 }
 0x125   : > { %1284 = vmatpush.bf16.msrb.mxu3 %v1072_v53 }
 0x126   : > { %1235 = vmatpush.bf16.msrb.mxu2 %v1071_v31  ;;  %v3751_v54 = vpop.permute.xlu2 %1148 }
 0x127   : > { %v3737_v35 = vpop.permute.xlu0 %1133 }
 0x129   : > { %1285 = vmatpush.bf16.msrb.mxu3 %v1070_v61 }
 0x12a   : > { %1236 = vmatpush.bf16.msrb.mxu2 %v1069_v17 }
 0x12c   : > { %1286 = vmatmul.bf16.vlgmr.msrb.gmra.mxu3 %v2601_v47  ;;  %v3741_v13 = vpop.permute.xlu1 %1138 }
 0x12d   : > { %1237 = vmatmul.bf16.vlgmr.msrb.gmra.mxu2 %v2601_v47 }
 0x12e   : > { %v1124_v14 = vpop.permute.xlu2 %1123 }
 0x12f   : > { %v3743_v62 = vpop.permute.xlu0 %1128 }
 0x134   : > { %v1114_v38 = vpop.permute.xlu1 %1113 }
 0x136   : > { %v1119_v20 = vpop.permute.xlu2 %1118 }
 0x137   : > { %v1104_v3 = vpop.permute.xlu0 %1103 }
 0x13c   : > { %1291 = vmatmul.bf16.gmra.mxu3 %v2602_v45  ;;  %v1109_v33 = vpop.permute.xlu1 %1108 }
 0x13d   : > { %1242 = vmatmul.bf16.gmra.mxu2 %v2602_v45 }
 0x14c   : > { %1296 = vmatmul.bf16.gmra.mxu3 %v2603_v60 }
 0x14d   : > { %1247 = vmatmul.bf16.gmra.mxu2 %v2603_v60 }
 0x15c   : > { %1301 = vmatmul.bf16.gmra.mxu3 %v2604_v36 }
 0x15d   : > { %1252 = vmatmul.bf16.gmra.mxu2 %v2604_v36 }
 0x16c   : > { %1306 = vmatmul.bf16.gmra.mxu3 %v2605_v12 }
 0x16d   : > { %1257 = vmatmul.bf16.gmra.mxu2 %v2605_v12 }
 0x17c   : > { %1311 = vmatmul.bf16.gmra.mxu3 %v2606_v46 }
 0x17d   : > { %1262 = vmatmul.bf16.gmra.mxu2 %v2606_v46 }
 0x18c   : > { %1316 = vmatmul.bf16.gmra.mxu3 %v2607_v30 }
 0x18d   : > { %1267 = vmatmul.bf16.gmra.mxu2 %v2607_v30 }
 0x19c   : > { %1321 = vmatmul.bf16.gmra.mxu3 %v2608_v42 }
 0x19d   : > { %1272 = vmatmul.bf16.gmra.mxu2 %v2608_v42 }
 0x1af   : > { %v1287_v52 = vpop.f32.mrf.mxu3 }
 0x1b0   : > { %v1238_v10 = vpop.f32.mrf.mxu2  ;;  %v3747_v39 = vadd.f32 %v1287_v52, %v1104_v3 }
 0x1b1   : > { %v3749_v49 = vadd.f32 %v1238_v10, %v1104_v3 }
 0x1b3   : > { %v1327_v11 = vpack.c.bf16 %v3747_v39, %v3749_v49 }
 0x1b5   : > { %v1343_v16 = vunpack.c.l.bf16 %v1327_v11  ;;  %v1344_v48 = vunpack.c.h.bf16 %v1327_v11 }
 0x1b7   : > { %v1375_v32 = vsub.f32 0.0, %v1343_v16  ;;  %v1376_v2 = vsub.f32 0.0, %v1344_v48  ;;  %v1289_v24 = vpop.f32.mrf.mxu3 }
 0x1b8   : > { %v1240_v37 = vpop.f32.mrf.mxu2  ;;  %v3755_v29 = vadd.f32 %v1289_v24, %v1109_v33 }
 0x1b9   : > { %v1407_v34 = vpack.c.bf16 %v1376_v2, %v1375_v32  ;;  %v3757_v27 = vadd.f32 %v1240_v37, %v1109_v33 }
 0x1bb   : > { %v1423_v43 = vunpack.c.l.bf16 %v1407_v34  ;;  %v1424_v9 = vunpack.c.h.bf16 %v1407_v34  ;;  %v1328_v0 = vpack.c.bf16 %v3755_v29, %v3757_v27 }
 0x1bd   : > { %v1455_v58 = vmul.f32 1.442695, %v1423_v43  ;;  %v1457_v15 = vmul.f32 1.442695, %v1424_v9  ;;  %v1345_v41 = vunpack.c.l.bf16 %v1328_v0  ;;  %v1346_v23 = vunpack.c.h.bf16 %v1328_v0 }
 0x1bf   : > { %2808 = vpow2.f32 %v1455_v58  ;;  %v1377_v18 = vsub.f32 0.0, %v1345_v41  ;;  %v1378_v7 = vsub.f32 0.0, %v1346_v23  ;;  %v1292_v19 = vpop.f32.mrf.mxu3 }
 0x1c0   : > { %2810 = vpow2.f32 %v1457_v15  ;;  %v1243_v63 = vpop.f32.mrf.mxu2  ;;  %v3761_v59 = vadd.f32 %v1292_v19, %v1114_v38 }
 0x1c1   : > { %v1408_v21 = vpack.c.bf16 %v1378_v7, %v1377_v18  ;;  %v3763_v5 = vadd.f32 %v1243_v63, %v1114_v38 }
 0x1c3   : > { %v1425_v50 = vunpack.c.l.bf16 %v1408_v21  ;;  %v1426_v22 = vunpack.c.h.bf16 %v1408_v21  ;;  %v1329_v57 = vpack.c.bf16 %v3761_v59, %v3763_v5 }
 0x1c5   : > { %v2809_v55 = vpop.eup %2808  ;;  %v1459_v53 = vmul.f32 1.442695, %v1425_v50  ;;  %v1461_v25 = vmul.f32 1.442695, %v1426_v22  ;;  %v1347_v4 = vunpack.c.l.bf16 %v1329_v57  ;;  %v1348_v31 = vunpack.c.h.bf16 %v1329_v57 }
 0x1c6   : > { %v2811_v44 = vpop.eup %2810 }
 0x1c7   : > { %v3767_v6 = vpack.c.bf16 %v2811_v44, %v2809_v55  ;;  %2812 = vpow2.f32 %v1459_v53  ;;  %v1379_v61 = vsub.f32 0.0, %v1347_v4  ;;  %v1380_v17 = vsub.f32 0.0, %v1348_v31  ;;  %v1294_v47 = vpop.f32.mrf.mxu3 }
 0x1c8   : > { %2814 = vpow2.f32 %v1461_v25  ;;  %v1245_v45 = vpop.f32.mrf.mxu2  ;;  %v3769_v60 = vadd.f32 %v1294_v47, %v1119_v20 }
 0x1c9   : > { %v1536_v36 = vunpack.c.h.bf16 %v3767_v6  ;;  %v1409_v12 = vpack.c.bf16 %v1380_v17, %v1379_v61  ;;  %v3772_v46 = vadd.f32 %v1245_v45, %v1119_v20 }
 0x1cb   : > { %v1568_v30 = vadd.f32 1.0, %v1536_v36  ;;  %v1427_v42 = vunpack.c.l.bf16 %v1409_v12  ;;  %v1428_v38 = vunpack.c.h.bf16 %v1409_v12  ;;  %v1330_v3 = vpack.c.bf16 %v3769_v60, %v3772_v46 }
 0x1cd   : > { %v2813_v52 = vpop.eup %2812  ;;  %2816 = vrcp.f32 %v1568_v30  ;;  %v1463_v10 = vmul.f32 1.442695, %v1427_v42  ;;  %v1465_v11 = vmul.f32 1.442695, %v1428_v38  ;;  %v1349_v16 = vunpack.c.l.bf16 %v1330_v3 }
 0x1ce   : > { %v2815_v48 = vpop.eup %2814  ;;  %v1350_v33 = vunpack.c.h.bf16 %v1330_v3 }
 0x1cf   : > { %v3776_v32 = vpack.c.bf16 %v2815_v48, %v2813_v52  ;;  %2818 = vpow2.f32 %v1463_v10  ;;  %v1381_v2 = vsub.f32 0.0, %v1349_v16  ;;  %v1297_v24 = vpop.f32.mrf.mxu3 }
 0x1d0   : > { %2820 = vpow2.f32 %v1465_v11  ;;  %v1382_v37 = vsub.f32 0.0, %v1350_v33  ;;  %v1248_v34 = vpop.f32.mrf.mxu2  ;;  %v3778_v43 = vadd.f32 %v1297_v24, %v1124_v14 }
 0x1d1   : > { %v1538_v9 = vunpack.c.h.bf16 %v3776_v32  ;;  %v3781_v0 = vadd.f32 %v1248_v34, %v1124_v14 }
 0x1d2   : > { %v1410_v58 = vpack.c.bf16 %v1382_v37, %v1381_v2 }
 0x1d3   : > { %v2817_v15 = vpop.eup %2816  ;;  %v1570_v41 = vadd.f32 1.0, %v1538_v9  ;;  %v1331_v23 = vpack.c.bf16 %v3778_v43, %v3781_v0 }
 0x1d4   : > { %v3786_v18 = vmul.f32 %v2817_v15, %v3747_v39  ;;  %v1429_v7 = vunpack.c.l.bf16 %v1410_v58  ;;  %v1430_v19 = vunpack.c.h.bf16 %v1410_v58 }
 0x1d5   : > { %v2819_v63 = vpop.eup %2818  ;;  %2822 = vrcp.f32 %v1570_v41  ;;  %v1351_v21 = vunpack.c.l.bf16 %v1331_v23  ;;  %v1352_v50 = vunpack.c.h.bf16 %v1331_v23 }
 0x1d6   : > { %v2821_v22 = vpop.eup %2820  ;;  %v1467_v57 = vmul.f32 1.442695, %v1429_v7  ;;  %v1469_v55 = vmul.f32 1.442695, %v1430_v19 }
 0x1d7   : > { %v3788_v14 = vpack.c.bf16 %v2821_v22, %v2819_v63  ;;  %v1383_v53 = vsub.f32 0.0, %v1351_v21  ;;  %v1384_v25 = vsub.f32 0.0, %v1352_v50  ;;  %v1299_v4 = vpop.f32.mrf.mxu3 }
 0x1d8   : > { %2824 = vpow2.f32 %v1467_v57  ;;  %v1250_v31 = vpop.f32.mrf.mxu2  ;;  %v3791_v44 = vadd.f32 %v1299_v4, %v3743_v62 }
 0x1d9   : > { %v1540_v39 = vunpack.c.h.bf16 %v3788_v14  ;;  %2826 = vpow2.f32 %v1469_v55  ;;  %v1411_v20 = vpack.c.bf16 %v1384_v25, %v1383_v53  ;;  %v3795_v61 = vadd.f32 %v1250_v31, %v3743_v62 }
 0x1db   : > { %v2823_v17 = vpop.eup %2822  ;;  %v1572_v47 = vadd.f32 1.0, %v1540_v39  ;;  %v1431_v45 = vunpack.c.l.bf16 %v1411_v20  ;;  %v1432_v36 = vunpack.c.h.bf16 %v1411_v20  ;;  %v1332_v12 = vpack.c.bf16 %v3791_v44, %v3795_v61 }
 0x1dc   : > { %v3800_v30 = vmul.f32 %v2823_v17, %v3755_v29 }
 0x1dd   : > { %2828 = vrcp.f32 %v1572_v47  ;;  %v1471_v42 = vmul.f32 1.442695, %v1431_v45  ;;  %v1473_v38 = vmul.f32 1.442695, %v1432_v36  ;;  %v1353_v3 = vunpack.c.l.bf16 %v1332_v12 }
 0x1de   : > { %v2825_v52 = vpop.eup %2824  ;;  %v1354_v10 = vunpack.c.h.bf16 %v1332_v12 }
 0x1df   : > { %v2827_v11 = vpop.eup %2826  ;;  %2830 = vpow2.f32 %v1471_v42  ;;  %v1385_v62 = vsub.f32 0.0, %v1353_v3  ;;  %v1302_v16 = vpop.f32.mrf.mxu3 }
 0x1e0   : > { %v3802_v48 = vpack.c.bf16 %v2827_v11, %v2825_v52  ;;  %2832 = vpow2.f32 %v1473_v38  ;;  %v1386_v33 = vsub.f32 0.0, %v1354_v10  ;;  %v1253_v2 = vpop.f32.mrf.mxu2  ;;  %v3805_v24 = vadd.f32 %v1302_v16, %v3737_v35 }
 0x1e1   : > { %v3808_v29 = vadd.f32 %v1253_v2, %v3737_v35 }
 0x1e2   : > { %v1542_v37 = vunpack.c.h.bf16 %v3802_v48  ;;  %v1412_v34 = vpack.c.bf16 %v1386_v33, %v1385_v62 }
 0x1e3   : > { %v2829_v9 = vpop.eup %2828  ;;  %v1333_v58 = vpack.c.bf16 %v3805_v24, %v3808_v29 }
 0x1e4   : > { %v3814_v15 = vmul.f32 %v2829_v9, %v3761_v59  ;;  %v1574_v41 = vadd.f32 1.0, %v1542_v37  ;;  %v1433_v23 = vunpack.c.l.bf16 %v1412_v34  ;;  %v1434_v7 = vunpack.c.h.bf16 %v1412_v34 }
 0x1e5   : > { %v2831_v19 = vpop.eup %2830  ;;  %v1355_v63 = vunpack.c.l.bf16 %v1333_v58  ;;  %v1356_v21 = vunpack.c.h.bf16 %v1333_v58  ;;  %v1535_v9 = vunpack.c.l.bf16 %v3767_v6 }
 0x1e6   : > { %v2833_v50 = vpop.eup %2832  ;;  %2834 = vrcp.f32 %v1574_v41  ;;  %v1475_v35 = vmul.f32 1.442695, %v1433_v23  ;;  %v1477_v22 = vmul.f32 1.442695, %v1434_v7 }
 0x1e7   : > { %v3816_v57 = vpack.c.bf16 %v2833_v50, %v2831_v19  ;;  %v1387_v55 = vsub.f32 0.0, %v1355_v63  ;;  %v1388_v53 = vsub.f32 0.0, %v1356_v21  ;;  %v1304_v25 = vpop.f32.mrf.mxu3  ;;  %v1567_v19 = vadd.f32 1.0, %v1535_v9 }
 0x1e8   : > { %2836 = vpow2.f32 %v1475_v35  ;;  %v1255_v4 = vpop.f32.mrf.mxu2  ;;  %v3819_v59 = vadd.f32 %v1304_v25, %v3741_v13 }
 0x1e9   : > { %v1544_v31 = vunpack.c.h.bf16 %v3816_v57  ;;  %2838 = vpow2.f32 %v1477_v22  ;;  %v1413_v39 = vpack.c.bf16 %v1388_v53, %v1387_v55  ;;  %v3823_v20 = vadd.f32 %v1255_v4, %v3741_v13 }
 0x1eb   : > { %v1576_v17 = vadd.f32 1.0, %v1544_v31  ;;  %v1435_v47 = vunpack.c.l.bf16 %v1413_v39  ;;  %v1436_v45 = vunpack.c.h.bf16 %v1413_v39  ;;  %v1334_v36 = vpack.c.bf16 %v3819_v59, %v3823_v20 }
 0x1ec   : > { %v2835_v12 = vpop.eup %2834 }
 0x1ed   : > { %v3828_v42 = vmul.f32 %v2835_v12, %v3769_v60  ;;  %2840 = vrcp.f32 %v1576_v17  ;;  %v1479_v38 = vmul.f32 1.442695, %v1435_v47  ;;  %v1481_v3 = vmul.f32 1.442695, %v1436_v45 }
 0x1ee   : > { %v2837_v52 = vpop.eup %2836  ;;  %v1357_v10 = vunpack.c.l.bf16 %v1334_v36  ;;  %v1358_v11 = vunpack.c.h.bf16 %v1334_v36  ;;  %v1537_v36 = vunpack.c.l.bf16 %v3776_v32 }
 0x1ef   : > { %v2839_v62 = vpop.eup %2838  ;;  %2842 = vpow2.f32 %v1479_v38  ;;  %v1307_v13 = vpop.f32.mrf.mxu3 }
 0x1f0   : > { %v3830_v16 = vpack.c.bf16 %v2839_v62, %v2837_v52  ;;  %2844 = vpow2.f32 %v1481_v3  ;;  %v1389_v33 = vsub.f32 0.0, %v1357_v10  ;;  %v1390_v2 = vsub.f32 0.0, %v1358_v11  ;;  %v1258_v37 = vpop.f32.mrf.mxu2 }
 0x1f1   : > { %v3833_v34 = vadd.f32 %v1258_v37, %v3735_v8  ;;  %v3836_v60 = vadd.f32 %v1307_v13, %v3735_v8  ;;  %2846 = vrcp.f32 %v1567_v19  ;;  %v1569_v11 = vadd.f32 1.0, %v1537_v36 }
 0x1f2   : > { %v1546_v58 = vunpack.c.h.bf16 %v3830_v16  ;;  %v1414_v41 = vpack.c.bf16 %v1390_v2, %v1389_v33 }
 0x1f3   : > { %v2841_v23 = vpop.eup %2840  ;;  %v1335_v7 = vpack.c.bf16 %v3836_v60, %v3833_v34 }
 0x1f4   : > { %v3843_v63 = vmul.f32 %v2841_v23, %v3778_v43  ;;  %v1578_v21 = vadd.f32 1.0, %v1546_v58  ;;  %v1437_v50 = vunpack.c.l.bf16 %v1414_v41  ;;  %v1438_v35 = vunpack.c.h.bf16 %v1414_v41 }
 0x1f5   : > { %v2843_v22 = vpop.eup %2842  ;;  %v1359_v55 = vunpack.c.l.bf16 %v1335_v7  ;;  %v1360_v8 = vunpack.c.h.bf16 %v1335_v7  ;;  %v1539_v23 = vunpack.c.l.bf16 %v3788_v14 }
 0x1f6   : > { %v2845_v53 = vpop.eup %2844  ;;  %2848 = vrcp.f32 %v1578_v21  ;;  %v1483_v6 = vmul.f32 1.442695, %v1437_v50  ;;  %v1485_v25 = vmul.f32 1.442695, %v1438_v35 }
 0x1f7   : > { %v3845_v4 = vpack.c.bf16 %v2845_v53, %v2843_v22  ;;  %v1391_v31 = vsub.f32 0.0, %v1359_v55  ;;  %v1392_v39 = vsub.f32 0.0, %v1360_v8  ;;  %v1309_v17 = vpop.f32.mrf.mxu3  ;;  %v2847_v12 = vpop.eup %2846  ;;  %v1571_v19 = vadd.f32 1.0, %v1539_v23 }
 0x1f8   : > { %2850 = vpow2.f32 %v1483_v6  ;;  %v1260_v47 = vpop.f32.mrf.mxu2  ;;  %v3850_v62 = vmul.f32 %v2847_v12, %v3749_v49 }
 0x1f9   : > { %v1548_v43 = vunpack.c.h.bf16 %v3845_v4  ;;  %2852 = vpow2.f32 %v1485_v25  ;;  %v1415_v45 = vpack.c.bf16 %v1392_v39, %v1391_v31  ;;  %v3873_v31 = vadd.f32 %v1309_v17, %v3751_v54 }
 0x1fb   : > { %v1580_v38 = vadd.f32 1.0, %v1548_v43  ;;  %v1439_v3 = vunpack.c.l.bf16 %v1415_v45  ;;  %v1440_v52 = vunpack.c.h.bf16 %v1415_v45  ;;  %v3877_v45 = vadd.f32 %v1260_v47, %v3751_v54 }
 0x1fc   : > { %v2849_v10 = vpop.eup %2848 }
 0x1fd   : > { %v3853_v13 = vmul.f32 %v2849_v10, %v3791_v44  ;;  %2854 = vrcp.f32 %v1580_v38  ;;  %v1487_v33 = vmul.f32 1.442695, %v1439_v3  ;;  %v1489_v2 = vmul.f32 1.442695, %v1440_v52 }
 0x1fe   : > { %v2851_v37 = vpop.eup %2850  ;;  %2856 = vrcp.f32 %v1569_v11  ;;  %v1336_v54 = vpack.c.bf16 %v3873_v31, %v3877_v45 }
 0x1ff   : > { %v2853_v9 = vpop.eup %2852  ;;  %2858 = vpow2.f32 %v1487_v33  ;;  %v1312_v32 = vpop.f32.mrf.mxu3 }
 0x200   : > { %v3855_v58 = vpack.c.bf16 %v2853_v9, %v2851_v37  ;;  %2860 = vpow2.f32 %v1489_v2  ;;  %v1263_v41 = vpop.f32.mrf.mxu2  ;;  %v3883_v12 = vadd.f32 %v1312_v32, %v3745_v51  ;;  %v1361_v33 = vunpack.c.l.bf16 %v1336_v54 }
 0x201   : > { %2862 = vrcp.f32 %v1571_v19  ;;  %v3880_v36 = vadd.f32 %v1263_v41, %v3745_v51  ;;  %v1543_v51 = vunpack.c.l.bf16 %v3816_v57  ;;  %v1362_v2 = vunpack.c.h.bf16 %v1336_v54 }
 0x202   : > { %v1550_v49 = vunpack.c.h.bf16 %v3855_v58  ;;  %v1393_v19 = vsub.f32 0.0, %v1361_v33 }
 0x203   : > { %v2855_v7 = vpop.eup %2854  ;;  %v1575_v37 = vadd.f32 1.0, %v1543_v51 }
 0x204   : > { %v2857_v44 = vpop.eup %2856  ;;  %v3860_v21 = vmul.f32 %v2855_v7, %v3805_v24  ;;  %v1582_v50 = vadd.f32 1.0, %v1550_v49 }
 0x205   : > { %v2859_v35 = vpop.eup %2858  ;;  %v3863_v22 = vmul.f32 %v2857_v44, %v3757_v27  ;;  %v1541_v27 = vunpack.c.l.bf16 %v3802_v48  ;;  %v1337_v48 = vpack.c.bf16 %v3883_v12, %v3880_v36  ;;  %v1394_v44 = vsub.f32 0.0, %v1362_v2 }
 0x206   : > { %v2861_v55 = vpop.eup %2860  ;;  %2864 = vrcp.f32 %v1582_v50 }
 0x207   : > { %v3867_v14 = vpack.c.bf16 %v2861_v55, %v2859_v35  ;;  %v1314_v53 = vpop.f32.mrf.mxu3  ;;  %v2863_v39 = vpop.eup %2862  ;;  %v1573_v3 = vadd.f32 1.0, %v1541_v27  ;;  %v1364_v32 = vunpack.c.h.bf16 %v1337_v48  ;;  %v1545_v27 = vunpack.c.l.bf16 %v3830_v16 }
 0x208   : > { %v1265_v25 = vpop.f32.mrf.mxu2  ;;  %v3886_v52 = vmul.f32 %v2863_v39, %v3763_v5  ;;  %v1363_v5 = vunpack.c.l.bf16 %v1337_v48  ;;  %v3903_v23 = vadd.f32 %v1314_v53, %v3730_v1 }
 0x209   : > { %v1552_v24 = vunpack.c.h.bf16 %v3867_v14  ;;  %v3900_v41 = vadd.f32 %v1265_v25, %v3730_v1  ;;  %v1396_v25 = vsub.f32 0.0, %v1364_v32  ;;  %v1577_v48 = vadd.f32 1.0, %v1545_v27 }
 0x20a   : > { %v1395_v53 = vsub.f32 0.0, %v1363_v5 }
 0x20b   : > { %v1584_v43 = vadd.f32 1.0, %v1552_v24  ;;  %v1338_v35 = vpack.c.bf16 %v3903_v23, %v3900_v41 }
 0x20c   : > { %v2865_v38 = vpop.eup %2864 }
 0x20d   : > { %v3889_v17 = vmul.f32 %v2865_v38, %v3819_v59  ;;  %2866 = vrcp.f32 %v1584_v43  ;;  %v3929_v43 = vpack.c.bf16 %v1394_v44, %v1393_v19  ;;  %v1366_v54 = vunpack.c.h.bf16 %v1338_v35 }
 0x20e   : > { %2868 = vrcp.f32 %v1573_v3  ;;  %v1365_v3 = vunpack.c.l.bf16 %v1338_v35 }
 0x20f   : > { %v1317_v47 = vpop.f32.mrf.mxu3  ;;  %2870 = vrcp.f32 %v1575_v37  ;;  %v1441_v16 = vunpack.c.l.bf16 %v3929_v43  ;;  %v1398_v37 = vsub.f32 0.0, %v1366_v54 }
 0x210   : > { %v1268_v10 = vpop.f32.mrf.mxu2  ;;  %v3909_v57 = vadd.f32 %v1317_v47, %v3723_v26  ;;  %2872 = vrcp.f32 %v1577_v48  ;;  %v1397_v5 = vsub.f32 0.0, %v1365_v3 }
 0x211   : > { %v3906_v49 = vadd.f32 %v1268_v10, %v3723_v26  ;;  %v3936_v10 = vpack.c.bf16 %v1396_v25, %v1395_v53 }
 0x212   : > { %v1418_v3 = vpack.c.bf16 %v1398_v37, %v1397_v5 }
 0x213   : > { %v2867_v11 = vpop.eup %2866  ;;  %v1443_v35 = vunpack.c.l.bf16 %v3936_v10 }
 0x214   : > { %v2869_v9 = vpop.eup %2868  ;;  %v3897_v59 = vmul.f32 %v2867_v11, %v3836_v60 }
 0x215   : > { %v3912_v7 = vmul.f32 %v2869_v9, %v3772_v46  ;;  %v1339_v46 = vpack.c.bf16 %v3909_v57, %v3906_v49  ;;  %v2871_v39 = vpop.eup %2870 }
 0x216   : > { %v3934_v47 = vmul.f32 %v2871_v39, %v3781_v0  ;;  %v2873_v39 = vpop.eup %2872 }
 0x217   : > { %v1319_v50 = vpop.f32.mrf.mxu3  ;;  %v1367_v51 = vunpack.c.l.bf16 %v1339_v46  ;;  %v1368_v11 = vunpack.c.h.bf16 %v1339_v46 }
 0x218   : > { %v1270_v55 = vpop.f32.mrf.mxu2  ;;  %v3921_v26 = vadd.f32 %v1319_v50, %v3728_v28  ;;  %v1547_v50 = vunpack.c.l.bf16 %v3845_v4  ;;  %v1495_v4 = vmul.f32 1.442695, %v1443_v35 }
 0x219   : > { %v3926_v24 = vadd.f32 %v1270_v55, %v3728_v28  ;;  %v1399_v55 = vsub.f32 0.0, %v1367_v51  ;;  %v1400_v53 = vsub.f32 0.0, %v1368_v11  ;;  %v1684_v51 = vpack.c.bf16 %v3853_v13, %v3843_v63 }
 0x21a   : > { %v1579_v27 = vadd.f32 1.0, %v1547_v50  ;;  %v1445_v50 = vunpack.c.l.bf16 %v1418_v3  ;;  %v4424_v63 = vpack.c.bf16 %v3800_v30, %v3786_v18  ;;  %v4425_v13 = vpack.c.bf16 %v3863_v22, %v3850_v62  ;;  %v2612_v18 = vld [vmem:[%s4387_s6 + $0x18] sm:$0xff]  ;;  %v2613_v30 = vld [vmem:[%s4387_s6 + $0x20] sm:$0xff]  ;;  %v2614_v62 = vld [vmem:[%s4387_s6 + $0x28] sm:$0xff]  ;;  %v4042_v22 = vpop.permute.xlu2 %1783 }
 0x21b   : > { %v1340_v38 = vpack.c.bf16 %v3921_v26, %v3926_v24 }
 0x21c   : > { %2874 = vrcp.f32 %v1579_v27 }
 0x21d   : > { %v1369_v28 = vunpack.c.l.bf16 %v1340_v38  ;;  %v1370_v33 = vunpack.c.h.bf16 %v1340_v38  ;;  %v1491_v38 = vmul.f32 1.442695, %v1441_v16 }
 0x21f   : > { %v1322_v2 = vpop.f32.mrf.mxu3  ;;  %v1401_v9 = vsub.f32 0.0, %v1369_v28  ;;  %v1402_v32 = vsub.f32 0.0, %v1370_v33  ;;  %2876 = vpow2.f32 %v1491_v38 }
 0x220   : > { %v1273_v19 = vpop.f32.mrf.mxu2  ;;  %v3943_v0 = vadd.f32 %v1322_v2, %v3721_v56  ;;  %v1419_v2 = vpack.c.bf16 %v1400_v53, %v1399_v55  ;;  %v1444_v55 = vunpack.c.h.bf16 %v3936_v10  ;;  %2878 = vpow2.f32 %v1495_v4 }
 0x221   : > { %v3940_v44 = vadd.f32 %v1273_v19, %v3721_v56  ;;  %v1420_v25 = vpack.c.bf16 %v1402_v32, %v1401_v9  ;;  %v3950_v56 = vmul.f32 %v2873_v39, %v3795_v61 }
 0x222   : > { %v1447_v53 = vunpack.c.l.bf16 %v1419_v2  ;;  %v2875_v27 = vpop.eup %2874  ;;  %v1448_v39 = vunpack.c.h.bf16 %v1419_v2 }
 0x223   : > { %v1341_v46 = vpack.c.bf16 %v3943_v0, %v3940_v44  ;;  %v1449_v54 = vunpack.c.l.bf16 %v1420_v25  ;;  %v1450_v48 = vunpack.c.h.bf16 %v1420_v25 }
 0x225   : > { %v1371_v28 = vunpack.c.l.bf16 %v1341_v46  ;;  %v1372_v33 = vunpack.c.h.bf16 %v1341_v46  ;;  %v1507_v5 = vmul.f32 1.442695, %v1449_v54  ;;  %v1509_v61 = vmul.f32 1.442695, %v1450_v48 }
 0x226   : > { %v1549_v46 = vunpack.c.l.bf16 %v3855_v58  ;;  %v1503_v58 = vmul.f32 1.442695, %v1447_v53 }
 0x227   : > { %v1403_v11 = vsub.f32 0.0, %v1371_v28  ;;  %v1404_v9 = vsub.f32 0.0, %v1372_v33  ;;  %v1324_v32 = vpop.f32.mrf.mxu3  ;;  %v1446_v33 = vunpack.c.h.bf16 %v1418_v3  ;;  %2880 = vpow2.f32 %v1507_v5 }
 0x228   : > { %v1275_v37 = vpop.f32.mrf.mxu2  ;;  %v3957_v19 = vadd.f32 %v1324_v32, %v3739_v40  ;;  %v1581_v48 = vadd.f32 1.0, %v1549_v46  ;;  %2882 = vpow2.f32 %v1509_v61 }
 0x229   : > { %v1421_v25 = vpack.c.bf16 %v1404_v9, %v1403_v11  ;;  %v3960_v35 = vadd.f32 %v1275_v37, %v3739_v40  ;;  %v3967_v11 = vmul.f32 %v2875_v27, %v3808_v29  ;;  %v1499_v40 = vmul.f32 1.442695, %v1445_v50  ;;  %v3969_v9 = vpop.eup %2876 }
 0x22a   : > { %2884 = vrcp.f32 %v1581_v48  ;;  %v1442_v37 = vunpack.c.h.bf16 %v3929_v43  ;;  %v2879_v3 = vpop.eup %2878  ;;  %v1501_v5 = vmul.f32 1.442695, %v1446_v33  ;;  %v1551_v50 = vunpack.c.l.bf16 %v3867_v14 }
 0x22b   : > { %v1451_v38 = vunpack.c.l.bf16 %v1421_v25  ;;  %v1452_v54 = vunpack.c.h.bf16 %v1421_v25  ;;  %v1342_v28 = vpack.c.bf16 %v3957_v19, %v3960_v35  ;;  %v1505_v25 = vmul.f32 1.442695, %v1448_v39 }
 0x22c   : > { %v1497_v27 = vmul.f32 1.442695, %v1444_v55 }
 0x22d   : > { %v1511_v10 = vmul.f32 1.442695, %v1451_v38  ;;  %v1513_v4 = vmul.f32 1.442695, %v1452_v54  ;;  %v1373_v32 = vunpack.c.l.bf16 %v1342_v28  ;;  %v1374_v2 = vunpack.c.h.bf16 %v1342_v28  ;;  %v2881_v61 = vpop.eup %2880 }
 0x22e   : > { %v2883_v53 = vpop.eup %2882  ;;  %v1493_v54 = vmul.f32 1.442695, %v1442_v37  ;;  %v1583_v28 = vadd.f32 1.0, %v1551_v50 }
 0x22f   : > { %2886 = vpow2.f32 %v1511_v10  ;;  %v1405_v46 = vsub.f32 0.0, %v1373_v32  ;;  %v1406_v29 = vsub.f32 0.0, %v1374_v2  ;;  %v1532_v14 = vpack.c.bf16 %v2883_v53, %v2881_v61 }
 0x230   : > { %2888 = vpow2.f32 %v1513_v4  ;;  %v2885_v48 = vpop.eup %2884 }
 0x231   : > { %2890 = vpow2.f32 %v1499_v40  ;;  %v1422_v38 = vpack.c.bf16 %v1406_v29, %v1405_v46  ;;  %v3974_v33 = vmul.f32 %v2885_v48, %v3823_v20  ;;  %v1562_v46 = vunpack.c.h.bf16 %v1532_v14 }
 0x232   : > { %2892 = vpow2.f32 %v1503_v58  ;;  %v1561_v50 = vunpack.c.l.bf16 %v1532_v14 }
 0x233   : > { %2894 = vpow2.f32 %v1505_v25  ;;  %v1453_v43 = vunpack.c.l.bf16 %v1422_v38  ;;  %v1454_v39 = vunpack.c.h.bf16 %v1422_v38  ;;  %v1685_v32 = vpack.c.bf16 %v3974_v33, %v3967_v11 }
 0x234   : > { %2896 = vpow2.f32 %v1501_v5  ;;  %v1686_v25 = vpack.c.bf16 %v3889_v17, %v3860_v21  ;;  %v4423_v21 = vpack.c.bf16 %v3912_v7, %v3886_v52  ;;  %v2615_v52 = vld [vmem:[%s4387_s6 + $0x30] sm:$0xff]  ;;  %v4049_v17 = vpop.permute.xlu2 %1778 }
 0x235   : > { %v2887_v10 = vpop.eup %2886  ;;  %2898 = vrcp.f32 %v1583_v28  ;;  %v1515_v4 = vmul.f32 1.442695, %v1453_v43  ;;  %v1517_v55 = vmul.f32 1.442695, %v1454_v39  ;;  %v1594_v39 = vadd.f32 1.0, %v1562_v46 }
 0x236   : > { %v2889_v40 = vpop.eup %2888  ;;  %2900 = vpow2.f32 %v1497_v27 }
 0x237   : > { %v2891_v58 = vpop.eup %2890  ;;  %2902 = vpow2.f32 %v1493_v54  ;;  %v1533_v37 = vpack.c.bf16 %v2889_v40, %v2887_v10 }
 0x238   : > { %v2893_v2 = vpop.eup %2892  ;;  %2904 = vpow2.f32 %v1515_v4  ;;  %v1593_v4 = vadd.f32 1.0, %v1561_v50 }
 0x239   : > { %v2895_v5 = vpop.eup %2894  ;;  %2906 = vpow2.f32 %v1517_v55  ;;  %v1564_v38 = vunpack.c.h.bf16 %v1533_v37  ;;  %v1563_v28 = vunpack.c.l.bf16 %v1533_v37 }
 0x23a   : > { %v2897_v20 = vpop.eup %2896  ;;  %v1531_v27 = vpack.c.bf16 %v2895_v5, %v2893_v2  ;;  %2908 = vrcp.f32 %v1594_v39 }
 0x23b   : > { %v2899_v29 = vpop.eup %2898  ;;  %v1530_v43 = vpack.c.bf16 %v2897_v20, %v2891_v58  ;;  %v1596_v55 = vadd.f32 1.0, %v1564_v38  ;;  %v1595_v14 = vadd.f32 1.0, %v1563_v28  ;;  %2910 = vrcp.f32 %v1593_v4 }
 0x23c   : > { %v2901_v61 = vpop.eup %2900  ;;  %v3981_v53 = vmul.f32 %v2899_v29, %v3833_v34  ;;  %v1560_v6 = vunpack.c.h.bf16 %v1531_v27  ;;  %v1559_v60 = vunpack.c.l.bf16 %v1531_v27 }
 0x23d   : > { %v2903_v54 = vpop.eup %2902  ;;  %v1529_v40 = vpack.c.bf16 %v2901_v61, %v2879_v3  ;;  %v1558_v2 = vunpack.c.h.bf16 %v1530_v43  ;;  %v1557_v37 = vunpack.c.l.bf16 %v1530_v43  ;;  %2912 = vrcp.f32 %v1596_v55 }
 0x23e   : > { %v2905_v48 = vpop.eup %2904  ;;  %v1528_v1 = vpack.c.bf16 %v2903_v54, %v3969_v9  ;;  %v1592_v16 = vadd.f32 1.0, %v1560_v6  ;;  %2914 = vrcp.f32 %v1595_v14  ;;  %v1591_v3 = vadd.f32 1.0, %v1559_v60 }
 0x23f   : > { %v2907_v10 = vpop.eup %2906  ;;  %v1556_v29 = vunpack.c.h.bf16 %v1529_v40  ;;  %v1555_v46 = vunpack.c.l.bf16 %v1529_v40  ;;  %v1590_v61 = vadd.f32 1.0, %v1558_v2  ;;  %v1589_v9 = vadd.f32 1.0, %v1557_v37 }
 0x240   : > { %v1534_v8 = vpack.c.bf16 %v2907_v10, %v2905_v48  ;;  %v1554_v50 = vunpack.c.h.bf16 %v1528_v1  ;;  %v1553_v27 = vunpack.c.l.bf16 %v1528_v1  ;;  %v2909_v38 = vpop.eup %2908 }
 0x241   : > { %v1588_v54 = vadd.f32 1.0, %v1556_v29  ;;  %v1587_v28 = vadd.f32 1.0, %v1555_v46  ;;  %v1658_v2 = vmul.f32 %v2909_v38, %v3921_v26 }
 0x242   : > { %v1566_v5 = vunpack.c.h.bf16 %v1534_v8  ;;  %v1565_v34 = vunpack.c.l.bf16 %v1534_v8  ;;  %v2911_v8 = vpop.eup %2910  ;;  %v1586_v6 = vadd.f32 1.0, %v1554_v50  ;;  %v1585_v39 = vadd.f32 1.0, %v1553_v27 }
 0x243   : > { %v2913_v48 = vpop.eup %2912  ;;  %v1657_v37 = vmul.f32 %v2911_v8, %v3926_v24 }
 0x244   : > { %v1598_v58 = vadd.f32 1.0, %v1566_v5  ;;  %v1597_v20 = vadd.f32 1.0, %v1565_v34  ;;  %v2915_v43 = vpop.eup %2914  ;;  %v1660_v40 = vmul.f32 %v2913_v48, %v3943_v0 }
 0x246   : > { %2916 = vrcp.f32 %v1598_v58 }
 0x247   : > { %2918 = vrcp.f32 %v1597_v20 }
 0x248   : > { %2920 = vrcp.f32 %v1592_v16  ;;  %v1659_v16 = vmul.f32 %v2915_v43, %v3940_v44 }
 0x249   : > { %2922 = vrcp.f32 %v1591_v3 }
 0x24a   : > { %2924 = vrcp.f32 %v1590_v61 }
 0x24b   : > { %2926 = vrcp.f32 %v1589_v9 }
 0x24c   : > { %v2917_v60 = vpop.eup %2916  ;;  %2928 = vrcp.f32 %v1588_v54 }
 0x24d   : > { %v2919_v10 = vpop.eup %2918  ;;  %v1662_v4 = vmul.f32 %v2917_v60, %v3957_v19  ;;  %2930 = vrcp.f32 %v1587_v28 }
 0x24e   : > { %v2921_v1 = vpop.eup %2920  ;;  %2932 = vrcp.f32 %v1586_v6  ;;  %v1661_v55 = vmul.f32 %v2919_v10, %v3960_v35 }
 0x24f   : > { %v2923_v14 = vpop.eup %2922  ;;  %v1694_v5 = vpack.c.bf16 %v1662_v4, %v1660_v40  ;;  %2934 = vrcp.f32 %v1585_v39  ;;  %v1656_v0 = vmul.f32 %v2921_v1, %v3909_v57 }
 0x250   : > { %v2925_v34 = vpop.eup %2924  ;;  %v1693_v29 = vpack.c.bf16 %v1661_v55, %v1659_v16  ;;  %v1655_v20 = vmul.f32 %v2923_v14, %v3906_v49 }
 0x251   : > { %v2927_v58 = vpop.eup %2926  ;;  %1888 = vmatpush.bf16.msrb.mxu1 %v1694_v5  ;;  %v1654_v35 = vmul.f32 %v2925_v34, %v3903_v23  ;;  %v1692_v3 = vpack.c.bf16 %v1658_v2, %v1656_v0 }
 0x252   : > { %v2929_v19 = vpop.eup %2928  ;;  %1839 = vmatpush.bf16.msrb.mxu0 %v1693_v29  ;;  %v1691_v26 = vpack.c.bf16 %v1657_v37, %v1655_v20  ;;  %v1653_v50 = vmul.f32 %v2927_v58, %v3900_v41  ;;  %v4053_v41 = vpop.permute.xlu2 %1753 }
 0x253   : > { %v2931_v44 = vpop.eup %2930  ;;  %v1652_v9 = vmul.f32 %v2929_v19, %v3883_v12  ;;  %v4044_v12 = vpop.permute.xlu1 %1773 }
 0x254   : > { %v2933_v46 = vpop.eup %2932  ;;  %v1651_v57 = vmul.f32 %v2931_v44, %v3880_v36  ;;  %v2609_v36 = vld [vmem:[%s4387_s6] sm:$0xff] }
 0x255   : > { %v2935_v61 = vpop.eup %2934  ;;  %1889 = vmatpush.bf16.msrb.mxu1 %v1692_v3  ;;  %v1650_v24 = vmul.f32 %v2933_v46, %v3873_v31  ;;  %v1690_v27 = vpack.c.bf16 %v1654_v35, %v1652_v9  ;;  %v4421_v31 = vpack.c.bf16 %v3950_v56, %v3934_v47  ;;  %v2616_v47 = vld [vmem:[%s4387_s6 + $0x38] sm:$0xff]  ;;  %v4060_v56 = vpop.permute.xlu0 %1788 }
 0x256   : > { %1840 = vmatpush.bf16.msrb.mxu0 %v1691_v26  ;;  %v1689_v38 = vpack.c.bf16 %v1653_v50, %v1651_v57  ;;  %v1649_v49 = vmul.f32 %v2935_v61, %v3877_v45  ;;  %v4422_v45 = vpack.c.bf16 %v3828_v42, %v3814_v15  ;;  %v2610_v15 = vld [vmem:[%s4387_s6 + $0x8] sm:$0xff]  ;;  %v2611_v42 = vld [vmem:[%s4387_s6 + $0x10] sm:$0xff] }
 0x257   : > { %v1688_v23 = vpack.c.bf16 %v1650_v24, %v3897_v59 }
 0x258   : > { %v1687_v54 = vpack.c.bf16 %v1649_v49, %v3981_v53 }
 0x259   : > { %1890 = vmatpush.bf16.msrb.mxu1 %v1690_v27 }
 0x25a   : > { %1841 = vmatpush.bf16.msrb.mxu0 %v1689_v38 }
 0x25b   : > { %v4051_v59 = vpop.permute.xlu1 %1768 }
 0x25d   : > { %1891 = vmatpush.bf16.msrb.mxu1 %v1688_v23  ;;  %v4066_v33 = vpop.permute.xlu0 %1763 }
 0x25e   : > { %1842 = vmatpush.bf16.msrb.mxu0 %v1687_v54 }
 0x261   : > { %1892 = vmatpush.bf16.msrb.mxu1 %v1686_v25 }
 0x262   : > { %1843 = vmatpush.bf16.msrb.mxu0 %v1685_v32 }
 0x263   : > { %v4055_v7 = vpop.permute.xlu1 %1743 }
 0x265   : > { %1893 = vmatpush.bf16.msrb.mxu1 %v1684_v51  ;;  %v4062_v51 = vpop.permute.xlu2 %1748  ;;  %v4072_v6 = vpop.permute.xlu0 %1758 }
 0x266   : > { %1844 = vmatpush.bf16.msrb.mxu0 %v4421_v31 }
 0x269   : > { %1894 = vmatpush.bf16.msrb.mxu1 %v4422_v45 }
 0x26a   : > { %1845 = vmatpush.bf16.msrb.mxu0 %v4423_v21 }
 0x26b   : > { %v4064_v11 = vpop.permute.xlu1 %1738 }
 0x26d   : > { %1895 = vmatpush.bf16.msrb.mxu1 %v4424_v63  ;;  %v1724_v32 = vpop.permute.xlu2 %1723  ;;  %v1734_v37 = vpop.permute.xlu0 %1733 }
 0x26e   : > { %1846 = vmatpush.bf16.msrb.mxu0 %v4425_v13 }
 0x270   : > { %1896 = vmatmul.bf16.vlgmr.msrb.gmra.mxu1 %v2609_v36 }
 0x271   : > { %1847 = vmatmul.bf16.vlgmr.msrb.gmra.mxu0 %v2609_v36 }
 0x273   : > { %v1714_v25 = vpop.permute.xlu1 %1713 }
 0x275   : > { %v1719_v10 = vpop.permute.xlu2 %1718  ;;  %v1729_v45 = vpop.permute.xlu0 %1728 }
 0x280   : > { %1901 = vmatmul.bf16.gmra.mxu1 %v2610_v15 }
 0x281   : > { %1852 = vmatmul.bf16.gmra.mxu0 %v2610_v15 }
 0x290   : > { %1906 = vmatmul.bf16.gmra.mxu1 %v2611_v42 }
 0x291   : > { %1857 = vmatmul.bf16.gmra.mxu0 %v2611_v42 }
 0x2a0   : > { %1911 = vmatmul.bf16.gmra.mxu1 %v2612_v18 }
 0x2a1   : > { %1862 = vmatmul.bf16.gmra.mxu0 %v2612_v18 }
 0x2b0   : > { %1916 = vmatmul.bf16.gmra.mxu1 %v2613_v30 }
 0x2b1   : > { %1867 = vmatmul.bf16.gmra.mxu0 %v2613_v30 }
 0x2c0   : > { %1921 = vmatmul.bf16.gmra.mxu1 %v2614_v62 }
 0x2c1   : > { %1872 = vmatmul.bf16.gmra.mxu0 %v2614_v62 }
 0x2d0   : > { %1926 = vmatmul.bf16.gmra.mxu1 %v2615_v52 }
 0x2d1   : > { %1877 = vmatmul.bf16.gmra.mxu0 %v2615_v52 }
 0x2e0   : > { %1931 = vmatmul.bf16.gmra.mxu1 %v2616_v47 }
 0x2e1   : > { %1882 = vmatmul.bf16.gmra.mxu0 %v2616_v47 }
 0x2ed   : > { %v1897_v53 = vpop.f32.mrf.mxu1 }
 0x2ee   : > { %v1848_v8 = vpop.f32.mrf.mxu0  ;;  %v4068_v28 = vadd.f32 %v1897_v53, %v1714_v25 }
 0x2ef   : > { %v4070_v48 = vadd.f32 %v1848_v8, %v1714_v25 }
 0x2f1   : > { %v1937_v43 = vpack.c.bf16 %v4068_v28, %v4070_v48 }
 0x2f3   : > { %v1953_v39 = vunpack.c.l.bf16 %v1937_v43  ;;  %v1954_v60 = vunpack.c.h.bf16 %v1937_v43 }
 0x2f5   : > { %v1985_v40 = vsub.f32 0.0, %v1953_v39  ;;  %v1986_v4 = vsub.f32 0.0, %v1954_v60  ;;  %v1899_v1 = vpop.f32.mrf.mxu1 }
 0x2f6   : > { %v1850_v16 = vpop.f32.mrf.mxu0  ;;  %v4076_v55 = vadd.f32 %v1899_v1, %v1719_v10 }
 0x2f7   : > { %v2017_v14 = vpack.c.bf16 %v1986_v4, %v1985_v40  ;;  %v4078_v2 = vadd.f32 %v1850_v16, %v1719_v10 }
 0x2f9   : > { %v2033_v5 = vunpack.c.l.bf16 %v2017_v14  ;;  %v2034_v34 = vunpack.c.h.bf16 %v2017_v14  ;;  %v1938_v29 = vpack.c.bf16 %v4076_v55, %v4078_v2 }
 0x2fb   : > { %v2065_v58 = vmul.f32 1.442695, %v2033_v5  ;;  %v2067_v0 = vmul.f32 1.442695, %v2034_v34  ;;  %v1955_v19 = vunpack.c.l.bf16 %v1938_v29  ;;  %v1956_v20 = vunpack.c.h.bf16 %v1938_v29 }
 0x2fd   : > { %2936 = vpow2.f32 %v2065_v58  ;;  %v1987_v44 = vsub.f32 0.0, %v1955_v19  ;;  %v1988_v35 = vsub.f32 0.0, %v1956_v20  ;;  %v1902_v3 = vpop.f32.mrf.mxu1 }
 0x2fe   : > { %2938 = vpow2.f32 %v2067_v0  ;;  %v1853_v46 = vpop.f32.mrf.mxu0  ;;  %v4082_v26 = vadd.f32 %v1902_v3, %v1724_v32 }
 0x2ff   : > { %v2018_v50 = vpack.c.bf16 %v1988_v35, %v1987_v44  ;;  %v4084_v61 = vadd.f32 %v1853_v46, %v1724_v32 }
 0x301   : > { %v2035_v9 = vunpack.c.l.bf16 %v2018_v50  ;;  %v2036_v57 = vunpack.c.h.bf16 %v2018_v50  ;;  %v1939_v24 = vpack.c.bf16 %v4082_v26, %v4084_v61 }
 0x303   : > { %v2937_v27 = vpop.eup %2936  ;;  %v2069_v38 = vmul.f32 1.442695, %v2035_v9  ;;  %v2071_v49 = vmul.f32 1.442695, %v2036_v57  ;;  %v1957_v23 = vunpack.c.l.bf16 %v1939_v24  ;;  %v1958_v54 = vunpack.c.h.bf16 %v1939_v24 }
 0x304   : > { %v2939_v31 = vpop.eup %2938 }
 0x305   : > { %v4088_v21 = vpack.c.bf16 %v2939_v31, %v2937_v27  ;;  %2940 = vpow2.f32 %v2069_v38  ;;  %v1989_v36 = vsub.f32 0.0, %v1957_v23  ;;  %v1990_v63 = vsub.f32 0.0, %v1958_v54  ;;  %v1904_v13 = vpop.f32.mrf.mxu1 }
 0x306   : > { %2942 = vpow2.f32 %v2071_v49  ;;  %v1855_v15 = vpop.f32.mrf.mxu0  ;;  %v4090_v42 = vadd.f32 %v1904_v13, %v1729_v45 }
 0x307   : > { %v2146_v18 = vunpack.c.h.bf16 %v4088_v21  ;;  %v2019_v30 = vpack.c.bf16 %v1990_v63, %v1989_v36  ;;  %v4093_v62 = vadd.f32 %v1855_v15, %v1729_v45 }
 0x309   : > { %v2178_v52 = vadd.f32 1.0, %v2146_v18  ;;  %v2037_v47 = vunpack.c.l.bf16 %v2019_v30  ;;  %v2038_v32 = vunpack.c.h.bf16 %v2019_v30  ;;  %v1940_v25 = vpack.c.bf16 %v4090_v42, %v4093_v62 }
 0x30b   : > { %v2941_v53 = vpop.eup %2940  ;;  %2944 = vrcp.f32 %v2178_v52  ;;  %v2073_v8 = vmul.f32 1.442695, %v2037_v47  ;;  %v2075_v43 = vmul.f32 1.442695, %v2038_v32  ;;  %v1959_v39 = vunpack.c.l.bf16 %v1940_v25 }
 0x30c   : > { %v2943_v60 = vpop.eup %2942  ;;  %v1960_v10 = vunpack.c.h.bf16 %v1940_v25 }
 0x30d   : > { %v4097_v40 = vpack.c.bf16 %v2943_v60, %v2941_v53  ;;  %2946 = vpow2.f32 %v2073_v8  ;;  %v1991_v4 = vsub.f32 0.0, %v1959_v39  ;;  %v1907_v1 = vpop.f32.mrf.mxu1 }
 0x30e   : > { %2948 = vpow2.f32 %v2075_v43  ;;  %v1992_v16 = vsub.f32 0.0, %v1960_v10  ;;  %v1858_v14 = vpop.f32.mrf.mxu0  ;;  %v4099_v5 = vadd.f32 %v1907_v1, %v1734_v37 }
 0x30f   : > { %v2148_v34 = vunpack.c.h.bf16 %v4097_v40  ;;  %v4102_v29 = vadd.f32 %v1858_v14, %v1734_v37 }
 0x310   : > { %v2020_v58 = vpack.c.bf16 %v1992_v16, %v1991_v4 }
 0x311   : > { %v2945_v0 = vpop.eup %2944  ;;  %v2180_v19 = vadd.f32 1.0, %v2148_v34  ;;  %v1941_v20 = vpack.c.bf16 %v4099_v5, %v4102_v29 }
 0x312   : > { %v4107_v44 = vmul.f32 %v2945_v0, %v4068_v28  ;;  %v2039_v35 = vunpack.c.l.bf16 %v2020_v58  ;;  %v2040_v3 = vunpack.c.h.bf16 %v2020_v58 }
 0x313   : > { %v2947_v46 = vpop.eup %2946  ;;  %2950 = vrcp.f32 %v2180_v19  ;;  %v1961_v50 = vunpack.c.l.bf16 %v1941_v20  ;;  %v1962_v9 = vunpack.c.h.bf16 %v1941_v20 }
 0x314   : > { %v2949_v57 = vpop.eup %2948  ;;  %v2077_v24 = vmul.f32 1.442695, %v2039_v35  ;;  %v2079_v27 = vmul.f32 1.442695, %v2040_v3 }
 0x315   : > { %v4109_v37 = vpack.c.bf16 %v2949_v57, %v2947_v46  ;;  %v1993_v38 = vsub.f32 0.0, %v1961_v50  ;;  %v1994_v49 = vsub.f32 0.0, %v1962_v9  ;;  %v1909_v23 = vpop.f32.mrf.mxu1 }
 0x316   : > { %2952 = vpow2.f32 %v2077_v24  ;;  %v1860_v54 = vpop.f32.mrf.mxu0  ;;  %v4112_v31 = vadd.f32 %v1909_v23, %v4064_v11 }
 0x317   : > { %v2150_v28 = vunpack.c.h.bf16 %v4109_v37  ;;  %2954 = vpow2.f32 %v2079_v27  ;;  %v2021_v45 = vpack.c.bf16 %v1994_v49, %v1993_v38  ;;  %v4116_v36 = vadd.f32 %v1860_v54, %v4064_v11 }
 0x319   : > { %v2951_v63 = vpop.eup %2950  ;;  %v2182_v13 = vadd.f32 1.0, %v2150_v28  ;;  %v2041_v15 = vunpack.c.l.bf16 %v2021_v45  ;;  %v2042_v18 = vunpack.c.h.bf16 %v2021_v45  ;;  %v1942_v30 = vpack.c.bf16 %v4112_v31, %v4116_v36 }
 0x31a   : > { %v4121_v52 = vmul.f32 %v2951_v63, %v4076_v55 }
 0x31b   : > { %2956 = vrcp.f32 %v2182_v13  ;;  %v2081_v47 = vmul.f32 1.442695, %v2041_v15  ;;  %v2083_v32 = vmul.f32 1.442695, %v2042_v18  ;;  %v1963_v25 = vunpack.c.l.bf16 %v1942_v30 }
 0x31c   : > { %v2953_v53 = vpop.eup %2952  ;;  %v1964_v8 = vunpack.c.h.bf16 %v1942_v30 }
 0x31d   : > { %v2955_v43 = vpop.eup %2954  ;;  %2958 = vpow2.f32 %v2081_v47  ;;  %v1995_v11 = vsub.f32 0.0, %v1963_v25  ;;  %v1912_v39 = vpop.f32.mrf.mxu1 }
 0x31e   : > { %v4123_v60 = vpack.c.bf16 %v2955_v43, %v2953_v53  ;;  %2960 = vpow2.f32 %v2083_v32  ;;  %v1996_v10 = vsub.f32 0.0, %v1964_v8  ;;  %v1863_v4 = vpop.f32.mrf.mxu0  ;;  %v4126_v1 = vadd.f32 %v1912_v39, %v4055_v7 }
 0x31f   : > { %v4129_v55 = vadd.f32 %v1863_v4, %v4055_v7 }
 0x320   : > { %v2152_v16 = vunpack.c.h.bf16 %v4123_v60  ;;  %v2022_v14 = vpack.c.bf16 %v1996_v10, %v1995_v11  ;;  %v2145_v11 = vunpack.c.l.bf16 %v4088_v21 }
 0x321   : > { %v2957_v34 = vpop.eup %2956  ;;  %v1943_v58 = vpack.c.bf16 %v4126_v1, %v4129_v55 }
 0x322   : > { %v4135_v0 = vmul.f32 %v2957_v34, %v4082_v26  ;;  %v2184_v19 = vadd.f32 1.0, %v2152_v16  ;;  %v2043_v20 = vunpack.c.l.bf16 %v2022_v14  ;;  %v2044_v35 = vunpack.c.h.bf16 %v2022_v14 }
 0x323   : > { %v2959_v3 = vpop.eup %2958  ;;  %v1965_v46 = vunpack.c.l.bf16 %v1943_v58  ;;  %v1966_v50 = vunpack.c.h.bf16 %v1943_v58  ;;  %v2177_v58 = vadd.f32 1.0, %v2145_v11 }
 0x324   : > { %v2961_v9 = vpop.eup %2960  ;;  %2962 = vrcp.f32 %v2184_v19  ;;  %v2085_v7 = vmul.f32 1.442695, %v2043_v20  ;;  %v2087_v57 = vmul.f32 1.442695, %v2044_v35 }
 0x325   : > { %v4137_v24 = vpack.c.bf16 %v2961_v9, %v2959_v3  ;;  %v1997_v27 = vsub.f32 0.0, %v1965_v46  ;;  %v1998_v38 = vsub.f32 0.0, %v1966_v50  ;;  %v1914_v49 = vpop.f32.mrf.mxu1 }
 0x326   : > { %2964 = vpow2.f32 %v2085_v7  ;;  %v1865_v23 = vpop.f32.mrf.mxu0  ;;  %v4140_v26 = vadd.f32 %v1914_v49, %v4062_v51 }
 0x327   : > { %v2154_v54 = vunpack.c.h.bf16 %v4137_v24  ;;  %2966 = vpow2.f32 %v2087_v57  ;;  %v2023_v28 = vpack.c.bf16 %v1998_v38, %v1997_v27  ;;  %v4144_v45 = vadd.f32 %v1865_v23, %v4062_v51 }
 0x328   : > { %v2147_v23 = vunpack.c.l.bf16 %v4097_v40 }
 0x329   : > { %v2186_v63 = vadd.f32 1.0, %v2154_v54  ;;  %v2045_v13 = vunpack.c.l.bf16 %v2023_v28  ;;  %v2046_v15 = vunpack.c.h.bf16 %v2023_v28  ;;  %v1944_v18 = vpack.c.bf16 %v4140_v26, %v4144_v45 }
 0x32a   : > { %v2963_v30 = vpop.eup %2962 }
 0x32b   : > { %v4149_v47 = vmul.f32 %v2963_v30, %v4090_v42  ;;  %2968 = vrcp.f32 %v2186_v63  ;;  %v2089_v32 = vmul.f32 1.442695, %v2045_v13  ;;  %v2091_v25 = vmul.f32 1.442695, %v2046_v15 }
 0x32c   : > { %v2965_v53 = vpop.eup %2964  ;;  %v1967_v8 = vunpack.c.l.bf16 %v1944_v18  ;;  %v1968_v43 = vunpack.c.h.bf16 %v1944_v18  ;;  %v2179_v15 = vadd.f32 1.0, %v2147_v23 }
 0x32d   : > { %v2967_v51 = vpop.eup %2966  ;;  %2970 = vpow2.f32 %v2089_v32  ;;  %v1917_v39 = vpop.f32.mrf.mxu1 }
 0x32e   : > { %v4152_v10 = vpack.c.bf16 %v2967_v51, %v2965_v53  ;;  %2972 = vpow2.f32 %v2091_v25  ;;  %v1999_v4 = vsub.f32 0.0, %v1967_v8  ;;  %v2000_v16 = vsub.f32 0.0, %v1968_v43  ;;  %v1868_v14 = vpop.f32.mrf.mxu0 }
 0x32f   : > { %v4155_v42 = vadd.f32 %v1868_v14, %v4053_v41  ;;  %v4158_v34 = vadd.f32 %v1917_v39, %v4053_v41  ;;  %2974 = vrcp.f32 %v2177_v58 }
 0x330   : > { %v2156_v19 = vunpack.c.h.bf16 %v4152_v10  ;;  %v2024_v20 = vpack.c.bf16 %v2000_v16, %v1999_v4  ;;  %v2149_v16 = vunpack.c.l.bf16 %v4109_v37 }
 0x331   : > { %v2969_v21 = vpop.eup %2968  ;;  %v1945_v35 = vpack.c.bf16 %v4158_v34, %v4155_v42 }
 0x332   : > { %v4164_v3 = vmul.f32 %v2969_v21, %v4099_v5  ;;  %v2188_v46 = vadd.f32 1.0, %v2156_v19  ;;  %v2047_v50 = vunpack.c.l.bf16 %v2024_v20  ;;  %v2048_v9 = vunpack.c.h.bf16 %v2024_v20 }
 0x333   : > { %v2971_v7 = vpop.eup %2970  ;;  %v1969_v57 = vunpack.c.l.bf16 %v1945_v35  ;;  %v1970_v27 = vunpack.c.h.bf16 %v1945_v35  ;;  %v2181_v21 = vadd.f32 1.0, %v2149_v16 }
 0x334   : > { %v2973_v41 = vpop.eup %2972  ;;  %2976 = vrcp.f32 %v2188_v46  ;;  %v2093_v38 = vmul.f32 1.442695, %v2047_v50  ;;  %v2095_v49 = vmul.f32 1.442695, %v2048_v9 }
 0x335   : > { %v4167_v54 = vpack.c.bf16 %v2973_v41, %v2971_v7  ;;  %v2001_v28 = vsub.f32 0.0, %v1969_v57  ;;  %v2002_v63 = vsub.f32 0.0, %v1970_v27  ;;  %v1919_v13 = vpop.f32.mrf.mxu1  ;;  %v2975_v18 = vpop.eup %2974 }
 0x336   : > { %2978 = vpow2.f32 %v2093_v38  ;;  %v1870_v5 = vpop.f32.mrf.mxu0  ;;  %v4171_v25 = vmul.f32 %v2975_v18, %v4070_v48 }
 0x337   : > { %v2158_v30 = vunpack.c.h.bf16 %v4167_v54  ;;  %2980 = vpow2.f32 %v2095_v49  ;;  %v2025_v32 = vpack.c.bf16 %v2002_v63, %v2001_v28 }
 0x338   : > { %2982 = vrcp.f32 %v2179_v15  ;;  %v4195_v15 = vadd.f32 %v1870_v5, %v4072_v6 }
 0x339   : > { %v2190_v53 = vadd.f32 1.0, %v2158_v30  ;;  %v2049_v8 = vunpack.c.l.bf16 %v2025_v32  ;;  %v2050_v40 = vunpack.c.h.bf16 %v2025_v32 }
 0x33a   : > { %v2977_v43 = vpop.eup %2976 }
 0x33b   : > { %v4174_v11 = vmul.f32 %v2977_v43, %v4112_v31  ;;  %2984 = vrcp.f32 %v2190_v53  ;;  %v2097_v51 = vmul.f32 1.442695, %v2049_v8  ;;  %v2099_v39 = vmul.f32 1.442695, %v2050_v40 }
 0x33c   : > { %v2979_v4 = vpop.eup %2978  ;;  %v2153_v8 = vunpack.c.l.bf16 %v4137_v24 }
 0x33d   : > { %v2981_v14 = vpop.eup %2980  ;;  %2986 = vpow2.f32 %v2097_v51  ;;  %v1922_v58 = vpop.f32.mrf.mxu1 }
 0x33e   : > { %v2983_v19 = vpop.eup %2982  ;;  %v4177_v20 = vpack.c.bf16 %v2981_v14, %v2979_v4  ;;  %2988 = vpow2.f32 %v2099_v39  ;;  %v1873_v48 = vpop.f32.mrf.mxu0  ;;  %v2185_v51 = vadd.f32 1.0, %v2153_v8 }
 0x33f   : > { %v4180_v35 = vmul.f32 %v2983_v19, %v4078_v2  ;;  %2990 = vrcp.f32 %v2181_v21  ;;  %v2151_v2 = vunpack.c.l.bf16 %v4123_v60  ;;  %v4226_v21 = vadd.f32 %v1873_v48, %v4066_v33 }
 0x340   : > { %v2160_v31 = vunpack.c.h.bf16 %v4177_v20 }
 0x341   : > { %v2985_v46 = vpop.eup %2984  ;;  %v2183_v23 = vadd.f32 1.0, %v2151_v2 }
 0x342   : > { %v4188_v9 = vmul.f32 %v2985_v46, %v4126_v1  ;;  %v2192_v7 = vadd.f32 1.0, %v2160_v31  ;;  %v4198_v1 = vadd.f32 %v1919_v13, %v4072_v6  ;;  %v4229_v31 = vadd.f32 %v1922_v58, %v4066_v33 }
 0x343   : > { %v2987_v57 = vpop.eup %2986  ;;  %v2155_v46 = vunpack.c.l.bf16 %v4152_v10 }
 0x344   : > { %v2989_v27 = vpop.eup %2988  ;;  %2992 = vrcp.f32 %v2192_v7  ;;  %v1946_v53 = vpack.c.bf16 %v4198_v1, %v4195_v15  ;;  %v1947_v10 = vpack.c.bf16 %v4229_v31, %v4226_v21 }
 0x345   : > { %v4191_v41 = vpack.c.bf16 %v2989_v27, %v2987_v57  ;;  %v1924_v38 = vpop.f32.mrf.mxu1  ;;  %v2991_v28 = vpop.eup %2990  ;;  %2994 = vrcp.f32 %v2183_v23  ;;  %v2187_v48 = vadd.f32 1.0, %v2155_v46 }
 0x346   : > { %v1875_v49 = vpop.f32.mrf.mxu0  ;;  %v4201_v18 = vmul.f32 %v2991_v28, %v4084_v61  ;;  %v1971_v6 = vunpack.c.l.bf16 %v1946_v53  ;;  %v1972_v13 = vunpack.c.h.bf16 %v1946_v53  ;;  %v1974_v53 = vunpack.c.h.bf16 %v1947_v10 }
 0x347   : > { %v2162_v63 = vunpack.c.h.bf16 %v4191_v41  ;;  %v4233_v7 = vadd.f32 %v1875_v49, %v4051_v59 }
 0x348   : > { %v2003_v19 = vsub.f32 0.0, %v1971_v6 }
 0x349   : > { %v2194_v30 = vadd.f32 1.0, %v2162_v63 }
 0x34a   : > { %v2993_v60 = vpop.eup %2992 }
 0x34b   : > { %v4204_v32 = vmul.f32 %v2993_v60, %v4140_v26  ;;  %2996 = vrcp.f32 %v2194_v30  ;;  %v2995_v40 = vpop.eup %2994  ;;  %v1973_v60 = vunpack.c.l.bf16 %v1947_v10 }
 0x34c   : > { %v4210_v61 = vmul.f32 %v2995_v40, %v4093_v62  ;;  %2998 = vrcp.f32 %v2185_v51  ;;  %v2004_v62 = vsub.f32 0.0, %v1972_v13 }
 0x34d   : > { %v1927_v5 = vpop.f32.mrf.mxu1  ;;  %3000 = vrcp.f32 %v2187_v48 }
 0x34e   : > { %v1878_v43 = vpop.f32.mrf.mxu0  ;;  %v4223_v14 = vadd.f32 %v1927_v5, %v4044_v12  ;;  %v2026_v33 = vpack.c.bf16 %v2004_v62, %v2003_v19 }
 0x34f   : > { %v4220_v24 = vadd.f32 %v1878_v43, %v4044_v12 }
 0x350   : > { %v2051_v30 = vunpack.c.l.bf16 %v2026_v33  ;;  %v2052_v40 = vunpack.c.h.bf16 %v2026_v33  ;;  %v2006_v33 = vsub.f32 0.0, %v1974_v53  ;;  %v2159_v53 = vunpack.c.l.bf16 %v4177_v20 }
 0x351   : > { %v2997_v39 = vpop.eup %2996  ;;  %v1949_v12 = vpack.c.bf16 %v4223_v14, %v4220_v24 }
 0x352   : > { %v4217_v16 = vmul.f32 %v2997_v39, %v4158_v34  ;;  %v4236_v34 = vadd.f32 %v1924_v38, %v4051_v59  ;;  %v2999_v23 = vpop.eup %2998 }
 0x353   : > { %v4249_v59 = vmul.f32 %v2999_v23, %v4102_v29  ;;  %v1977_v28 = vunpack.c.l.bf16 %v1949_v12  ;;  %v1978_v63 = vunpack.c.h.bf16 %v1949_v12  ;;  %v3001_v13 = vpop.eup %3000  ;;  %v2005_v23 = vsub.f32 0.0, %v1973_v60 }
 0x354   : > { %v1948_v38 = vpack.c.bf16 %v4236_v34, %v4233_v7  ;;  %v4263_v48 = vmul.f32 %v3001_v13, %v4116_v36  ;;  %v2103_v60 = vmul.f32 1.442695, %v2052_v40 }
 0x355   : > { %v1929_v57 = vpop.f32.mrf.mxu1  ;;  %v2009_v51 = vsub.f32 0.0, %v1977_v28  ;;  %v2010_v39 = vsub.f32 0.0, %v1978_v63 }
 0x356   : > { %v1880_v27 = vpop.f32.mrf.mxu0  ;;  %v4241_v2 = vadd.f32 %v1929_v57, %v4049_v17  ;;  %v1975_v43 = vunpack.c.l.bf16 %v1948_v38  ;;  %v1976_v6 = vunpack.c.h.bf16 %v1948_v38 }
 0x357   : > { %v4246_v58 = vadd.f32 %v1880_v27, %v4049_v17  ;;  %v2157_v17 = vunpack.c.l.bf16 %v4167_v54  ;;  %v2101_v54 = vmul.f32 1.442695, %v2051_v30 }
 0x358   : > { %v2008_v63 = vsub.f32 0.0, %v1976_v6 }
 0x359   : > { %v1950_v49 = vpack.c.bf16 %v4241_v2, %v4246_v58  ;;  %v2189_v27 = vadd.f32 1.0, %v2157_v17 }
 0x35b   : > { %v1979_v8 = vunpack.c.l.bf16 %v1950_v49  ;;  %v1980_v5 = vunpack.c.h.bf16 %v1950_v49  ;;  %3002 = vrcp.f32 %v2189_v27  ;;  %v2277_v49 = vpack.c.bf16 %v4263_v48, %v4249_v59 }
 0x35c   : > { %3004 = vpow2.f32 %v2101_v54 }
 0x35d   : > { %v1932_v29 = vpop.f32.mrf.mxu1  ;;  %v2011_v19 = vsub.f32 0.0, %v1979_v8  ;;  %v2012_v62 = vsub.f32 0.0, %v1980_v5  ;;  %v2029_v5 = vpack.c.bf16 %v2010_v39, %v2009_v51 }
 0x35e   : > { %v1883_v46 = vpop.f32.mrf.mxu0  ;;  %v4260_v12 = vadd.f32 %v1932_v29, %v4042_v22  ;;  %v2027_v29 = vpack.c.bf16 %v2006_v33, %v2005_v23 }
 0x35f   : > { %v4257_v57 = vadd.f32 %v1883_v46, %v4042_v22  ;;  %v2030_v10 = vpack.c.bf16 %v2012_v62, %v2011_v19  ;;  %v2007_v22 = vsub.f32 0.0, %v1975_v43  ;;  %v2191_v43 = vadd.f32 1.0, %v2159_v53 }
 0x360   : > { %v2057_v51 = vunpack.c.l.bf16 %v2029_v5  ;;  %v2058_v20 = vunpack.c.h.bf16 %v2029_v5  ;;  %v2054_v53 = vunpack.c.h.bf16 %v2027_v29 }
 0x361   : > { %v1951_v38 = vpack.c.bf16 %v4260_v12, %v4257_v57  ;;  %v2059_v8 = vunpack.c.l.bf16 %v2030_v10  ;;  %v2060_v36 = vunpack.c.h.bf16 %v2030_v10  ;;  %v2028_v46 = vpack.c.bf16 %v2008_v63, %v2007_v22  ;;  %v3003_v6 = vpop.eup %3002 }
 0x362   : > { %3006 = vrcp.f32 %v2191_v43  ;;  %v4279_v54 = vmul.f32 %v3003_v6, %v4129_v55  ;;  %v2053_v22 = vunpack.c.l.bf16 %v2027_v29  ;;  %v2115_v5 = vmul.f32 1.442695, %v2058_v20 }
 0x363   : > { %v1981_v17 = vunpack.c.l.bf16 %v1951_v38  ;;  %v1982_v30 = vunpack.c.h.bf16 %v1951_v38  ;;  %v2117_v27 = vmul.f32 1.442695, %v2059_v8  ;;  %v2119_v39 = vmul.f32 1.442695, %v2060_v36  ;;  %v4283_v36 = vpop.eup %3004 }
 0x364   : > { %3008 = vpow2.f32 %v2103_v60  ;;  %v2055_v63 = vunpack.c.l.bf16 %v2028_v46  ;;  %v2056_v8 = vunpack.c.h.bf16 %v2028_v46  ;;  %v2161_v60 = vunpack.c.l.bf16 %v4191_v41 }
 0x365   : > { %v2013_v13 = vsub.f32 0.0, %v1981_v17  ;;  %v2014_v19 = vsub.f32 0.0, %v1982_v30  ;;  %v1934_v62 = vpop.f32.mrf.mxu1  ;;  %3010 = vpow2.f32 %v2117_v27  ;;  %v2113_v17 = vmul.f32 1.442695, %v2057_v51 }
 0x366   : > { %v1885_v37 = vpop.f32.mrf.mxu0  ;;  %v4273_v50 = vadd.f32 %v1934_v62, %v4060_v56  ;;  %3012 = vpow2.f32 %v2119_v39  ;;  %v2111_v27 = vmul.f32 1.442695, %v2056_v8  ;;  %v2193_v6 = vadd.f32 1.0, %v2161_v60 }
 0x367   : > { %v2031_v10 = vpack.c.bf16 %v2014_v19, %v2013_v13  ;;  %v4276_v40 = vadd.f32 %v1885_v37, %v4060_v56  ;;  %v2109_v19 = vmul.f32 1.442695, %v2055_v63  ;;  %v2107_v41 = vmul.f32 1.442695, %v2054_v53 }
 0x368   : > { %v3007_v13 = vpop.eup %3006 }
 0x369   : > { %v2061_v23 = vunpack.c.l.bf16 %v2031_v10  ;;  %v2062_v33 = vunpack.c.h.bf16 %v2031_v10  ;;  %v1952_v38 = vpack.c.bf16 %v4273_v50, %v4276_v40  ;;  %v4287_v51 = vmul.f32 %v3007_v13, %v4144_v45 }
 0x36a   : > { %v3009_v46 = vpop.eup %3008  ;;  %v2105_v10 = vmul.f32 1.442695, %v2053_v22 }
 0x36b   : > { %v2121_v56 = vmul.f32 1.442695, %v2061_v23  ;;  %v2123_v37 = vmul.f32 1.442695, %v2062_v33  ;;  %v1983_v30 = vunpack.c.l.bf16 %v1952_v38  ;;  %v1984_v55 = vunpack.c.h.bf16 %v1952_v38  ;;  %v3011_v39 = vpop.eup %3010 }
 0x36c   : > { %v3013_v23 = vpop.eup %3012  ;;  %v2279_v29 = vpack.c.bf16 %v4287_v51, %v4279_v54  ;;  %v2280_v33 = vpack.c.bf16 %v4204_v32, %v4188_v9  ;;  %v2138_v4 = vpack.c.bf16 %v3009_v46, %v4283_v36  ;;  %v2617_v9 = vld [vmem:[%s4389_s8] sm:$0xff]  ;;  %v4429_v32 = vpack.c.bf16 %v4180_v35, %v4171_v25 }
 0x36d   : > { %3014 = vpow2.f32 %v2121_v56  ;;  %v2015_v62 = vsub.f32 0.0, %v1983_v30  ;;  %v2016_v43 = vsub.f32 0.0, %v1984_v55  ;;  %v2337_v35 = vld [vmem:[%s412_s24] sm:$0xff] }
 0x36e   : > { %3016 = vpow2.f32 %v2123_v37  ;;  %v2164_v36 = vunpack.c.h.bf16 %v2138_v4 }
 0x36f   : > { %3018 = vpow2.f32 %v2113_v17  ;;  %v2032_v20 = vpack.c.bf16 %v2016_v43, %v2015_v62  ;;  %v2142_v17 = vpack.c.bf16 %v3013_v23, %v3011_v39 }
 0x370   : > { %3020 = vpow2.f32 %v2115_v5 }
 0x371   : > { %3022 = vrcp.f32 %v2193_v6  ;;  %v2063_v38 = vunpack.c.l.bf16 %v2032_v20  ;;  %v2064_v63 = vunpack.c.h.bf16 %v2032_v20  ;;  %v2172_v53 = vunpack.c.h.bf16 %v2142_v17 }
 0x372   : > { %3024 = vpow2.f32 %v2109_v19  ;;  %v2171_v43 = vunpack.c.l.bf16 %v2142_v17 }
 0x373   : > { %v3015_v8 = vpop.eup %3014  ;;  %3026 = vpow2.f32 %v2111_v27  ;;  %v2125_v22 = vmul.f32 1.442695, %v2063_v38  ;;  %v2127_v56 = vmul.f32 1.442695, %v2064_v63 }
 0x374   : > { %v3017_v45 = vpop.eup %3016  ;;  %3028 = vpow2.f32 %v2105_v10 }
 0x375   : > { %v3019_v37 = vpop.eup %3018  ;;  %3030 = vpow2.f32 %v2107_v41  ;;  %v2143_v30 = vpack.c.bf16 %v3017_v45, %v3015_v8  ;;  %v2204_v41 = vadd.f32 1.0, %v2172_v53  ;;  %v2203_v8 = vadd.f32 1.0, %v2171_v43 }
 0x376   : > { %v3021_v5 = vpop.eup %3020  ;;  %3032 = vpow2.f32 %v2125_v22 }
 0x377   : > { %v3023_v55 = vpop.eup %3022  ;;  %3034 = vpow2.f32 %v2127_v56  ;;  %v2141_v62 = vpack.c.bf16 %v3021_v5, %v3019_v37  ;;  %v2173_v6 = vunpack.c.l.bf16 %v2143_v30  ;;  %v2174_v10 = vunpack.c.h.bf16 %v2143_v30 }
 0x378   : > { %v3025_v60 = vpop.eup %3024  ;;  %v4294_v13 = vmul.f32 %v3023_v55, %v4155_v42  ;;  %3036 = vrcp.f32 %v2204_v41 }
 0x379   : > { %v3027_v19 = vpop.eup %3026  ;;  %v2169_v63 = vunpack.c.l.bf16 %v2141_v62  ;;  %v2205_v22 = vadd.f32 1.0, %v2173_v6  ;;  %v2170_v42 = vunpack.c.h.bf16 %v2141_v62  ;;  %v2206_v55 = vadd.f32 1.0, %v2174_v10 }
 0x37a   : > { %v3029_v27 = vpop.eup %3028  ;;  %v2140_v23 = vpack.c.bf16 %v3027_v19, %v3025_v60  ;;  %3038 = vrcp.f32 %v2203_v8  ;;  %v2163_v6 = vunpack.c.l.bf16 %v2138_v4 }
 0x37b   : > { %v3031_v39 = vpop.eup %3030  ;;  %v2201_v28 = vadd.f32 1.0, %v2169_v63  ;;  %3040 = vrcp.f32 %v2205_v22  ;;  %v2202_v43 = vadd.f32 1.0, %v2170_v42  ;;  %v2196_v63 = vadd.f32 1.0, %v2164_v36 }
 0x37c   : > { %v3033_v20 = vpop.eup %3032  ;;  %v2139_v45 = vpack.c.bf16 %v3031_v39, %v3029_v27  ;;  %v2167_v5 = vunpack.c.l.bf16 %v2140_v23  ;;  %v2168_v26 = vunpack.c.h.bf16 %v2140_v23  ;;  %3042 = vrcp.f32 %v2206_v55 }
 0x37d   : > { %v3035_v38 = vpop.eup %3034  ;;  %v2195_v41 = vadd.f32 1.0, %v2163_v6 }
 0x37e   : > { %v2144_v56 = vpack.c.bf16 %v3035_v38, %v3033_v20  ;;  %v2165_v53 = vunpack.c.l.bf16 %v2139_v45  ;;  %v2166_v19 = vunpack.c.h.bf16 %v2139_v45  ;;  %v2199_v27 = vadd.f32 1.0, %v2167_v5  ;;  %v3037_v62 = vpop.eup %3036 }
 0x37f   : > { %v2200_v46 = vadd.f32 1.0, %v2168_v26  ;;  %v2268_v5 = vmul.f32 %v3037_v62, %v4241_v2 }
 0x380   : > { %v2175_v37 = vunpack.c.l.bf16 %v2144_v56  ;;  %v2176_v17 = vunpack.c.h.bf16 %v2144_v56  ;;  %v2197_v39 = vadd.f32 1.0, %v2165_v53  ;;  %v3039_v10 = vpop.eup %3038  ;;  %v2198_v20 = vadd.f32 1.0, %v2166_v19 }
 0x381   : > { %v3041_v23 = vpop.eup %3040 }
 0x382   : > { %v2207_v30 = vadd.f32 1.0, %v2175_v37  ;;  %v2208_v60 = vadd.f32 1.0, %v2176_v17  ;;  %v3043_v38 = vpop.eup %3042  ;;  %v2269_v4 = vmul.f32 %v3041_v23, %v4257_v57  ;;  %v2267_v37 = vmul.f32 %v3039_v10, %v4246_v58 }
 0x384   : > { %3044 = vrcp.f32 %v2207_v30 }
 0x385   : > { %3046 = vrcp.f32 %v2208_v60 }
 0x386   : > { %3048 = vrcp.f32 %v2201_v28  ;;  %v2270_v28 = vmul.f32 %v3043_v38, %v4260_v12 }
 0x387   : > { %3050 = vrcp.f32 %v2202_v43 }
 0x388   : > { %3052 = vrcp.f32 %v2199_v27 }
 0x389   : > { %3054 = vrcp.f32 %v2200_v46 }
 0x38a   : > { %v3045_v8 = vpop.eup %3044  ;;  %3056 = vrcp.f32 %v2197_v39 }
 0x38b   : > { %v3047_v45 = vpop.eup %3046  ;;  %3058 = vrcp.f32 %v2198_v20  ;;  %v2271_v26 = vmul.f32 %v3045_v8, %v4276_v40 }
 0x38c   : > { %v3049_v22 = vpop.eup %3048  ;;  %v2272_v56 = vmul.f32 %v3047_v45, %v4273_v50  ;;  %3060 = vrcp.f32 %v2195_v41 }
 0x38d   : > { %v3051_v42 = vpop.eup %3050  ;;  %3062 = vrcp.f32 %v2196_v63  ;;  %v2287_v55 = vpack.c.bf16 %v2271_v26, %v2269_v4  ;;  %v2265_v57 = vmul.f32 %v3049_v22, %v4220_v24 }
 0x38e   : > { %v3053_v17 = vpop.eup %3052  ;;  %v2288_v30 = vpack.c.bf16 %v2272_v56, %v2270_v28  ;;  %v2266_v53 = vmul.f32 %v3051_v42, %v4223_v14 }
 0x38f   : > { %v3055_v60 = vpop.eup %3054  ;;  %2309 = vmatpush.bf16.msra.mxu2 %v2287_v55  ;;  %v2285_v50 = vpack.c.bf16 %v2267_v37, %v2265_v57  ;;  %v2263_v19 = vmul.f32 %v3053_v17, %v4233_v7 }
 0x390   : > { %v3057_v40 = vpop.eup %3056  ;;  %2323 = vmatpush.bf16.msra.mxu3 %v2288_v30  ;;  %v2264_v27 = vmul.f32 %v3055_v60, %v4236_v34  ;;  %v2286_v58 = vpack.c.bf16 %v2268_v5, %v2266_v53 }
 0x391   : > { %v3059_v12 = vpop.eup %3058  ;;  %v2261_v2 = vmul.f32 %v3057_v40, %v4226_v21 }
 0x392   : > { %v3061_v43 = vpop.eup %3060  ;;  %v2262_v36 = vmul.f32 %v3059_v12, %v4229_v31 }
 0x393   : > { %v3063_v6 = vpop.eup %3062  ;;  %2310 = vmatpush.bf16.msra.mxu2 %v2285_v50  ;;  %v2283_v24 = vpack.c.bf16 %v2263_v19, %v2261_v2  ;;  %v2259_v46 = vmul.f32 %v3061_v43, %v4195_v15  ;;  %v4426_v15 = vpack.c.bf16 %v4174_v11, %v4164_v3  ;;  %v4430_v3 = vpack.c.bf16 %v4121_v52, %v4107_v44  ;;  %v2296_v11 = vpop.permute.xlu0 %2295  ;;  %v2338_v44 = vld [vmem:[%s412_s24 + $0x8] sm:$0xff]  ;;  %s3080_s24 = scalar_lea.hbm %s3079_s22, 16 }
 0x394   : > { %2324 = vmatpush.bf16.msra.mxu3 %v2286_v58  ;;  %v2260_v14 = vmul.f32 %v3063_v6, %v4198_v1  ;;  %v2284_v62 = vpack.c.bf16 %v2264_v27, %v2262_v36  ;;  %v4427_v1 = vpack.c.bf16 %v4210_v61, %v4201_v18  ;;  %v2301_v52 = vpop.permute.xlu1 %2300  ;;  %p3081_p12 = scmp.ne.s32.totalorder %s3079_s22, %s3080_s24  ;;  %p3086_p2 = scmp.lt.s32.totalorder %s3084_s29, %s3080_s24 }
 0x395   : > { %v2281_v7 = vpack.c.bf16 %v2259_v46, %v4294_v13 }
 0x396   : > { %v2282_v34 = vpack.c.bf16 %v2260_v14, %v4217_v16  ;;  %v4428_v16 = vpack.c.bf16 %v4149_v47, %v4135_v0  ;;  %p3082_p13 = pnand %p3081_p12, %p3240_p4  ;;  %p3087_p3 = por %p3086_p2, %p3085_p1 }
 0x397   : > { %2311 = vmatpush.bf16.msra.mxu2 %v2283_v24 }
 0x398   : > { %2325 = vmatpush.bf16.msra.mxu3 %v2284_v62  ;;  %p3083_p0 = pneg %p3082_p13 }
 0x39a   : > { %p3088_p5 = pnand %p3087_p3, %p3083_p0 }
 0x39b   : > { %2312 = vmatpush.bf16.msra.mxu2 %v2281_v7 }
 0x39c   : > { %2326 = vmatpush.bf16.msra.mxu3 %v2282_v34 }
 0x39f   : > { %2313 = vmatpush.bf16.msra.mxu2 %v2279_v29 }
 0x3a0   : > { %2327 = vmatpush.bf16.msra.mxu3 %v2280_v33 }
 0x3a3   : > { %2314 = vmatpush.bf16.msra.mxu2 %v2277_v49 }
 0x3a4   : > { %2328 = vmatpush.bf16.msra.mxu3 %v4426_v15 }
 0x3a7   : > { %2315 = vmatpush.bf16.msra.mxu2 %v4427_v1 }
 0x3a8   : > { %2329 = vmatpush.bf16.msra.mxu3 %v4428_v16 }
 0x3ab   : > { %2316 = vmatpush.bf16.msra.mxu2 %v4429_v32 }
 0x3ac   : > { %2330 = vmatpush.bf16.msra.mxu3 %v4430_v3 }
 0x3ae   : > { %2317 = vmatmul.bf16.vlgmr.msra.gmra.mxu2 %v2617_v9 }
 0x3af   : > { %2331 = vmatmul.bf16.vlgmr.msra.gmra.mxu3 %v2617_v9 }
 0x431   : > { %v2318_v18 = vpop.f32.mrf.mxu2 }
 0x432   : > { %v2319_v0 = vadd.f32 %v2318_v18, %v2296_v11  ;;  %v2332_v47 = vpop.f32.mrf.mxu3 }
 0x433   : > { %v2333_v61 = vadd.f32 %v2332_v47, %v2296_v11 }
 0x434   : > { %v2339_v25 = vadd.f32 1.0, %v2319_v0 }
 0x435   : > { %v2340_v21 = vadd.f32 1.0, %v2333_v61 }
 0x436   : > { %v2341_v59 = vmul.f32 %v2339_v25, %v2337_v35 }
 0x437   : > { %v2342_v54 = vmul.f32 %v2340_v21, %v2338_v44 }
 0x439   : > { %v2320_v31 = vpop.f32.mrf.mxu2 }
 0x43a   : > { %v2321_v48 = vadd.f32 %v2320_v31, %v2301_v52  ;;  %v2334_v49 = vpop.f32.mrf.mxu3 }
 0x43b   : > { %v2335_v51 = vadd.f32 %v2334_v49, %v2301_v52 }
 0x43c   : > { %v2343_v29 = vadd.f32 %v2341_v59, %v2321_v48 }
 0x43d   : > { %v2344_v33 = vadd.f32 %v2342_v54, %v2335_v51 }
 0x43e   : > { %2345 = vst [vmem:[%s403_s19] sm:$0xff] %v2343_v29 }
 0x43f   : > { %2346 = vst [vmem:[%s403_s19 + $0x8] sm:$0xff] %v2344_v33 }
 0x440   : > { %3091 = shalt.err (!%p3088_p5)
}
 0x441   : > { %2621 = dma.vmem_to_hbm [thread:$0]  (%p3240_p4), %s2364_s20, 256, %s2366_s11, %s2348_s16  }
 0x442 PF: > { %p2627_p6 = scmp.ge.s32.totalorder %s3142_s18, 2  ;;  %s2377_s12 = sand.u32 1, %s3122_s13  }
 0x443   : > { %s2378_s19 = scalar_lea.sflag [#allocation3], %s2377_s12 }
 0x444   : > { %p2624_p7 = pnand %p2627_p6, %p3247_p8 }
 0x446   : > { %p2625_p9 = pneg %p2624_p7 }
 0x448   : > { %3117 = dma.done.wait (%p2625_p9), %s2378_s19, 256  }
 0x449   : > { %3119 = vsyncadd (%p2625_p9), %s2378_s19, 4294967040  ;;  %s23_s18 = sadd.s32 1, %s3142_s18   ;;  %s4431_s23 = sld [smem:[#allocation5_spill]] }
 0x44a   : > { %p20_p10 = scmp.ge.s32.totalorder %s23_s18, 4   ;;  %s4432_s13 = smov %s3126_s14 }
 0x44b   : > { %s4433_s14 = smov %s3130_s15  ;;  %s4434_s15 = smov %s3253_s26 }
 0x44c   : > { %s4435_s16 = smov %s3138_s17  ;;  %22 = sbr.rel (!%p20_p10) target bundleno = 4 (0x4), region = 98 }
 0x44f   : > { %s4436_s17 = smov %s4431_s23 }
 0x451   :  { %2384 = vsyncpa [#allocation3], 1 }
 0x452   :  { %2386 = vsyncpa [#allocation3 + $0x1], 1 }

</bundles_post_ra>
